<compile_context>
chip_gen: v5e
topology: v5e:2x2
jax: 0.10.0
libtpu: 0.0.40
codegen_flags: <defaults>
</compile_context>

<pallas_src>
import jax
import jax.numpy as jnp
import numpy as np
from jax.experimental import pallas as pl
from jax.experimental.pallas import tpu as pltpu

LANES = 128
F32 = 4  # bytes per float32


def identity_kernel(x_ref, wbd_ref, bc_ref, w1_ref, b1_ref, w2_ref, b2_ref,
                    w3_ref, b3_ref, man_ref, emb_ref, out_ref):
    hi = jax.lax.Precision.HIGHEST
    x = x_ref[...]                                           # (TB, S*200) f32

    # Conv2d(1,1,(1,200)) as a block-diagonal MXU matmul on the flattened rows:
    # column s of wbd holds the 200-tap kernel in rows s*200 .. s*200+199.
    h0 = jnp.dot(x, wbd_ref[...], precision=hi,
                 preferred_element_type=jnp.float32) + bc_ref[0, 0]   # bias from SMEM
    h0 = jnp.maximum(h0, 0.0)                                # ReLU -> (TB, S)

    # fc1 + ReLU -> manifold   (dropout1 with p=0.0 is the identity)
    man = jnp.dot(h0, w1_ref[...], precision=hi,
                  preferred_element_type=jnp.float32) + b1_ref[...]
    man = jnp.maximum(man, 0.0)                              # (TB, 128)

    # fc2 + ReLU -> embedding  (dropout2 with p=0.0 is the identity)
    emb = jnp.dot(man, w2_ref[...], precision=hi,
                  preferred_element_type=jnp.float32) + b2_ref[...]
    emb = jnp.maximum(emb, 0.0)                              # (TB, h_dim)

    # fc3 -> logits
    out = jnp.dot(emb, w3_ref[...], precision=hi,
                  preferred_element_type=jnp.float32) + b3_ref[...]

    man_ref[...] = man
    emb_ref[...] = emb
    out_ref[...] = out
    # TODO(synk): dropout with p > 0 (training mode) not implemented; module
    # default p=0.0 / eval semantics are the identity, which is what we compute.


def _round_up(n, m):
    return ((n + m - 1) // m) * m


def _physical_vmem_bytes():
    try:
        info = pltpu.get_tpu_info()
        for attr in ("vmem_capacity_bytes", "vmem_size_bytes", "vmem_bytes"):
            v = getattr(info, attr, None)
            if v:
                return int(v)
    except Exception:
        pass
    return 64 * 1024 * 1024  # conservative fallback == v7x physical VMEM


def _choose_tile_and_vmem(B, S, KW, f1, h_dim, out_dim):
    """Batch tile + scoped-VMEM request from a real per-generation budget."""
    phys = _physical_vmem_bytes()
    # 3/4 of physical: ~96 MiB on v5e/v6e (128 MiB phys), ~48 MiB on v7x (64 MiB).
    vmem_limit = min((phys * 3) // 4, 96 * 1024 * 1024)
    budget = (vmem_limit * 3) // 4                  # fill ~75% of the scoped limit

    # Per-sample VMEM bytes (double-buffered), lane padding included.
    x_row = _round_up(S * KW, LANES) * F32                           # 1600 -> 1664
    out_rows = (_round_up(f1, LANES) + _round_up(h_dim, LANES)
                + _round_up(out_dim, LANES)) * F32                   # man/emb/out
    per_sample = 2 * (x_row + out_rows)
    # Resident weights/biases (grid-invariant, still double-buffered).
    weights = 2 * F32 * (
        S * KW * _round_up(S, LANES)                                 # block-diag conv
        + _round_up(S, 8) * _round_up(f1, LANES)                     # w1
        + f1 * _round_up(h_dim, LANES)                               # w2
        + _round_up(h_dim, 8) * _round_up(out_dim, LANES)            # w3
        + 4 * LANES)                                                 # biases (generous)

    avail = max(budget - weights, 8 * per_sample)
    tb_cap = max(8, (avail // per_sample) // 8 * 8)

    if B <= tb_cap:
        if B > 16:
            # >= 2 grid steps so both v7x TensorCores get work (no-op on 1-TC chips).
            TB = min(tb_cap, _round_up((B + 1) // 2, 8))
        else:
            TB = B                                  # tiny batch: single full block
    else:
        TB = tb_cap
    return TB, vmem_limit


def prepare_params(params, seq_len, kw):
    """One-time parameter preparation (hoisted out of the per-call forward)."""
    wc, bc, w1, b1, w2, b2, w3, b3 = params
    wc_flat = jnp.reshape(wc, (kw,)).astype(jnp.float32)
    # Block-diagonal (S*KW, S): (x_flat @ wbd)[b, s] == sum_k x[b, s, k] * wc[k].
    eye = jnp.eye(seq_len, dtype=jnp.float32)
    wbd = jnp.reshape(eye[:, None, :] * wc_flat[None, :, None], (seq_len * kw, seq_len))
    bc_smem = jnp.reshape(bc, (1, 1)).astype(jnp.float32)
    return (wbd, bc_smem,
            w1.astype(jnp.float32), jnp.reshape(b1, (1, -1)).astype(jnp.float32),
            w2.astype(jnp.float32), jnp.reshape(b2, (1, -1)).astype(jnp.float32),
            w3.astype(jnp.float32), jnp.reshape(b3, (1, -1)).astype(jnp.float32))


def identity_forward(x, prepared):
    """x: (B, SEQ_LEN, 200) float32. Returns (manifold, embedding, logits)."""
    wbd, bc, w1, b1, w2, b2, w3, b3 = prepared
    B, S, KW = x.shape
    f1 = w1.shape[1]          # 128 by module definition
    h_dim = w2.shape[1]
    out_dim = w3.shape[1]

    # Contiguous per-sample rows: one 6.4 KB stream per sample, 4% lane pad.
    xf = jnp.reshape(x, (B, S * KW))

    TB, vmem_limit = _choose_tile_and_vmem(B, S, KW, f1, h_dim, out_dim)
    grid = (pl.cdiv(B, TB),)

    in_specs = [
        pl.BlockSpec((TB, S * KW), lambda i: (i, 0)),                     # x (flattened)
        pl.BlockSpec((S * KW, S), lambda i: (0, 0)),                      # block-diag conv w
        pl.BlockSpec(memory_space=pltpu.MemorySpace.SMEM),                # conv bias scalar
        pl.BlockSpec((S, f1), lambda i: (0, 0)),                          # w1
        pl.BlockSpec((1, f1), lambda i: (0, 0)),                          # b1
        pl.BlockSpec((f1, h_dim), lambda i: (0, 0)),                      # w2
        pl.BlockSpec((1, h_dim), lambda i: (0, 0)),                       # b2
        pl.BlockSpec((h_dim, out_dim), lambda i: (0, 0)),                 # w3
        pl.BlockSpec((1, out_dim), lambda i: (0, 0)),                     # b3
    ]
    out_specs = (
        pl.BlockSpec((TB, f1), lambda i: (i, 0)),       # manifold (lane-dense, 128)
        pl.BlockSpec((TB, h_dim), lambda i: (i, 0)),    # embedding (unpadded; store hides under x DMA)
        pl.BlockSpec((TB, out_dim), lambda i: (i, 0)),  # logits (unpadded)
    )
    out_shape = (
        jax.ShapeDtypeStruct((B, f1), jnp.float32),
        jax.ShapeDtypeStruct((B, h_dim), jnp.float32),
        jax.ShapeDtypeStruct((B, out_dim), jnp.float32),
    )

    return pl.pallas_call(
        identity_kernel,
        grid=grid,
        in_specs=in_specs,
        out_specs=out_specs,
        out_shape=out_shape,
        compiler_params=pltpu.CompilerParams(
            dimension_semantics=("parallel",),
            vmem_limit_bytes=vmem_limit,
        ),
    )(xf, wbd, bc, w1, b1, w2, b2, w3, b3)


def _reference_np(x, params):
    """Float64 NumPy reference of the same forward pass (ground truth)."""
    wc, bc, w1, b1, w2, b2, w3, b3 = [np.asarray(p, np.float64) for p in params]
    x = np.asarray(x, np.float64)
    h0 = np.maximum((x * wc).sum(-1) + bc[0, 0], 0.0)     # Conv2d(1,1,(1,200)) + ReLU
    man = np.maximum(h0 @ w1 + b1, 0.0)
    emb = np.maximum(man @ w2 + b2, 0.0)
    out = emb @ w3 + b3
    return man, emb, out


if __name__ == "__main__":
    SEQ_LEN, KW = 8, 200          # conv kernel width fixed to 200 by the module
    H_DIM, OUT_DIM = 64, 10

    key = jax.random.PRNGKey(0)
    keys = jax.random.split(key, 10)

    def u(k, shape, fan_in):
        # PyTorch-style U(-1/sqrt(fan_in), 1/sqrt(fan_in)) deterministic init.
        bound = 1.0 / (fan_in ** 0.5)
        return jax.random.uniform(k, shape, jnp.float32, -bound, bound)

    wc = u(keys[0], (1, 1, KW), KW)            # Conv2d(1,1,(1,200)).weight flattened
    bc = u(keys[1], (1, 1), KW)                # Conv2d bias
    w1 = u(keys[2], (SEQ_LEN, 128), SEQ_LEN)   # fc1 (stored in x out layout)
    b1 = u(keys[3], (1, 128), SEQ_LEN)
    w2 = u(keys[4], (128, H_DIM), 128)         # fc2
    b2 = u(keys[5], (1, H_DIM), 128)
    w3 = u(keys[6], (H_DIM, OUT_DIM), H_DIM)   # fc3
    b3 = u(keys[7], (1, OUT_DIM), H_DIM)
    params = (wc, bc, w1, b1, w2, b2, w3, b3)

    prepared = prepare_params(params, SEQ_LEN, KW)   # one-time prep (hoisted)
    fwd = jax.jit(identity_forward)

    # B=2: single full block.  B=20: >=2 grid steps + a partial final block.
    for B, xkey in ((2, keys[8]), (20, keys[9])):
        x = jax.random.normal(xkey, (B, SEQ_LEN, KW), jnp.float32)
        manifold, embedding, logits = fwd(x, prepared)
        jax.block_until_ready((manifold, embedding, logits))

        assert manifold.shape == (B, 128)
        assert embedding.shape == (B, H_DIM)
        assert logits.shape == (B, OUT_DIM)

        man_r, emb_r, out_r = _reference_np(np.asarray(x), params)
        for name, got, ref in (("manifold", manifold, man_r),
                               ("embedding", embedding, emb_r),
                               ("logits", logits, out_r)):
            np.testing.assert_allclose(np.asarray(got), ref, rtol=1e-4, atol=1e-4,
                                       err_msg=f"{name} mismatch (B={B})")

    print("KERNEL_OK")
</pallas_src>

<mosaic_0001>
module attributes {stable_mosaic.version = 11 : i64} {
  func.func @identity_kernel(%arg0: i32, %arg1: memref<2x1600xf32, #tpu.memory_space<vmem>>, %arg2: memref<1600x8xf32, #tpu.memory_space<vmem>>, %arg3: memref<1x1xf32, #tpu.memory_space<smem>>, %arg4: memref<8x128xf32, #tpu.memory_space<vmem>>, %arg5: memref<1x128xf32, #tpu.memory_space<vmem>>, %arg6: memref<128x64xf32, #tpu.memory_space<vmem>>, %arg7: memref<1x64xf32, #tpu.memory_space<vmem>>, %arg8: memref<64x10xf32, #tpu.memory_space<vmem>>, %arg9: memref<1x10xf32, #tpu.memory_space<vmem>>, %arg10: memref<2x128xf32, #tpu.memory_space<vmem>>, %arg11: memref<2x64xf32, #tpu.memory_space<vmem>>, %arg12: memref<2x10xf32, #tpu.memory_space<vmem>>) attributes {dimension_semantics = [#tpu.dimension_semantics<parallel>], iteration_bounds = array<i64: 1>, scalar_prefetch = 0 : i64, scratch_operands = 0 : i64, tpu.core_type = #tpu.core_type<tc>, window_params = [{transform_indices = @transform_0, window_bounds = array<i64: 2, 1600>}, {pipeline_mode = #tpu.pipeline_mode<synchronous>, transform_indices = @transform_1, window_bounds = array<i64: 1600, 8>}, {transform_indices = @transform_2, window_bounds = array<i64: 1, 1>}, {pipeline_mode = #tpu.pipeline_mode<synchronous>, transform_indices = @transform_3, window_bounds = array<i64: 8, 128>}, {pipeline_mode = #tpu.pipeline_mode<synchronous>, transform_indices = @transform_4, window_bounds = array<i64: 1, 128>}, {pipeline_mode = #tpu.pipeline_mode<synchronous>, transform_indices = @transform_5, window_bounds = array<i64: 128, 64>}, {pipeline_mode = #tpu.pipeline_mode<synchronous>, transform_indices = @transform_6, window_bounds = array<i64: 1, 64>}, {pipeline_mode = #tpu.pipeline_mode<synchronous>, transform_indices = @transform_7, window_bounds = array<i64: 64, 10>}, {pipeline_mode = #tpu.pipeline_mode<synchronous>, transform_indices = @transform_8, window_bounds = array<i64: 1, 10>}, {transform_indices = @transform_9, window_bounds = array<i64: 2, 128>}, {transform_indices = @transform_10, window_bounds = array<i64: 2, 64>}, {transform_indices = @transform_11, window_bounds = array<i64: 2, 10>}]} {
    %c0 = arith.constant 0 : index
    %c0_0 = arith.constant 0 : index
    %0 = vector.load %arg1[%c0, %c0_0] : memref<2x1600xf32, #tpu.memory_space<vmem>>, vector<2x1600xf32>
    %c0_1 = arith.constant 0 : index
    %c0_2 = arith.constant 0 : index
    %1 = vector.load %arg2[%c0_1, %c0_2] : memref<1600x8xf32, #tpu.memory_space<vmem>>, vector<1600x8xf32>
    %cst = arith.constant dense<0.000000e+00> : vector<2x8xf32>
    %2 = tpu.matmul %0, %1, %cst {dimension_numbers = #tpu.dot_dimension_numbers<[1], [0], [0], [1], [0, 0, 1, 1], [], []>, precision = #tpu.contract_precision<fp32>} : vector<2x1600xf32>, vector<1600x8xf32>, vector<2x8xf32> -> vector<2x8xf32>
    %c0_3 = arith.constant 0 : index
    %c0_4 = arith.constant 0 : index
    %3 = memref.load %arg3[%c0_3, %c0_4] : memref<1x1xf32, #tpu.memory_space<smem>>
    %4 = vector.broadcast %3 : f32 to vector<2x8xf32>
    %5 = arith.addf %2, %4 : vector<2x8xf32>
    %cst_5 = arith.constant 0.000000e+00 : f32
    %6 = vector.broadcast %cst_5 : f32 to vector<2x8xf32>
    %7 = arith.maximumf %5, %6 : vector<2x8xf32>
    %c0_6 = arith.constant 0 : index
    %c0_7 = arith.constant 0 : index
    %8 = vector.load %arg4[%c0_6, %c0_7] : memref<8x128xf32, #tpu.memory_space<vmem>>, vector<8x128xf32>
    %cst_8 = arith.constant dense<0.000000e+00> : vector<2x128xf32>
    %9 = tpu.matmul %7, %8, %cst_8 {dimension_numbers = #tpu.dot_dimension_numbers<[1], [0], [0], [1], [0, 0, 1, 1], [], []>, precision = #tpu.contract_precision<fp32>} : vector<2x8xf32>, vector<8x128xf32>, vector<2x128xf32> -> vector<2x128xf32>
    %c0_9 = arith.constant 0 : index
    %c0_10 = arith.constant 0 : index
    %10 = vector.load %arg5[%c0_9, %c0_10] : memref<1x128xf32, #tpu.memory_space<vmem>>, vector<1x128xf32>
    %11 = vector.broadcast %10 : vector<1x128xf32> to vector<2x128xf32>
    %12 = arith.addf %9, %11 : vector<2x128xf32>
    %cst_11 = arith.constant 0.000000e+00 : f32
    %13 = vector.broadcast %cst_11 : f32 to vector<2x128xf32>
    %14 = arith.maximumf %12, %13 : vector<2x128xf32>
    %c0_12 = arith.constant 0 : index
    %c0_13 = arith.constant 0 : index
    %15 = vector.load %arg6[%c0_12, %c0_13] : memref<128x64xf32, #tpu.memory_space<vmem>>, vector<128x64xf32>
    %cst_14 = arith.constant dense<0.000000e+00> : vector<2x64xf32>
    %16 = tpu.matmul %14, %15, %cst_14 {dimension_numbers = #tpu.dot_dimension_numbers<[1], [0], [0], [1], [0, 0, 1, 1], [], []>, precision = #tpu.contract_precision<fp32>} : vector<2x128xf32>, vector<128x64xf32>, vector<2x64xf32> -> vector<2x64xf32>
    %c0_15 = arith.constant 0 : index
    %c0_16 = arith.constant 0 : index
    %17 = vector.load %arg7[%c0_15, %c0_16] : memref<1x64xf32, #tpu.memory_space<vmem>>, vector<1x64xf32>
    %18 = vector.broadcast %17 : vector<1x64xf32> to vector<2x64xf32>
    %19 = arith.addf %16, %18 : vector<2x64xf32>
    %cst_17 = arith.constant 0.000000e+00 : f32
    %20 = vector.broadcast %cst_17 : f32 to vector<2x64xf32>
    %21 = arith.maximumf %19, %20 : vector<2x64xf32>
    %c0_18 = arith.constant 0 : index
    %c0_19 = arith.constant 0 : index
    %22 = vector.load %arg8[%c0_18, %c0_19] : memref<64x10xf32, #tpu.memory_space<vmem>>, vector<64x10xf32>
    %cst_20 = arith.constant dense<0.000000e+00> : vector<2x10xf32>
    %23 = tpu.matmul %21, %22, %cst_20 {dimension_numbers = #tpu.dot_dimension_numbers<[1], [0], [0], [1], [0, 0, 1, 1], [], []>, precision = #tpu.contract_precision<fp32>} : vector<2x64xf32>, vector<64x10xf32>, vector<2x10xf32> -> vector<2x10xf32>
    %c0_21 = arith.constant 0 : index
    %c0_22 = arith.constant 0 : index
    %24 = vector.load %arg9[%c0_21, %c0_22] : memref<1x10xf32, #tpu.memory_space<vmem>>, vector<1x10xf32>
    %25 = vector.broadcast %24 : vector<1x10xf32> to vector<2x10xf32>
    %26 = arith.addf %23, %25 : vector<2x10xf32>
    %c0_23 = arith.constant 0 : index
    %c0_24 = arith.constant 0 : index
    %27 = vector.load %arg10[%c0_23, %c0_24] : memref<2x128xf32, #tpu.memory_space<vmem>>, vector<2x128xf32>
    tpu.vector_store %arg10[%c0_23, %c0_24], %14 {strides = array<i32>} : memref<2x128xf32, #tpu.memory_space<vmem>>, vector<2x128xf32>,
    %c0_25 = arith.constant 0 : index
    %c0_26 = arith.constant 0 : index
    %28 = vector.load %arg11[%c0_25, %c0_26] : memref<2x64xf32, #tpu.memory_space<vmem>>, vector<2x64xf32>
    tpu.vector_store %arg11[%c0_25, %c0_26], %21 {strides = array<i32>} : memref<2x64xf32, #tpu.memory_space<vmem>>, vector<2x64xf32>,
    %c0_27 = arith.constant 0 : index
    %c0_28 = arith.constant 0 : index
    %29 = vector.load %arg12[%c0_27, %c0_28] : memref<2x10xf32, #tpu.memory_space<vmem>>, vector<2x10xf32>
    tpu.vector_store %arg12[%c0_27, %c0_28], %26 {strides = array<i32>} : memref<2x10xf32, #tpu.memory_space<vmem>>, vector<2x10xf32>,
    return
  }
  func.func @transform_0(%arg0: i32) -> (i32, i32) {
    %c0_i32 = arith.constant 0 : i32
    %c0_i32_0 = arith.constant 0 : i32
    return %arg0, %c0_i32 : i32, i32
  }
  func.func @transform_1(%arg0: i32) -> (i32, i32) {
    %c0_i32 = arith.constant 0 : i32
    %c0_i32_0 = arith.constant 0 : i32
    %c0_i32_1 = arith.constant 0 : i32
    return %c0_i32, %c0_i32_0 : i32, i32
  }
  func.func @transform_2(%arg0: i32) -> (i32, i32) {
    %c0_i32 = arith.constant 0 : i32
    %c0_i32_0 = arith.constant 0 : i32
    %c0_i32_1 = arith.constant 0 : i32
    return %c0_i32, %c0_i32_0 : i32, i32
  }
  func.func @transform_3(%arg0: i32) -> (i32, i32) {
    %c0_i32 = arith.constant 0 : i32
    %c0_i32_0 = arith.constant 0 : i32
    %c0_i32_1 = arith.constant 0 : i32
    return %c0_i32, %c0_i32_0 : i32, i32
  }
  func.func @transform_4(%arg0: i32) -> (i32, i32) {
    %c0_i32 = arith.constant 0 : i32
    %c0_i32_0 = arith.constant 0 : i32
    %c0_i32_1 = arith.constant 0 : i32
    return %c0_i32, %c0_i32_0 : i32, i32
  }
  func.func @transform_5(%arg0: i32) -> (i32, i32) {
    %c0_i32 = arith.constant 0 : i32
    %c0_i32_0 = arith.constant 0 : i32
    %c0_i32_1 = arith.constant 0 : i32
    return %c0_i32, %c0_i32_0 : i32, i32
  }
  func.func @transform_6(%arg0: i32) -> (i32, i32) {
    %c0_i32 = arith.constant 0 : i32
    %c0_i32_0 = arith.constant 0 : i32
    %c0_i32_1 = arith.constant 0 : i32
    return %c0_i32, %c0_i32_0 : i32, i32
  }
  func.func @transform_7(%arg0: i32) -> (i32, i32) {
    %c0_i32 = arith.constant 0 : i32
    %c0_i32_0 = arith.constant 0 : i32
    %c0_i32_1 = arith.constant 0 : i32
    return %c0_i32, %c0_i32_0 : i32, i32
  }
  func.func @transform_8(%arg0: i32) -> (i32, i32) {
    %c0_i32 = arith.constant 0 : i32
    %c0_i32_0 = arith.constant 0 : i32
    %c0_i32_1 = arith.constant 0 : i32
    return %c0_i32, %c0_i32_0 : i32, i32
  }
  func.func @transform_9(%arg0: i32) -> (i32, i32) {
    %c0_i32 = arith.constant 0 : i32
    %c0_i32_0 = arith.constant 0 : i32
    return %arg0, %c0_i32 : i32, i32
  }
  func.func @transform_10(%arg0: i32) -> (i32, i32) {
    %c0_i32 = arith.constant 0 : i32
    %c0_i32_0 = arith.constant 0 : i32
    return %arg0, %c0_i32 : i32, i32
  }
  func.func @transform_11(%arg0: i32) -> (i32, i32) {
    %c0_i32 = arith.constant 0 : i32
    %c0_i32_0 = arith.constant 0 : i32
    return %arg0, %c0_i32 : i32, i32
  }
}

</mosaic_0001>

<bundles_post_ra>
// kernel: identity_forward.1
= control target key start
LH: loop header
LB: loop body
LE: loop exit
PB: predicated region body
PF: predicated region fallthrough
CT: control target
= control target key end

     0   :  { %18 = vsyncpa [#allocation4], 0  ;;  %s9711_s0 = inlined_call_operand.vmem [shape: f32[2,1600], index: 0, kind: input, shape index: {}]   ;;  %s9712_s1 = inlined_call_operand.vmem [shape: f32[1600,8], index: 1, kind: input, shape index: {}]   ;;  %s9713_s2 = inlined_call_operand.<no memory space> [shape: f32[1,1], index: 2, kind: input, shape index: {}]   ;;  %s9714_s3 = inlined_call_operand.vmem [shape: f32[8,128], index: 3, kind: input, shape index: {}]   ;;  %s9715_s4 = inlined_call_operand.vmem [shape: f32[1,128], index: 4, kind: input, shape index: {}]   ;;  %s9716_s5 = inlined_call_operand.vmem [shape: f32[128,64], index: 5, kind: input, shape index: {}]   ;;  %s9717_s6 = inlined_call_operand.vmem [shape: f32[1,64], index: 6, kind: input, shape index: {}]   ;;  %s9718_s7 = inlined_call_operand.vmem [shape: f32[64,10], index: 7, kind: input, shape index: {}]   ;;  %s9719_s8 = inlined_call_operand.vmem [shape: f32[1,10], index: 8, kind: input, shape index: {}]   ;;  %s9720_s9 = inlined_call_operand.hbm [shape: f32[2,128], index: 9, kind: output, shape index: {0}]   ;;  %s9721_s10 = inlined_call_operand.hbm [shape: f32[2,64], index: 10, kind: output, shape index: {1}]   ;;  %s9722_s11 = inlined_call_operand.hbm [shape: f32[2,10], index: 11, kind: output, shape index: {2}]  }
   0x1   :  { %v57_v0 = vld [vmem:[%s9712_s1 + $0x78] sm:$0xff]  ;;  %v56_v1 = vld [vmem:[%s9712_s1 + $0x70] sm:$0xff]  ;;  %v55_v2 = vld [vmem:[%s9712_s1 + $0x68] sm:$0xff] }
   0x2   :  { %v5587_v3 = vand.u32 4294901760, %v57_v0  ;;  %v5589_v4 = vand.u32 4294901760, %v56_v1  ;;  %v5591_v5 = vand.u32 4294901760, %v55_v2  ;;  %v54_v6 = vld [vmem:[%s9712_s1 + $0x60] sm:$0xff]  ;;  %v53_v7 = vld [vmem:[%s9712_s1 + $0x58] sm:$0xff]  ;;  %v52_v8 = vld [vmem:[%s9712_s1 + $0x50] sm:$0xff] }
   0x3   :  { %v5602_v9 = vand.u32 4294901760, %v54_v6  ;;  %v5604_v10 = vand.u32 4294901760, %v53_v7  ;;  %v5606_v11 = vand.u32 4294901760, %v52_v8  ;;  %v51_v12 = vld [vmem:[%s9712_s1 + $0x48] sm:$0xff]  ;;  %v50_v13 = vld [vmem:[%s9712_s1 + $0x40] sm:$0xff]  ;;  %v49_v21 = vld [vmem:[%s9712_s1 + $0x38] sm:$0xff] }
   0x4   :  { %282 = vmatpush.msra.mxu0 %v5587_v3  ;;  %v5616_v14 = vsub.f32 %v57_v0, %v5587_v3  ;;  %v5619_v15 = vsub.f32 %v56_v1, %v5589_v4  ;;  %478 = vmatpush.msra.mxu3 %v5587_v3  ;;  %v5623_v16 = vsub.f32 %v55_v2, %v5591_v5  ;;  %v5625_v17 = vand.u32 4294901760, %v51_v12  ;;  %v48_v26 = vld [vmem:[%s9712_s1 + $0x30] sm:$0xff]  ;;  %v47_v34 = vld [vmem:[%s9712_s1 + $0x28] sm:$0xff] }
   0x5   :  { %v5628_v18 = vsub.f32 %v54_v6, %v5602_v9  ;;  %v5631_v19 = vsub.f32 %v53_v7, %v5604_v10  ;;  %v5634_v20 = vsub.f32 %v52_v8, %v5606_v11  ;;  %v5644_v25 = vand.u32 4294901760, %v50_v13 }
   0x6   :  { %284 = vmatpush.msra.mxu0 %v5589_v4  ;;  %425 = vmatpush.msra.mxu2 %v5616_v14  ;;  %v324_v22 = vand.u32 4294901760, %v5616_v14  ;;  %v9738_v23 = vand.u32 4294901760, %v5619_v15  ;;  %v9736_v24 = vand.u32 4294901760, %v5623_v16  ;;  %v5653_v29 = vsub.f32 %v51_v12, %v5625_v17 }
   0x7   :  { %480 = vmatpush.msra.mxu3 %v5589_v4  ;;  %v9735_v27 = vand.u32 4294901760, %v5628_v18  ;;  %v9732_v28 = vand.u32 4294901760, %v5631_v19  ;;  %v5666_v33 = vand.u32 4294901760, %v49_v21  ;;  %v5672_v35 = vand.u32 4294901760, %v48_v26 }
   0x8   :  { %286 = vmatpush.msra.mxu0 %v5591_v5  ;;  %428 = vmatpush.msra.mxu2 %v5619_v15  ;;  %v325_v30 = vsub.f32 %v5616_v14, %v324_v22  ;;  %v331_v31 = vsub.f32 %v5619_v15, %v9738_v23  ;;  %v337_v32 = vsub.f32 %v5623_v16, %v9736_v24  ;;  %v9730_v36 = vand.u32 4294901760, %v5634_v20 }
   0x9   :  { %482 = vmatpush.msra.mxu3 %v5591_v5  ;;  %v343_v39 = vsub.f32 %v5628_v18, %v9735_v27  ;;  %v5681_v40 = vsub.f32 %v50_v13, %v5644_v25 }
   0xa   :  { %288 = vmatpush.msra.mxu0 %v5602_v9  ;;  %v326_v37 = vand.u32 4294901760, %v325_v30  ;;  %431 = vmatpush.msra.mxu2 %v5623_v16  ;;  %v332_v38 = vand.u32 4294901760, %v331_v31 }
   0xb   :  { %19 = vsyncpa [#allocation6], 0  ;;  %484 = vmatpush.msra.mxu3 %v5602_v9  ;;  %v349_v41 = vsub.f32 %v5631_v19, %v9732_v28  ;;  %v46_v42 = vld [vmem:[%s9712_s1 + $0x20] sm:$0xff]  ;;  %v338_v43 = vand.u32 4294901760, %v337_v32  ;;  %v5691_v44 = vand.u32 4294901760, %v47_v34  ;;  %v9729_v45 = vand.u32 4294901760, %v5653_v29 }
   0xc   :  { %290 = vmatpush.msra.mxu0 %v5604_v10  ;;  %327 = vmatpush.msra.mxu1 %v326_v37  ;;  %v5695_v46 = vsub.f32 %v49_v21, %v5666_v33  ;;  %v45_v47 = vld [vmem:[%s9712_s1 + $0x18] sm:$0xff]  ;;  %v355_v48 = vsub.f32 %v5634_v20, %v9730_v36  ;;  %v344_v49 = vand.u32 4294901760, %v343_v39  ;;  %v5706_v50 = vand.u32 4294901760, %v46_v42  ;;  %v44_v54 = vld [vmem:[%s9712_s1 + $0x10] sm:$0xff]  ;;  %v38_v55 = vld [vmem:[%s9711_s0] sm:$0xff]  ;;  %s5404_s21 = sshll.u32 %s9721_s10, 4  ;;  %s5405_s21 = int_to_ptr.hbm [resolvable:$true] %s5404_s21 }
   0xd   :  { %434 = vmatpush.msra.mxu2 %v5628_v18  ;;  %486 = vmatpush.msra.mxu3 %v5604_v10  ;;  %v9728_v51 = vand.u32 4294901760, %v5681_v40  ;;  %v5710_v52 = vsub.f32 %v48_v26, %v5672_v35  ;;  %v5714_v53 = vand.u32 4294901760, %v45_v47  ;;  %v350_v56 = vand.u32 4294901760, %v349_v41  ;;  %v73_v60 = vld [vmem:[%s9712_s1 + $0xf8] sm:$0xff]  ;;  %248 = vst [vmem:[#allocation1] ss:$4 sm:$0xff] %v38_v55 }
   0xe   :  { %292 = vmatpush.msra.mxu0 %v5606_v11  ;;  %333 = vmatpush.msra.mxu1 %v332_v38  ;;  %v361_v57 = vsub.f32 %v5653_v29, %v9729_v45  ;;  %v9727_v58 = vand.u32 4294901760, %v5695_v46  ;;  %v5728_v59 = vsub.f32 %v47_v34, %v5691_v44  ;;  %v356_v61 = vand.u32 4294901760, %v355_v48  ;;  %v43_v62 = vld [vmem:[%s9712_s1 + $0x8] sm:$0xff]  ;;  %v42_v6 = vld [vmem:[%s9712_s1] sm:$0xff]  ;;  %v72_v7 = vld [vmem:[%s9712_s1 + $0xf0] sm:$0xff]  ;;  %s5515_s22 = smov [#allocation5]  }
   0xf   :  { %437 = vmatpush.msra.mxu2 %v5631_v19  ;;  %488 = vmatpush.msra.mxu3 %v5606_v11  ;;  %v367_v63 = vsub.f32 %v5681_v40, %v9728_v51  ;;  %v5742_v0 = vand.u32 4294901760, %v44_v54  ;;  %v9726_v1 = vand.u32 4294901760, %v5710_v52  ;;  %v5746_v2 = vsub.f32 %v46_v42, %v5706_v50  ;;  %v71_v34 = vld [vmem:[%s9712_s1 + $0xe8] sm:$0xff]  ;;  %v66_v45 = vld [vmem:[%s9712_s1 + $0xc0] sm:$0xff]  ;;  %s5402_s23 = sshll.u32 %s5515_s22, 4  ;;  %s5517_s10 = smov [#allocation7]   ;;  %s5403_s23 = int_to_ptr.vmem [resolvable:$true] %s5402_s23 }
  0x10   :  { %294 = vmatpush.msra.mxu0 %v5625_v17  ;;  %339 = vmatpush.msra.mxu1 %v338_v43  ;;  %v5757_v8 = vsub.f32 %v45_v47, %v5714_v53  ;;  %v5759_v12 = vand.u32 4294901760, %v73_v60  ;;  %v362_v13 = vand.u32 4294901760, %v361_v57  ;;  %v373_v21 = vsub.f32 %v5695_v46, %v9727_v58  ;;  %v70_v47 = vld [vmem:[%s9712_s1 + $0xe0] sm:$0xff]  ;;  %s5413_s28 = sshll.u32 %s5517_s10, 4  ;;  %s5415_s30 = sshll.u32 %s9722_s11, 4  ;;  %s5414_s28 = int_to_ptr.vmem [resolvable:$true] %s5413_s28  ;;  %s5416_s30 = int_to_ptr.hbm [resolvable:$true] %s5415_s30 }
  0x11   :  { %440 = vmatpush.msra.mxu2 %v5634_v20  ;;  %490 = vmatpush.msra.mxu3 %v5625_v17  ;;  %v5765_v26 = vand.u32 4294901760, %v43_v62  ;;  %v9724_v30 = vand.u32 4294901760, %v5728_v59  ;;  %v5770_v31 = vand.u32 4294901760, %v42_v6  ;;  %v5772_v32 = vand.u32 4294901760, %v72_v7 }
  0x12   :  { %296 = vmatpush.msra.mxu0 %v5644_v25  ;;  %345 = vmatpush.msra.mxu1 %v344_v49  ;;  %v368_v37 = vand.u32 4294901760, %v367_v63  ;;  %v379_v38 = vsub.f32 %v5710_v52, %v9726_v1  ;;  %v9723_v39 = vand.u32 4294901760, %v5746_v2  ;;  %v5783_v41 = vsub.f32 %v44_v54, %v5742_v0 }
  0x13   :  { %443 = vmatpush.msra.mxu2 %v5653_v29  ;;  %492 = vmatpush.msra.mxu3 %v5644_v25  ;;  %v9725_v42 = vand.u32 4294901760, %v5757_v8  ;;  %v5789_v43 = vsub.f32 %v73_v60, %v5759_v12  ;;  %v374_v48 = vand.u32 4294901760, %v373_v21  ;;  %v385_v49 = vsub.f32 %v5728_v59, %v9724_v30  ;;  %v69_v60 = vld [vmem:[%s9712_s1 + $0xd8] sm:$0xff]  ;;  %v68_v21 = vld [vmem:[%s9712_s1 + $0xd0] sm:$0xff] }
  0x14   :  { %298 = vmatpush.msra.mxu0 %v5666_v33  ;;  %351 = vmatpush.msra.mxu1 %v350_v56  ;;  %v5799_v54 = vsub.f32 %v43_v62, %v5765_v26  ;;  %v5801_v55 = vand.u32 4294901760, %v71_v34  ;;  %v5806_v56 = vsub.f32 %v42_v6, %v5770_v31  ;;  %v5809_v57 = vsub.f32 %v72_v7, %v5772_v32 }
  0x15   :  { %446 = vmatpush.msra.mxu2 %v5681_v40  ;;  %494 = vmatpush.msra.mxu3 %v5666_v33  ;;  %v391_v62 = vsub.f32 %v5746_v2, %v9723_v39  ;;  %v9731_v63 = vand.u32 4294901760, %v5783_v41  ;;  %v397_v6 = vsub.f32 %v5757_v8, %v9725_v42  ;;  %v9733_v7 = vand.u32 4294901760, %v5789_v43 }
  0x16   :  { %300 = vmatpush.msra.mxu0 %v5672_v35  ;;  %357 = vmatpush.msra.mxu1 %v356_v61  ;;  %9859 = vst [vmem:[#allocation10_spill] sm:$0xff] %v5801_v55  ;;  %v380_v61 = vand.u32 4294901760, %v379_v38  ;;  %v9734_v38 = vand.u32 4294901760, %v5799_v54  ;;  %v5833_v39 = vsub.f32 %v71_v34, %v5801_v55  ;;  %v5835_v30 = vand.u32 4294901760, %v69_v60 }
  0x17   :  { %449 = vmatpush.msra.mxu2 %v5695_v46  ;;  %496 = vmatpush.msra.mxu3 %v5672_v35  ;;  %v9739_v42 = vand.u32 4294901760, %v5806_v56  ;;  %v9737_v1 = vand.u32 4294901760, %v5809_v57  ;;  %v403_v34 = vsub.f32 %v5783_v41, %v9731_v63  ;;  %v5851_v51 = vand.u32 4294901760, %v68_v21 }
  0x18   :  { %302 = vmatpush.msra.mxu0 %v5691_v44  ;;  %363 = vmatpush.msra.mxu1 %v362_v13  ;;  %v5819_v13 = vand.u32 4294901760, %v70_v47  ;;  %v398_v36 = vand.u32 4294901760, %v397_v6  ;;  %v5867_v63 = vsub.f32 %v69_v60, %v5835_v30  ;;  %v65_v6 = vld [vmem:[%s9712_s1 + $0xb8] sm:$0xff]  ;;  %vm278_vm0 = vcmask 523264  }
  0x19   :  { %452 = vmatpush.msra.mxu2 %v5710_v52  ;;  %498 = vmatpush.msra.mxu3 %v5691_v44  ;;  %v404_v60 = vand.u32 4294901760, %v403_v34  ;;  %v5887_v24 = vsub.f32 %v68_v21, %v5851_v51  ;;  %v5892_v23 = vand.u32 4294901760, %v65_v6  ;;  %vm4616_vm1 = vcmask 64512  }
  0x1a   :  { %304 = vmatpush.msra.mxu0 %v5706_v50  ;;  %369 = vmatpush.msra.mxu1 %v368_v37  ;;  %v386_v37 = vand.u32 4294901760, %v385_v49  ;;  %v392_v49 = vand.u32 4294901760, %v391_v62  ;;  %v5849_v58 = vsub.f32 %v70_v47, %v5819_v13  ;;  %v409_v47 = vsub.f32 %v5799_v54, %v9734_v38 }
  0x1b   :  { %455 = vmatpush.msra.mxu2 %v5728_v59  ;;  %500 = vmatpush.msra.mxu3 %v5706_v50  ;;  %v9740_v62 = vand.u32 4294901760, %v5833_v39  ;;  %v415_v38 = vsub.f32 %v5806_v56, %v9739_v42  ;;  %v9742_v14 = vand.u32 4294901760, %v5867_v63  ;;  %vm5382_vm2 = vcmask 517120  }
  0x1c   :  { %306 = vmatpush.msra.mxu0 %v5714_v53  ;;  %375 = vmatpush.msra.mxu1 %v374_v48  ;;  %v67_v48 = vld [vmem:[%s9712_s1 + $0xc8] sm:$0xff]  ;;  %v9741_v27 = vand.u32 4294901760, %v5849_v58  ;;  %v410_v34 = vand.u32 4294901760, %v409_v47  ;;  %vm5384_vm3 = vcmask 74752  }
  0x1d   :  { %458 = vmatpush.msra.mxu2 %v5746_v2  ;;  %502 = vmatpush.msra.mxu3 %v5714_v53  ;;  %v5869_v28 = vand.u32 4294901760, %v67_v48  ;;  %v678_v21 = vsub.f32 %v5833_v39, %v9740_v62  ;;  %v63_v47 = vld [vmem:[%s9712_s1 + $0xa8] sm:$0xff]  ;;  %v416_v62 = vand.u32 4294901760, %v415_v38 }
  0x1e   :  { %308 = vmatpush.msra.mxu0 %v5742_v0  ;;  %381 = vmatpush.msra.mxu1 %v380_v61  ;;  %v666_v61 = vsub.f32 %v5789_v43, %v9733_v7  ;;  %v5879_v7 = vand.u32 4294901760, %v66_v45 }
  0x1f   :  { %461 = vmatpush.msra.mxu2 %v5757_v8  ;;  %504 = vmatpush.msra.mxu3 %v5742_v0  ;;  %v679_v38 = vand.u32 4294901760, %v678_v21 }
  0x20   :  { %310 = vmatpush.msra.mxu0 %v5765_v26  ;;  %387 = vmatpush.msra.mxu1 %v386_v37  ;;  %v672_v37 = vsub.f32 %v5809_v57, %v9737_v1  ;;  %v667_v1 = vand.u32 4294901760, %v666_v61  ;;  %v9860_v61 = vand.u32 4294901760, %v5619_v15 }
  0x21   :  { %464 = vmatpush.msra.mxu2 %v5783_v41  ;;  %506 = vmatpush.msra.mxu3 %v5765_v26 }
  0x22   :  { %312 = vmatpush.msra.mxu0 %v5770_v31  ;;  %393 = vmatpush.msra.mxu1 %v392_v49  ;;  %v64_v49 = vld [vmem:[%s9712_s1 + $0xb0] sm:$0xff]  ;;  %v673_v42 = vand.u32 4294901760, %v672_v37  ;;  %v9861_v37 = vand.u32 4294901760, %v5623_v16  ;;  %v5934_v16 = vand.u32 4294901760, %v63_v47 }
  0x23   :  { %467 = vmatpush.msra.mxu2 %v5799_v54  ;;  %508 = vmatpush.msra.mxu3 %v5770_v31 }
  0x24   :  { %519 = vmatpush.msrb.mxu0 %v324_v22  ;;  %399 = vmatpush.msra.mxu1 %v398_v36  ;;  %v5903_v22 = vsub.f32 %v67_v48, %v5869_v28  ;;  %v5909_v36 = vsub.f32 %v66_v45, %v5879_v7  ;;  %v684_v48 = vsub.f32 %v5849_v58, %v9741_v27 }
  0x25   :  { %470 = vmatpush.msra.mxu2 %v5806_v56  ;;  %668 = vmatpush.msrb.mxu3 %v667_v1  ;;  %v5924_v45 = vsub.f32 %v65_v6, %v5892_v23  ;;  %v690_v27 = vsub.f32 %v5867_v63, %v9742_v14  ;;  %v9862_v1 = vand.u32 4294901760, %v5628_v18 }
  0x26   :  { %523 = vmatpush.msrb.mxu0 %v9860_v61  ;;  %405 = vmatpush.msra.mxu1 %v404_v60  ;;  %v5919_v61 = vand.u32 4294901760, %v64_v49  ;;  %v62_v60 = vld [vmem:[%s9712_s1 + $0xa0] sm:$0xff]  ;;  %v685_v21 = vand.u32 4294901760, %v684_v48  ;;  %v9865_v6 = vand.u32 4294901760, %v5903_v22 }
  0x27   :  { %623 = vmatpush.msrb.mxu2 %v5759_v12  ;;  %674 = vmatpush.msrb.mxu3 %v673_v42  ;;  %v5949_v18 = vand.u32 4294901760, %v62_v60  ;;  %v9864_v42 = vand.u32 4294901760, %v5631_v19  ;;  %v691_v48 = vand.u32 4294901760, %v690_v27  ;;  %v9866_v19 = vand.u32 4294901760, %v5634_v20  ;;  %v60_v27 = vld [vmem:[%s9712_s1 + $0x90] sm:$0xff] }
  0x28   :  { %527 = vmatpush.msrb.mxu0 %v9861_v37  ;;  %411 = vmatpush.msra.mxu1 %v410_v34  ;;  %v61_v34 = vld [vmem:[%s9712_s1 + $0x98] sm:$0xff]  ;;  %v9863_v37 = vand.u32 4294901760, %v5887_v24  ;;  %v5947_v15 = vsub.f32 %v64_v49, %v5919_v61  ;;  %v5960_v49 = vsub.f32 %v63_v47, %v5934_v16 }
  0x29   :  { %625 = vmatpush.msrb.mxu2 %v5772_v32  ;;  %680 = vmatpush.msrb.mxu3 %v679_v38 }
  0x2a   :  { %531 = vmatpush.msrb.mxu0 %v9862_v1  ;;  %417 = vmatpush.msra.mxu1 %v416_v62  ;;  %v696_v14 = vsub.f32 %v5887_v24, %v9863_v37  ;;  %v9745_v1 = vand.u32 4294901760, %v5924_v45  ;;  %v251_v62 = vld.sshfl [vmem:[#allocation1] sm:$0xff pattern:$0x73625140]  ;;  %v702_v37 = vsub.f32 %v5903_v22, %v9865_v6  ;;  %v9746_v38 = vand.u32 4294901760, %v5947_v15 }
  0x2b   :  { %627 = vmatpush.msrb.mxu2 %v5801_v55  ;;  %v5962_v55 = vand.u32 4294901760, %v61_v34  ;;  %686 = vmatpush.msrb.mxu3 %v685_v21  ;;  %v5976_v6 = vsub.f32 %v62_v60, %v5949_v18  ;;  %v5978_v20 = vand.u32 4294901760, %v251_v62  ;;  %v725_v21 = vand.u32 4294901760, %v5960_v49 }
  0x2c   :  { %535 = vmatpush.msrb.mxu0 %v9864_v42  ;;  %586 = vmatpush.msrb.mxu1 %v5587_v3  ;;  %v9867_v3 = vand.u32 4294901760, %v5909_v36  ;;  %v697_v47 = vand.u32 4294901760, %v696_v14  ;;  %v59_v14 = vld [vmem:[%s9712_s1 + $0x88] sm:$0xff]  ;;  %v703_v60 = vand.u32 4294901760, %v702_v37 }
  0x2d   :  { %629 = vmatpush.msrb.mxu2 %v5819_v13  ;;  %692 = vmatpush.msrb.mxu3 %v691_v48  ;;  %v720_v48 = vsub.f32 %v5947_v15, %v9746_v38  ;;  %v6008_v37 = vsub.f32 %v251_v62, %v5978_v20 }
  0x2e   :  { %539 = vmatpush.msrb.mxu0 %v9866_v19  ;;  %588 = vmatpush.msrb.mxu1 %v5589_v4  ;;  %v708_v42 = vsub.f32 %v5909_v36, %v9867_v3  ;;  %v9868_v4 = vand.u32 4294901760, %v5653_v29  ;;  %v714_v19 = vsub.f32 %v5924_v45, %v9745_v1  ;;  %v5991_v3 = vand.u32 4294901760, %v60_v27  ;;  %v58_v1 = vld [vmem:[%s9712_s1 + $0x80] sm:$0xff] }
  0x2f   :  { %631 = vmatpush.msrb.mxu2 %v5835_v30  ;;  %v5994_v29 = vsub.f32 %v61_v34, %v5962_v55  ;;  %698 = vmatpush.msrb.mxu3 %v697_v47  ;;  %v731_v34 = vand.u32 4294901760, %v5976_v6  ;;  %v726_v47 = vsub.f32 %v5960_v49, %v725_v21  ;;  %v6023_v38 = vand.u32 4294901760, %v58_v1 }
  0x30   :  { %543 = vmatpush.msrb.mxu0 %v9868_v4  ;;  %590 = vmatpush.msrb.mxu1 %v5591_v5  ;;  %v9869_v5 = vand.u32 4294901760, %v5681_v40  ;;  %v709_v4 = vand.u32 4294901760, %v708_v42  ;;  %v6010_v40 = vand.u32 4294901760, %v59_v14  ;;  %v715_v42 = vand.u32 4294901760, %v714_v19 }
  0x31   :  { %633 = vmatpush.msrb.mxu2 %v5851_v51  ;;  %704 = vmatpush.msrb.mxu3 %v703_v60  ;;  %v6021_v62 = vsub.f32 %v60_v27, %v5991_v3  ;;  %v732_v19 = vsub.f32 %v5976_v6, %v731_v34  ;;  %v315_v60 = vand.u32 4294901760, %v6008_v37 }
  0x32   :  { %547 = vmatpush.msrb.mxu0 %v9869_v5  ;;  %592 = vmatpush.msrb.mxu1 %v5602_v9  ;;  %v9870_v9 = vand.u32 4294901760, %v5695_v46  ;;  %v737_v5 = vand.u32 4294901760, %v5994_v29  ;;  %v9871_v46 = vand.u32 4294901760, %v5710_v52  ;;  %v6034_v27 = vsub.f32 %v59_v14, %v6010_v40 }
  0x33   :  { %635 = vmatpush.msrb.mxu2 %v5869_v28  ;;  %710 = vmatpush.msrb.mxu3 %v709_v4  ;;  %v743_v4 = vand.u32 4294901760, %v6021_v62  ;;  %v9873_v14 = vand.u32 4294901760, %v5746_v2 }
  0x34   :  { %551 = vmatpush.msrb.mxu0 %v9870_v9  ;;  %594 = vmatpush.msrb.mxu1 %v5604_v10  ;;  %v721_v10 = vand.u32 4294901760, %v720_v48  ;;  %v9872_v9 = vand.u32 4294901760, %v5728_v59  ;;  %v738_v52 = vsub.f32 %v5994_v29, %v737_v5  ;;  %v6045_v48 = vsub.f32 %v58_v1, %v6023_v38  ;;  %v252_v59 = vld.sshfl [vmem:[#allocation1 + $0x8] sm:$0xff pattern:$0x73625140] }
  0x35   :  { %637 = vmatpush.msrb.mxu2 %v5879_v7  ;;  %716 = vmatpush.msrb.mxu3 %v715_v42  ;;  %v316_v42 = vsub.f32 %v6008_v37, %v315_v60 }
  0x36   :  { %555 = vmatpush.msrb.mxu0 %v9871_v46  ;;  %596 = vmatpush.msrb.mxu1 %v5606_v11  ;;  %v727_v11 = vand.u32 4294901760, %v726_v47  ;;  %v749_v47 = vand.u32 4294901760, %v6034_v27  ;;  %v9874_v46 = vand.u32 4294901760, %v5757_v8  ;;  %v739_v2 = vand.u32 4294901760, %v738_v52 }
  0x37   :  { %639 = vmatpush.msrb.mxu2 %v5892_v23  ;;  %722 = vmatpush.msrb.mxu3 %v721_v10  ;;  %v755_v1 = vand.u32 4294901760, %v6045_v48  ;;  %v6061_v10 = vand.u32 4294901760, %v252_v59  ;;  %v9877_v52 = vand.u32 4294901760, %v5806_v56  ;;  %v9881_v56 = vand.u32 4294901760, %v5849_v58 }
  0x38   :  { %559 = vmatpush.msrb.mxu0 %v9872_v9  ;;  %598 = vmatpush.msrb.mxu1 %v5625_v17  ;;  %v733_v17 = vand.u32 4294901760, %v732_v19  ;;  %v9875_v19 = vand.u32 4294901760, %v5783_v41  ;;  %v750_v8 = vsub.f32 %v6034_v27, %v749_v47  ;;  %v9876_v9 = vand.u32 4294901760, %v5799_v54 }
  0x39   :  { %641 = vmatpush.msrb.mxu2 %v5919_v61  ;;  %728 = vmatpush.msrb.mxu3 %v727_v11  ;;  %v6078_v11 = vsub.f32 %v252_v59, %v6061_v10 }
  0x3a   :  { %563 = vmatpush.msrb.mxu0 %v9873_v14  ;;  %600 = vmatpush.msrb.mxu1 %v5644_v25  ;;  %v744_v25 = vsub.f32 %v6021_v62, %v743_v4 }
  0x3b   :  { %643 = vmatpush.msrb.mxu2 %v5934_v16  ;;  %734 = vmatpush.msrb.mxu3 %v733_v17  ;;  %v656_v14 = vand.u32 4294901760, %v6078_v11  ;;  %v80_v17 = vld [vmem:[%s9712_s1 + $0x130] sm:$0xff] }
  0x3c   :  { %567 = vmatpush.msrb.mxu0 %v9874_v46  ;;  %602 = vmatpush.msrb.mxu1 %v5666_v33  ;;  %v317_v33 = vand.u32 4294901760, %v316_v42  ;;  %v745_v41 = vand.u32 4294901760, %v744_v25  ;;  %v79_v25 = vld [vmem:[%s9712_s1 + $0x128] sm:$0xff] }
  0x3d   :  { %645 = vmatpush.msrb.mxu2 %v5949_v18  ;;  %740 = vmatpush.msrb.mxu3 %v739_v2 }
  0x3e   :  { %571 = vmatpush.msrb.mxu0 %v9875_v19  ;;  %604 = vmatpush.msrb.mxu1 %v5672_v35  ;;  %v756_v35 = vsub.f32 %v6045_v48, %v755_v1  ;;  %v6279_v19 = vand.u32 4294901760, %v80_v17 }
  0x3f   :  { %647 = vmatpush.msrb.mxu2 %v5962_v55  ;;  %318 = vmatmul.f32.vlgmr.msra.gmra.mxu0 %v317_v33 }
  0x40   :  { %575 = vmatpush.msrb.mxu0 %v9876_v9  ;;  %606 = vmatpush.msrb.mxu1 %v5691_v44  ;;  %v751_v44 = vand.u32 4294901760, %v750_v8  ;;  %v757_v54 = vand.u32 4294901760, %v756_v35  ;;  %v78_v8 = vld [vmem:[%s9712_s1 + $0x120] sm:$0xff] }
  0x41   :  { %649 = vmatpush.msrb.mxu2 %v5991_v3  ;;  %746 = vmatpush.msrb.mxu3 %v745_v41  ;;  %v6294_v41 = vand.u32 4294901760, %v79_v25 }
  0x42   :  { %579 = vmatpush.msrb.mxu0 %v9877_v52  ;;  %608 = vmatpush.msrb.mxu1 %v5706_v50  ;;  %v9878_v50 = vand.u32 4294901760, %v5789_v43  ;;  %v253_v52 = vld.sshfl [vmem:[#allocation1 + $0x10] sm:$0xff pattern:$0x73625140] }
  0x43   :  { %651 = vmatpush.msrb.mxu2 %v6010_v40  ;;  %752 = vmatpush.msrb.mxu3 %v751_v44 }
  0x44   :  { %766 = vmatpush.msra.mxu0 %v5789_v43  ;;  %610 = vmatpush.msrb.mxu1 %v5714_v53  ;;  %v657_v53 = vsub.f32 %v6078_v11, %v656_v14 }
  0x45   :  { %653 = vmatpush.msrb.mxu2 %v6023_v38  ;;  %758 = vmatpush.msrb.mxu3 %v757_v54  ;;  %v77_v54 = vld [vmem:[%s9712_s1 + $0x118] sm:$0xff] }
  0x46   :  { %769 = vmatpush.msra.mxu0 %v5809_v57  ;;  %612 = vmatpush.msrb.mxu1 %v5742_v0  ;;  %v9879_v0 = vand.u32 4294901760, %v5809_v57  ;;  %v658_v43 = vand.u32 4294901760, %v657_v53  ;;  %v9888_v57 = vand.u32 4294901760, %v5947_v15 }
  0x47   :  { %473 = vmatmul.f32.vlgmr.msra.gmra.mxu2 %v6008_v37  ;;  %512 = vmatmul.f32.vlgmr.msra.gmra.mxu3 %v315_v60  ;;  %v81_v60 = vld [vmem:[%s9712_s1 + $0x138] sm:$0xff] }
  0x48   :  { %772 = vmatpush.msra.mxu0 %v5833_v39  ;;  %860 = vmatpush.msra.mxu2 %v9878_v50  ;;  %v6263_v46 = vand.u32 4294901760, %v81_v60  ;;  %v6309_v50 = vand.u32 4294901760, %v78_v8 }
  0x49   :  { %614 = vmatpush.msrb.mxu1 %v5765_v26  ;;  %927 = vmatpush.msra.mxu3 %v5759_v12  ;;  %v9880_v26 = vand.u32 4294901760, %v5833_v39  ;;  %v9883_v39 = vand.u32 4294901760, %v5867_v63 }
  0x4a   :  { %775 = vmatpush.msra.mxu0 %v5849_v58  ;;  %864 = vmatpush.msra.mxu2 %v9879_v0  ;;  %v9884_v58 = vand.u32 4294901760, %v5887_v24  ;;  %v6313_v0 = vsub.f32 %v80_v17, %v6279_v19 }
  0x4b   :  { %616 = vmatpush.msrb.mxu1 %v5770_v31  ;;  %929 = vmatpush.msra.mxu3 %v5772_v32  ;;  %v9882_v31 = vld [vmem:[#allocation10_spill] sm:$0xff] }
  0x4c   :  { %778 = vmatpush.msra.mxu0 %v5867_v63  ;;  %419 = vmatmul.f32.vlgmr.msra.gmra.mxu1 %v5978_v20  ;;  %v87_v63 = vld [vmem:[%s9712_s1 + $0x168] sm:$0xff] }
  0x4d   :  { %868 = vmatpush.msra.mxu2 %v9880_v26  ;;  %819 = vmatpush.msra.mxu1 %v5759_v12  ;;  %v9885_v12 = vand.u32 4294901760, %v5903_v22 }
  0x4e   :  { %781 = vmatpush.msra.mxu0 %v5887_v24  ;;  %931 = vmatpush.msra.mxu3 %v9882_v31  ;;  %v9886_v24 = vand.u32 4294901760, %v5909_v36 }
  0x4f   :  { %872 = vmatpush.msra.mxu2 %v9881_v56  ;;  %821 = vmatpush.msra.mxu1 %v5772_v32  ;;  %v9887_v32 = vand.u32 4294901760, %v5924_v45  ;;  %v6320_v56 = vand.u32 4294901760, %v253_v52 }
  0x50   :  { %659 = vmatmul.f32.vlgmr.msrb.gmra.mxu2 %v658_v43  ;;  %784 = vmatpush.msra.mxu0 %v5903_v22  ;;  %v76_v43 = vld [vmem:[%s9712_s1 + $0x110] sm:$0xff] }
  0x51   :  { %823 = vmatpush.msra.mxu1 %v9882_v31  ;;  %876 = vmatpush.msra.mxu2 %v9883_v39  ;;  %v6326_v39 = vand.u32 4294901760, %v77_v54 }
  0x52   :  { %933 = vmatpush.msra.mxu3 %v5819_v13  ;;  %581 = vmatmul.f32.vlgmr.msrb.gmra.mxu0 %v5978_v20 }
  0x53   :  { %760 = vmatmul.f32.vlgmr.msrb.gmra.mxu3 %v6061_v10  ;;  %787 = vmatpush.msra.mxu0 %v5909_v36  ;;  %v85_v36 = vld [vmem:[%s9712_s1 + $0x158] sm:$0xff] }
  0x54   :  { %825 = vmatpush.msra.mxu1 %v5819_v13  ;;  %880 = vmatpush.msra.mxu2 %v9884_v58 }
  0x55   :  { %935 = vmatpush.msra.mxu3 %v5835_v30  ;;  %618 = vmatmul.f32.vlgmr.msrb.gmra.mxu1 %v5978_v20 }
  0x56   :  { %790 = vmatpush.msra.mxu0 %v5924_v45  ;;  %827 = vmatpush.msra.mxu1 %v5835_v30  ;;  %v89_v30 = vld [vmem:[%s9712_s1 + $0x178] sm:$0xff]  ;;  %v84_v45 = vld [vmem:[%s9712_s1 + $0x150] sm:$0xff] }
  0x57   :  { %884 = vmatpush.msra.mxu2 %v9885_v12  ;;  %937 = vmatpush.msra.mxu3 %v5851_v51  ;;  %v6207_v20 = vand.u32 4294901760, %v84_v45  ;;  %v6330_v12 = vsub.f32 %v79_v25, %v6294_v41 }
  0x58   :  { %793 = vmatpush.msra.mxu0 %v5947_v15  ;;  %829 = vmatpush.msra.mxu1 %v5851_v51  ;;  %v88_v51 = vld [vmem:[%s9712_s1 + $0x170] sm:$0xff] }
  0x59   :  { %888 = vmatpush.msra.mxu2 %v9886_v24  ;;  %939 = vmatpush.msra.mxu3 %v5869_v28  ;;  %v6163_v13 = vand.u32 4294901760, %v88_v51 }
  0x5a   :  { %796 = vmatpush.msra.mxu0 %v5960_v49  ;;  %831 = vmatpush.msra.mxu1 %v5869_v28  ;;  %v6153_v28 = vand.u32 4294901760, %v89_v30  ;;  %v6196_v49 = vand.u32 4294901760, %v85_v36 }
  0x5b   :  { %892 = vmatpush.msra.mxu2 %v9887_v32  ;;  %941 = vmatpush.msra.mxu3 %v5879_v7  ;;  %v6338_v32 = vand.u32 4294901760, %v76_v43 }
  0x5c   :  { %799 = vmatpush.msra.mxu0 %v5976_v6  ;;  %833 = vmatpush.msra.mxu1 %v5879_v7  ;;  %v86_v7 = vld [vmem:[%s9712_s1 + $0x160] sm:$0xff]  ;;  %v6176_v22 = vsub.f32 %v89_v30, %v6153_v28 }
  0x5d   :  { %896 = vmatpush.msra.mxu2 %v9888_v57  ;;  %943 = vmatpush.msra.mxu3 %v5892_v23  ;;  %v6186_v15 = vand.u32 4294901760, %v86_v7  ;;  %v6342_v57 = vsub.f32 %v78_v8, %v6309_v50  ;;  %v6376_v25 = vsub.f32 %v76_v43, %v6338_v32 }
  0x5e   :  { %802 = vmatpush.msra.mxu0 %v5994_v29  ;;  %835 = vmatpush.msra.mxu1 %v5892_v23  ;;  %v6173_v23 = vand.u32 4294901760, %v87_v63 }
  0x5f   :  { %900 = vmatpush.msra.mxu2 %v725_v21  ;;  %945 = vmatpush.msra.mxu3 %v5919_v61  ;;  %v6217_v29 = vsub.f32 %v86_v7, %v6186_v15  ;;  %v6350_v7 = vsub.f32 %v253_v52, %v6320_v56 }
  0x60   :  { %805 = vmatpush.msra.mxu0 %v6021_v62  ;;  %837 = vmatpush.msra.mxu1 %v5919_v61  ;;  %v6189_v61 = vsub.f32 %v88_v51, %v6163_v13  ;;  %v6203_v6 = vsub.f32 %v87_v63, %v6173_v23  ;;  %v6239_v62 = vsub.f32 %v84_v45, %v6207_v20  ;;  %v9750_v51 = vand.u32 4294901760, %v6313_v0  ;;  %v75_v63 = vld [vmem:[%s9712_s1 + $0x108] sm:$0xff] }
  0x61   :  { %904 = vmatpush.msra.mxu2 %v731_v34  ;;  %947 = vmatpush.msra.mxu3 %v5934_v16  ;;  %v82_v34 = vld [vmem:[%s9712_s1 + $0x140] sm:$0xff] }
  0x62   :  { %808 = vmatpush.msra.mxu0 %v6034_v27  ;;  %839 = vmatpush.msra.mxu1 %v5934_v16  ;;  %v1006_v16 = vand.u32 4294901760, %v6176_v22  ;;  %v1012_v21 = vand.u32 4294901760, %v6189_v61  ;;  %v9755_v2 = vand.u32 4294901760, %v6239_v62 }
  0x63   :  { %908 = vmatpush.msra.mxu2 %v737_v5  ;;  %949 = vmatpush.msra.mxu3 %v5949_v18 }
  0x64   :  { %811 = vmatpush.msra.mxu0 %v6045_v48  ;;  %841 = vmatpush.msra.mxu1 %v5949_v18  ;;  %v83_v18 = vld [vmem:[%s9712_s1 + $0x148] sm:$0xff]  ;;  %v1007_v37 = vsub.f32 %v6176_v22, %v1006_v16  ;;  %v1013_v27 = vsub.f32 %v6189_v61, %v1012_v21  ;;  %v9760_v48 = vand.u32 4294901760, %v6217_v29  ;;  %v1037_v44 = vsub.f32 %v6239_v62, %v9755_v2 }
  0x65   :  { %912 = vmatpush.msra.mxu2 %v743_v4  ;;  %951 = vmatpush.msra.mxu3 %v5962_v55  ;;  %v6233_v5 = vand.u32 4294901760, %v83_v18  ;;  %v6249_v4 = vand.u32 4294901760, %v82_v34 }
  0x66   :  { %814 = vmatmul.f32.vlgmr.msra.gmra.mxu0 %v6078_v11  ;;  %843 = vmatpush.msra.mxu1 %v5962_v55  ;;  %v6222_v55 = vsub.f32 %v85_v36, %v6196_v49  ;;  %v1008_v42 = vand.u32 4294901760, %v1007_v37  ;;  %v6298_v11 = vsub.f32 %v81_v60, %v6263_v46  ;;  %v1038_v24 = vand.u32 4294901760, %v1037_v44  ;;  %v105_v37 = vld [vmem:[%s9712_s1 + $0x1f8] sm:$0xff] }
  0x67   :  { %964 = vmatpush.msrb.mxu0 %v6153_v28  ;;  %916 = vmatpush.msra.mxu2 %v749_v47  ;;  %v6282_v33 = vsub.f32 %v82_v34, %v6249_v4  ;;  %v6358_v34 = vsub.f32 %v77_v54, %v6326_v39  ;;  %v6365_v60 = vand.u32 4294901760, %v75_v63 }
  0x68   :  { %953 = vmatpush.msra.mxu3 %v5991_v3  ;;  %845 = vmatpush.msra.mxu1 %v5991_v3  ;;  %v1018_v3 = vand.u32 4294901760, %v6203_v6  ;;  %v9757_v59 = vand.u32 4294901760, %v6222_v55  ;;  %v9751_v58 = vand.u32 4294901760, %v6298_v11 }
  0x69   :  { %966 = vmatpush.msrb.mxu0 %v6163_v13  ;;  %920 = vmatpush.msra.mxu2 %v755_v1  ;;  %v1014_v1 = vand.u32 4294901760, %v1013_v27  ;;  %v9752_v53 = vand.u32 4294901760, %v6282_v33  ;;  %v74_v27 = vld [vmem:[%s9712_s1 + $0x100] sm:$0xff]  ;;  %v9749_v44 = vand.u32 4294901760, %v6358_v34  ;;  %v6396_v54 = vsub.f32 %v75_v63, %v6365_v60 }
  0x6a   :  { %955 = vmatpush.msra.mxu3 %v6010_v40  ;;  %922 = vmatmul.f32.vlgmr.msra.gmra.mxu2 %v6061_v10  ;;  %v1019_v47 = vsub.f32 %v6203_v6, %v1018_v3  ;;  %v1055_v45 = vsub.f32 %v6298_v11, %v9751_v58  ;;  %v6390_v52 = vand.u32 4294901760, %v74_v27 }
  0x6b   :  { %968 = vmatpush.msrb.mxu0 %v6173_v23  ;;  %1107 = vmatpush.msrb.mxu2 %v6176_v22  ;;  %v1049_v30 = vsub.f32 %v6282_v33, %v9752_v53  ;;  %v97_v22 = vld [vmem:[%s9712_s1 + $0x1b8] sm:$0xff] }
  0x6c   :  { %847 = vmatpush.msra.mxu1 %v6010_v40  ;;  %957 = vmatpush.msra.mxu3 %v6023_v38  ;;  %v6266_v40 = vsub.f32 %v83_v18, %v6233_v5  ;;  %v1020_v9 = vand.u32 4294901760, %v1019_v47  ;;  %v9748_v18 = vand.u32 4294901760, %v6330_v12  ;;  %v9747_v47 = vand.u32 4294901760, %v6342_v57  ;;  %9889 = vst [vmem:[#allocation10_spill] sm:$0xff] %v6390_v52 }
  0x6d   :  { %959 = vmatmul.f32.vlgmr.msra.gmra.mxu3 %v6061_v10  ;;  %970 = vmatpush.msrb.mxu0 %v6186_v15  ;;  %v1025_v10 = vsub.f32 %v6217_v29, %v9760_v48  ;;  %v1050_v17 = vand.u32 4294901760, %v1049_v30  ;;  %v1056_v8 = vand.u32 4294901760, %v1055_v45  ;;  %v102_v30 = vld [vmem:[%s9712_s1 + $0x1e0] sm:$0xff] }
  0x6e   :  { %1110 = vmatpush.msrb.mxu2 %v6189_v61  ;;  %1160 = vmatpush.msrb.mxu3 %v6153_v28  ;;  %v9754_v35 = vand.u32 4294901760, %v6266_v40  ;;  %v1073_v43 = vsub.f32 %v6342_v57, %v9747_v47  ;;  %v96_v61 = vld [vmem:[%s9712_s1 + $0x1b0] sm:$0xff] }
  0x6f   :  { %849 = vmatpush.msra.mxu1 %v6023_v38  ;;  %972 = vmatpush.msrb.mxu0 %v6196_v49  ;;  %v1031_v38 = vsub.f32 %v6222_v55, %v9757_v59  ;;  %v6542_v48 = vand.u32 4294901760, %v96_v61 }
  0x70   :  { %853 = vmatmul.f32.vlgmr.msra.gmra.mxu1 %v656_v14  ;;  %1113 = vmatpush.msrb.mxu2 %v6203_v6  ;;  %v1026_v14 = vand.u32 4294901760, %v1025_v10  ;;  %v1043_v31 = vsub.f32 %v6266_v40, %v9754_v35  ;;  %v6381_v10 = vand.u32 4294901760, %v105_v37 }
  0x71   :  { %1009 = vmatpush.msrb.mxu1 %v1008_v42  ;;  %1162 = vmatpush.msrb.mxu3 %v6163_v13  ;;  %v1032_v26 = vand.u32 4294901760, %v1031_v38  ;;  %v1061_v42 = vsub.f32 %v6313_v0, %v9750_v51  ;;  %v104_v38 = vld [vmem:[%s9712_s1 + $0x1f0] sm:$0xff] }
  0x72   :  { %974 = vmatpush.msrb.mxu0 %v6207_v20  ;;  %1116 = vmatpush.msrb.mxu2 %v6217_v29  ;;  %v1044_v36 = vand.u32 4294901760, %v1043_v31  ;;  %v9753_v31 = vand.u32 4294901760, %v6376_v25 }
  0x73   :  { %1015 = vmatpush.msrb.mxu1 %v1014_v1  ;;  %1164 = vmatpush.msrb.mxu3 %v6173_v23  ;;  %v997_v1 = vand.u32 4294901760, %v6350_v7 }
  0x74   :  { %976 = vmatpush.msrb.mxu0 %v6233_v5  ;;  %1119 = vmatpush.msrb.mxu2 %v6222_v55 }
  0x75   :  { %1021 = vmatpush.msrb.mxu1 %v1020_v9  ;;  %1166 = vmatpush.msrb.mxu3 %v6186_v15  ;;  %v1067_v9 = vsub.f32 %v6330_v12, %v9748_v18  ;;  %v998_v63 = vsub.f32 %v6350_v7, %v997_v1  ;;  %v101_v18 = vld [vmem:[%s9712_s1 + $0x1d8] sm:$0xff] }
  0x76   :  { %978 = vmatpush.msrb.mxu0 %v6249_v4  ;;  %1122 = vmatpush.msrb.mxu2 %v6239_v62  ;;  %v6446_v53 = vand.u32 4294901760, %v101_v18 }
  0x77   :  { %1027 = vmatpush.msrb.mxu1 %v1026_v14  ;;  %1168 = vmatpush.msrb.mxu3 %v6196_v49  ;;  %v103_v14 = vld [vmem:[%s9712_s1 + $0x1e8] sm:$0xff]  ;;  %v1068_v45 = vand.u32 4294901760, %v1067_v9  ;;  %v1074_v9 = vand.u32 4294901760, %v1073_v43  ;;  %v999_v51 = vand.u32 4294901760, %v998_v63 }
  0x78   :  { %980 = vmatpush.msrb.mxu0 %v6263_v46  ;;  %1125 = vmatpush.msrb.mxu2 %v6266_v40  ;;  %v6426_v47 = vand.u32 4294901760, %v103_v14 }
  0x79   :  { %1033 = vmatpush.msrb.mxu1 %v1032_v26  ;;  %1170 = vmatpush.msrb.mxu3 %v6207_v20  ;;  %v1062_v26 = vand.u32 4294901760, %v1061_v42  ;;  %v6424_v42 = vsub.f32 %v74_v27, %v6390_v52  ;;  %v1085_v27 = vsub.f32 %v6376_v25, %v9753_v31 }
  0x7a   :  { %982 = vmatpush.msrb.mxu0 %v6279_v19  ;;  %1128 = vmatpush.msrb.mxu2 %v6282_v33  ;;  %v6454_v31 = vsub.f32 %v103_v14, %v6426_v47 }
  0x7b   :  { %1039 = vmatpush.msrb.mxu1 %v1038_v24  ;;  %1172 = vmatpush.msrb.mxu3 %v6233_v5  ;;  %v6406_v24 = vand.u32 4294901760, %v104_v38  ;;  %v1086_v14 = vand.u32 4294901760, %v1085_v27 }
  0x7c   :  { %984 = vmatpush.msrb.mxu0 %v6294_v41  ;;  %1131 = vmatpush.msrb.mxu2 %v6298_v11  ;;  %v9761_v27 = vand.u32 4294901760, %v6454_v31 }
  0x7d   :  { %1045 = vmatpush.msrb.mxu1 %v1044_v36  ;;  %1174 = vmatpush.msrb.mxu3 %v6249_v4  ;;  %v6417_v36 = vsub.f32 %v105_v37, %v6381_v10  ;;  %v9756_v37 = vand.u32 4294901760, %v6396_v54 }
  0x7e   :  { %986 = vmatpush.msrb.mxu0 %v6309_v50  ;;  %1134 = vmatpush.msrb.mxu2 %v6313_v0 }
  0x7f   :  { %1051 = vmatpush.msrb.mxu1 %v1050_v17  ;;  %1176 = vmatpush.msrb.mxu3 %v6263_v46  ;;  %v1079_v17 = vsub.f32 %v6358_v34, %v9749_v44  ;;  %v6441_v44 = vsub.f32 %v104_v38, %v6406_v24  ;;  %v9758_v58 = vand.u32 4294901760, %v6417_v36  ;;  %v9759_v38 = vand.u32 4294901760, %v6424_v42 }
  0x80   :  { %988 = vmatpush.msrb.mxu0 %v6326_v39  ;;  %1137 = vmatpush.msrb.mxu2 %v6330_v12  ;;  %v1091_v63 = vsub.f32 %v6396_v54, %v9756_v37  ;;  %v6476_v37 = vsub.f32 %v101_v18, %v6446_v53 }
  0x81   :  { %1057 = vmatpush.msrb.mxu1 %v1056_v8  ;;  %1178 = vmatpush.msrb.mxu3 %v6279_v19  ;;  %v6434_v8 = vand.u32 4294901760, %v102_v30  ;;  %v1080_v43 = vand.u32 4294901760, %v1079_v17  ;;  %v9762_v17 = vand.u32 4294901760, %v6441_v44 }
  0x82   :  { %990 = vmatpush.msrb.mxu0 %v6338_v32  ;;  %1140 = vmatpush.msrb.mxu2 %v6342_v57  ;;  %v1092_v18 = vand.u32 4294901760, %v1091_v63 }
  0x83   :  { %1063 = vmatpush.msrb.mxu1 %v1062_v26  ;;  %1180 = vmatpush.msrb.mxu3 %v6294_v41  ;;  %v100_v26 = vld [vmem:[%s9712_s1 + $0x1d0] sm:$0xff]  ;;  %v6462_v35 = vsub.f32 %v102_v30, %v6434_v8  ;;  %v1348_v30 = vsub.f32 %v6417_v36, %v9758_v58 }
  0x84   :  { %992 = vmatpush.msrb.mxu0 %v6365_v60  ;;  %1143 = vmatpush.msrb.mxu2 %v6358_v34  ;;  %v6469_v2 = vand.u32 4294901760, %v100_v26 }
  0x85   :  { %1069 = vmatpush.msrb.mxu1 %v1068_v45  ;;  %1182 = vmatpush.msrb.mxu3 %v6309_v50  ;;  %v99_v45 = vld [vmem:[%s9712_s1 + $0x1c8] sm:$0xff]  ;;  %v9763_v58 = vand.u32 4294901760, %v6462_v35  ;;  %v1349_v63 = vand.u32 4294901760, %v1348_v30  ;;  %v6520_v30 = vand.u32 4294901760, %v97_v22 }
  0x86   :  { %994 = vmatpush.msrb.mxu0 %v6390_v52  ;;  %1146 = vmatpush.msrb.mxu2 %v6376_v25  ;;  %v6487_v59 = vand.u32 4294901760, %v99_v45 }
  0x87   :  { %1075 = vmatpush.msrb.mxu1 %v1074_v9  ;;  %1184 = vmatpush.msrb.mxu3 %v6326_v39  ;;  %v98_v9 = vld [vmem:[%s9712_s1 + $0x1c0] sm:$0xff]  ;;  %v1366_v6 = vsub.f32 %v6462_v35, %v9763_v58 }
  0x88   :  { %1000 = vmatmul.f32.vlgmr.msrb.gmra.mxu0 %v999_v51  ;;  %1149 = vmatpush.msrb.mxu2 %v6396_v54  ;;  %v1097_v51 = vsub.f32 %v6424_v42, %v9759_v38  ;;  %v6503_v38 = vand.u32 4294901760, %v98_v9 }
  0x89   :  { %1201 = vmatpush.msra.mxu0 %v1006_v16  ;;  %1081 = vmatpush.msrb.mxu1 %v1080_v43  ;;  %v1354_v16 = vsub.f32 %v6441_v44, %v9762_v17  ;;  %v6501_v43 = vsub.f32 %v100_v26, %v6469_v2  ;;  %v1360_v26 = vsub.f32 %v6454_v31, %v9761_v27  ;;  %v6532_v27 = vld.sshfl [vmem:[#allocation1 + $0x18] sm:$0xff pattern:$0x73625140] }
  0x8a   :  { %1186 = vmatpush.msrb.mxu3 %v6338_v32  ;;  %1152 = vmatpush.msrb.mxu2 %v6424_v42  ;;  %v6540_v58 = vsub.f32 %v98_v9, %v6503_v38 }
  0x8b   :  { %1205 = vmatpush.msra.mxu0 %v1012_v21  ;;  %1087 = vmatpush.msrb.mxu1 %v1086_v14  ;;  %v1098_v21 = vand.u32 4294901760, %v1097_v51  ;;  %v6518_v14 = vsub.f32 %v99_v45, %v6487_v59  ;;  %v40_v51 = vld [vmem:[%s9711_s0 + $0x10] sm:$0xff]  ;;  %v9890_v45 = vand.u32 4294901760, %v6217_v29  ;;  %v9765_v17 = vand.u32 4294901760, %v6501_v43  ;;  %v94_v29 = vld [vmem:[%s9712_s1 + $0x1a0] sm:$0xff] }
  0x8c   :  { %1188 = vmatpush.msrb.mxu3 %v6365_v60  ;;  %1155 = vmatmul.f32.vlgmr.msrb.gmra.mxu2 %v6350_v7  ;;  %259 = vst [vmem:[#allocation1] ss:$4 sm:$0xff] %v40_v51  ;;  %v1361_v9 = vand.u32 4294901760, %v1360_v26  ;;  %v6555_v51 = vsub.f32 %v97_v22, %v6520_v30  ;;  %v9766_v22 = vand.u32 4294901760, %v6540_v58  ;;  %v6572_v26 = vand.u32 4294901760, %v94_v29 }
  0x8d   :  { %1209 = vmatpush.msra.mxu0 %v1018_v3  ;;  %1305 = vmatpush.msra.mxu2 %v6381_v10  ;;  %v95_v3 = vld [vmem:[%s9712_s1 + $0x1a8] sm:$0xff] }
  0x8e   :  { %1093 = vmatpush.msrb.mxu1 %v1092_v18  ;;  %1190 = vmatpush.msrb.mxu3 %v6390_v52  ;;  %v1355_v18 = vand.u32 4294901760, %v1354_v16  ;;  %v9891_v52 = vand.u32 4294901760, %v6476_v37  ;;  %v9768_v16 = vand.u32 4294901760, %v6518_v14 }
  0x8f   :  { %1194 = vmatmul.f32.vlgmr.msrb.gmra.mxu3 %v997_v1  ;;  %1213 = vmatpush.msra.mxu0 %v9890_v45  ;;  %v9892_v1 = vand.u32 4294901760, %v6222_v55  ;;  %v6557_v45 = vand.u32 4294901760, %v95_v3  ;;  %v1378_v55 = vsub.f32 %v6501_v43, %v9765_v17 }
  0x90   :  { %1307 = vmatpush.msra.mxu2 %v6406_v24  ;;  %1350 = vmatpush.msra.mxu3 %v1349_v63  ;;  %v1372_v7 = vsub.f32 %v6476_v37, %v9891_v52  ;;  %v1367_v52 = vand.u32 4294901760, %v1366_v6  ;;  %v93_v63 = vld [vmem:[%s9712_s1 + $0x198] sm:$0xff]  ;;  %v9893_v6 = vand.u32 4294901760, %v6239_v62  ;;  %v92_v62 = vld [vmem:[%s9712_s1 + $0x190] sm:$0xff] }
  0x91   :  { %1099 = vmatpush.msrb.mxu1 %v1098_v21  ;;  %1217 = vmatpush.msra.mxu0 %v9892_v1  ;;  %v6570_v21 = vsub.f32 %v96_v61, %v6542_v48  ;;  %v6583_v61 = vsub.f32 %v95_v3, %v6557_v45  ;;  %v6585_v17 = vand.u32 4294901760, %v93_v63  ;;  %v1390_v3 = vsub.f32 %v6540_v58, %v9766_v22 }
  0x92   :  { %1101 = vmatmul.f32.vlgmr.msrb.gmra.mxu1 %v6320_v56  ;;  %1309 = vmatpush.msra.mxu2 %v6426_v47  ;;  %v1373_v1 = vand.u32 4294901760, %v1372_v7  ;;  %v9894_v7 = vand.u32 4294901760, %v6266_v40  ;;  %v91_v40 = vld [vmem:[%s9712_s1 + $0x188] sm:$0xff] }
  0x93   :  { %1268 = vmatpush.msra.mxu1 %v6153_v28  ;;  %1356 = vmatpush.msra.mxu3 %v1355_v18  ;;  %v1384_v28 = vsub.f32 %v6518_v14, %v9768_v16  ;;  %v9767_v18 = vand.u32 4294901760, %v6555_v51  ;;  %v6615_v22 = vsub.f32 %v93_v63, %v6585_v17 }
  0x94   :  { %1221 = vmatpush.msra.mxu0 %v9893_v6  ;;  %1311 = vmatpush.msra.mxu2 %v6434_v8  ;;  %v6599_v6 = vsub.f32 %v94_v29, %v6572_v26 }
  0x95   :  { %1270 = vmatpush.msra.mxu1 %v6163_v13  ;;  %1362 = vmatpush.msra.mxu3 %v1361_v9  ;;  %v1379_v13 = vand.u32 4294901760, %v1378_v55  ;;  %v1401_v9 = vand.u32 4294901760, %v6570_v21  ;;  %v1396_v29 = vsub.f32 %v6555_v51, %v9767_v18  ;;  %v1407_v55 = vand.u32 4294901760, %v6583_v61 }
  0x96   :  { %1225 = vmatpush.msra.mxu0 %v9894_v7  ;;  %1313 = vmatpush.msra.mxu2 %v6446_v53  ;;  %v9895_v7 = vand.u32 4294901760, %v6282_v33  ;;  %v90_v33 = vld [vmem:[%s9712_s1 + $0x180] sm:$0xff]  ;;  %v1413_v18 = vand.u32 4294901760, %v6599_v6 }
  0x97   :  { %1272 = vmatpush.msra.mxu1 %v6173_v23  ;;  %1368 = vmatpush.msra.mxu3 %v1367_v52  ;;  %v6607_v23 = vand.u32 4294901760, %v92_v62  ;;  %v1385_v52 = vand.u32 4294901760, %v1384_v28  ;;  %v1391_v28 = vand.u32 4294901760, %v1390_v3  ;;  %v1402_v63 = vsub.f32 %v6570_v21, %v1401_v9 }
  0x98   :  { %1229 = vmatpush.msra.mxu0 %v9895_v7  ;;  %1315 = vmatpush.msra.mxu2 %v6469_v2  ;;  %v9896_v7 = vand.u32 4294901760, %v6298_v11  ;;  %v9897_v11 = vand.u32 4294901760, %v6313_v0  ;;  %v6639_v16 = vand.u32 4294901760, %v90_v33  ;;  %v1419_v3 = vand.u32 4294901760, %v6615_v22 }
  0x99   :  { %1274 = vmatpush.msra.mxu1 %v6186_v15  ;;  %1374 = vmatpush.msra.mxu3 %v1373_v1  ;;  %v6623_v15 = vand.u32 4294901760, %v91_v40  ;;  %v6626_v1 = vand.u32 4294901760, %v6532_v27  ;;  %v9898_v0 = vand.u32 4294901760, %v6330_v12  ;;  %v9899_v12 = vand.u32 4294901760, %v6342_v57 }
  0x9a   :  { %1233 = vmatpush.msra.mxu0 %v9896_v7  ;;  %1317 = vmatpush.msra.mxu2 %v6487_v59  ;;  %v6637_v7 = vsub.f32 %v92_v62, %v6607_v23 }
  0x9b   :  { %1276 = vmatpush.msra.mxu1 %v6196_v49  ;;  %1380 = vmatpush.msra.mxu3 %v1379_v13  ;;  %v1397_v49 = vand.u32 4294901760, %v1396_v29  ;;  %v1408_v13 = vsub.f32 %v6583_v61, %v1407_v55  ;;  %v6650_v62 = vsub.f32 %v91_v40, %v6623_v15  ;;  %v6665_v29 = vsub.f32 %v90_v33, %v6639_v16 }
  0x9c   :  { %1237 = vmatpush.msra.mxu0 %v9897_v11  ;;  %1319 = vmatpush.msra.mxu2 %v6503_v38  ;;  %v6654_v11 = vsub.f32 %v6532_v27, %v6626_v1  ;;  %v1425_v40 = vand.u32 4294901760, %v6637_v7  ;;  %v1420_v27 = vsub.f32 %v6615_v22, %v1419_v3 }
  0x9d   :  { %1278 = vmatpush.msra.mxu1 %v6207_v20  ;;  %1386 = vmatpush.msra.mxu3 %v1385_v52  ;;  %v1403_v20 = vand.u32 4294901760, %v1402_v63  ;;  %v1414_v52 = vsub.f32 %v6599_v6, %v1413_v18  ;;  %v1431_v57 = vand.u32 4294901760, %v6650_v62 }
  0x9e   :  { %1241 = vmatpush.msra.mxu0 %v9898_v0  ;;  %1321 = vmatpush.msra.mxu2 %v6520_v30  ;;  %v1338_v63 = vand.u32 4294901760, %v6654_v11  ;;  %v9902_v0 = vand.u32 4294901760, %v6396_v54 }
  0x9f   :  { %1280 = vmatpush.msra.mxu1 %v6233_v5  ;;  %1392 = vmatpush.msra.mxu3 %v1391_v28  ;;  %v1409_v5 = vand.u32 4294901760, %v1408_v13  ;;  %v9900_v28 = vand.u32 4294901760, %v6358_v34  ;;  %v1415_v33 = vand.u32 4294901760, %v1414_v52  ;;  %v1426_v34 = vsub.f32 %v6637_v7, %v1425_v40 }
  0xa0   :  { %1245 = vmatpush.msra.mxu0 %v9899_v12  ;;  %1323 = vmatpush.msra.mxu2 %v6542_v48  ;;  %v1421_v13 = vand.u32 4294901760, %v1420_v27 }
  0xa1   :  { %1282 = vmatpush.msra.mxu1 %v6249_v4  ;;  %1398 = vmatpush.msra.mxu3 %v1397_v49  ;;  %v9901_v4 = vand.u32 4294901760, %v6376_v25  ;;  %v1437_v49 = vand.u32 4294901760, %v6665_v29  ;;  %v1339_v25 = vsub.f32 %v6654_v11, %v1338_v63  ;;  %v1427_v54 = vand.u32 4294901760, %v1426_v34 }
  0xa2   :  { %1249 = vmatpush.msra.mxu0 %v9900_v28  ;;  %1325 = vmatpush.msra.mxu2 %v6557_v45 }
  0xa3   :  { %1284 = vmatpush.msra.mxu1 %v6263_v46  ;;  %1404 = vmatpush.msra.mxu3 %v1403_v20  ;;  %v1432_v46 = vsub.f32 %v6650_v62, %v1431_v57  ;;  %v1438_v20 = vsub.f32 %v6665_v29, %v1437_v49 }
  0xa4   :  { %1253 = vmatpush.msra.mxu0 %v9901_v4  ;;  %1327 = vmatpush.msra.mxu2 %v6572_v26 }
  0xa5   :  { %1286 = vmatpush.msra.mxu1 %v6279_v19  ;;  %1410 = vmatpush.msra.mxu3 %v1409_v5  ;;  %v9903_v19 = vand.u32 4294901760, %v6424_v42  ;;  %v1433_v52 = vand.u32 4294901760, %v1432_v46  ;;  %v1439_v42 = vand.u32 4294901760, %v1438_v20  ;;  %v112_v5 = vld [vmem:[%s9712_s1 + $0x230] sm:$0xff]  ;;  %v109_v20 = vld [vmem:[%s9712_s1 + $0x218] sm:$0xff] }
  0xa6   :  { %1257 = vmatpush.msra.mxu0 %v9902_v0  ;;  %1329 = vmatpush.msra.mxu2 %v6585_v17  ;;  %v110_v0 = vld [vmem:[%s9712_s1 + $0x220] sm:$0xff] }
  0xa7   :  { %1288 = vmatpush.msra.mxu1 %v6294_v41  ;;  %1416 = vmatpush.msra.mxu3 %v1415_v33  ;;  %v1340_v41 = vand.u32 4294901760, %v1339_v25 }
  0xa8   :  { %1261 = vmatpush.msra.mxu0 %v9903_v19  ;;  %1331 = vmatpush.msra.mxu2 %v6607_v23 }
  0xa9   :  { %1290 = vmatpush.msra.mxu1 %v6309_v50  ;;  %1422 = vmatpush.msra.mxu3 %v1421_v13  ;;  %v9904_v50 = vand.u32 4294901760, %v6417_v36 }
  0xaa   :  { %1263 = vmatmul.f32.vlgmr.msra.gmra.mxu0 %v6320_v56  ;;  %1333 = vmatpush.msra.mxu2 %v6623_v15 }
  0xab   :  { %1448 = vmatpush.msrb.mxu0 %v6417_v36  ;;  %1292 = vmatpush.msra.mxu1 %v6326_v39  ;;  %v9905_v39 = vand.u32 4294901760, %v6441_v44  ;;  %v9907_v36 = vand.u32 4294901760, %v6454_v31 }
  0xac   :  { %1428 = vmatpush.msra.mxu3 %v1427_v54  ;;  %1335 = vmatpush.msra.mxu2 %v6639_v16 }
  0xad   :  { %1451 = vmatpush.msrb.mxu0 %v6441_v44  ;;  %1294 = vmatpush.msra.mxu1 %v6338_v32  ;;  %v9906_v32 = vld [vmem:[#allocation10_spill] sm:$0xff]  ;;  %v9911_v44 = vand.u32 4294901760, %v6518_v14 }
  0xae   :  { %1434 = vmatpush.msra.mxu3 %v1433_v52  ;;  %1341 = vmatmul.f32.vlgmr.msra.gmra.mxu2 %v1340_v41  ;;  %v6925_v41 = vand.u32 4294901760, %v110_v0 }
  0xaf   :  { %1454 = vmatpush.msrb.mxu0 %v6454_v31  ;;  %1542 = vmatpush.msrb.mxu2 %v9904_v50  ;;  %v9913_v31 = vand.u32 4294901760, %v6555_v51 }
  0xb0   :  { %1296 = vmatpush.msra.mxu1 %v6365_v60  ;;  %1440 = vmatpush.msra.mxu3 %v1439_v42  ;;  %v9908_v60 = vand.u32 4294901760, %v6462_v35 }
  0xb1   :  { %1442 = vmatmul.f32.vlgmr.msra.gmra.mxu3 %v6626_v1  ;;  %1457 = vmatpush.msrb.mxu0 %v6462_v35  ;;  %v39_v35 = vld [vmem:[%s9711_s0 + $0x8] sm:$0xff] }
  0xb2   :  { %1546 = vmatpush.msrb.mxu2 %v9905_v39  ;;  %1609 = vmatpush.msrb.mxu3 %v6381_v10  ;;  %250 = vst [vmem:[#allocation1 + $0x20] ss:$4 sm:$0xff] %v39_v35 }
  0xb3   :  { %1298 = vmatpush.msra.mxu1 %v9906_v32  ;;  %1460 = vmatpush.msrb.mxu0 %v6476_v37  ;;  %v108_v32 = vld [vmem:[%s9712_s1 + $0x210] sm:$0xff] }
  0xb4   :  { %1300 = vmatmul.f32.vlgmr.msra.gmra.mxu1 %v6320_v56  ;;  %1550 = vmatpush.msrb.mxu2 %v9907_v36  ;;  %v9909_v56 = vand.u32 4294901760, %v6476_v37  ;;  %v118_v37 = vld [vmem:[%s9712_s1 + $0x260] sm:$0xff] }
  0xb5   :  { %1501 = vmatpush.msrb.mxu1 %v6381_v10  ;;  %1611 = vmatpush.msrb.mxu3 %v6406_v24  ;;  %v9910_v10 = vand.u32 4294901760, %v6501_v43 }
  0xb6   :  { %1463 = vmatpush.msrb.mxu0 %v6501_v43  ;;  %1554 = vmatpush.msrb.mxu2 %v9908_v60  ;;  %v117_v43 = vld [vmem:[%s9712_s1 + $0x258] sm:$0xff] }
  0xb7   :  { %1503 = vmatpush.msrb.mxu1 %v6406_v24  ;;  %1613 = vmatpush.msrb.mxu3 %v6426_v47 }
  0xb8   :  { %1466 = vmatpush.msrb.mxu0 %v6518_v14  ;;  %1558 = vmatpush.msrb.mxu2 %v9909_v56  ;;  %v6942_v56 = vand.u32 4294901760, %v109_v20 }
  0xb9   :  { %1505 = vmatpush.msrb.mxu1 %v6426_v47  ;;  %1615 = vmatpush.msrb.mxu3 %v6434_v8  ;;  %v9912_v47 = vand.u32 4294901760, %v6540_v58 }
  0xba   :  { %1469 = vmatpush.msrb.mxu0 %v6540_v58  ;;  %1562 = vmatpush.msrb.mxu2 %v9910_v10 }
  0xbb   :  { %1507 = vmatpush.msrb.mxu1 %v6434_v8  ;;  %1617 = vmatpush.msrb.mxu3 %v6446_v53 }
  0xbc   :  { %1472 = vmatpush.msrb.mxu0 %v6555_v51  ;;  %1566 = vmatpush.msrb.mxu2 %v9911_v44  ;;  %v6813_v51 = vand.u32 4294901760, %v117_v43 }
  0xbd   :  { %1509 = vmatpush.msrb.mxu1 %v6446_v53  ;;  %1619 = vmatpush.msrb.mxu3 %v6469_v2  ;;  %v121_v53 = vld [vmem:[%s9712_s1 + $0x278] sm:$0xff] }
  0xbe   :  { %1475 = vmatpush.msrb.mxu0 %v6570_v21  ;;  %1570 = vmatpush.msrb.mxu2 %v9912_v47  ;;  %v6769_v58 = vand.u32 4294901760, %v121_v53 }
  0xbf   :  { %1511 = vmatpush.msrb.mxu1 %v6469_v2  ;;  %1621 = vmatpush.msrb.mxu3 %v6487_v59  ;;  %v120_v2 = vld [vmem:[%s9712_s1 + $0x270] sm:$0xff] }
  0xc0   :  { %1478 = vmatpush.msrb.mxu0 %v6583_v61  ;;  %1574 = vmatpush.msrb.mxu2 %v9913_v31  ;;  %v6779_v24 = vand.u32 4294901760, %v120_v2  ;;  %v6954_v31 = vand.u32 4294901760, %v108_v32 }
  0xc1   :  { %1513 = vmatpush.msrb.mxu1 %v6487_v59  ;;  %1623 = vmatpush.msrb.mxu3 %v6503_v38  ;;  %v119_v59 = vld [vmem:[%s9712_s1 + $0x268] sm:$0xff] }
  0xc2   :  { %1481 = vmatpush.msrb.mxu0 %v6599_v6  ;;  %1578 = vmatpush.msrb.mxu2 %v1401_v9  ;;  %v6789_v8 = vand.u32 4294901760, %v119_v59  ;;  %v6805_v14 = vsub.f32 %v120_v2, %v6779_v24  ;;  %v6839_v9 = vsub.f32 %v117_v43, %v6813_v51  ;;  %v114_v6 = vld [vmem:[%s9712_s1 + $0x240] sm:$0xff]  ;;  %v6958_v2 = vsub.f32 %v110_v0, %v6925_v41 }
  0xc3   :  { %1515 = vmatpush.msrb.mxu1 %v6503_v38  ;;  %1625 = vmatpush.msrb.mxu3 %v6520_v30  ;;  %v6792_v38 = vsub.f32 %v121_v53, %v6769_v58  ;;  %v6865_v12 = vand.u32 4294901760, %v114_v6 }
  0xc4   :  { %1484 = vmatpush.msrb.mxu0 %v6615_v22  ;;  %1582 = vmatpush.msrb.mxu2 %v1407_v55  ;;  %v6819_v22 = vsub.f32 %v119_v59, %v6789_v8  ;;  %v107_v59 = vld [vmem:[%s9712_s1 + $0x208] sm:$0xff] }
  0xc5   :  { %1517 = vmatpush.msrb.mxu1 %v6520_v30  ;;  %1627 = vmatpush.msrb.mxu3 %v6542_v48  ;;  %v116_v30 = vld [vmem:[%s9712_s1 + $0x250] sm:$0xff]  ;;  %v6898_v13 = vsub.f32 %v114_v6, %v6865_v12  ;;  %v6974_v6 = vsub.f32 %v109_v20, %v6942_v56 }
  0xc6   :  { %1487 = vmatpush.msrb.mxu0 %v6637_v7  ;;  %1586 = vmatpush.msrb.mxu2 %v1413_v18  ;;  %v6824_v21 = vand.u32 4294901760, %v116_v30  ;;  %v115_v18 = vld [vmem:[%s9712_s1 + $0x248] sm:$0xff]  ;;  %v1700_v7 = vand.u32 4294901760, %v6819_v22 }
  0xc7   :  { %1519 = vmatpush.msrb.mxu1 %v6542_v48  ;;  %1629 = vmatpush.msrb.mxu3 %v6557_v45  ;;  %v6802_v48 = vand.u32 4294901760, %v118_v37  ;;  %v6849_v55 = vand.u32 4294901760, %v115_v18  ;;  %v9774_v42 = vand.u32 4294901760, %v6898_v13 }
  0xc8   :  { %1490 = vmatpush.msrb.mxu0 %v6650_v62  ;;  %1590 = vmatpush.msrb.mxu2 %v1419_v3  ;;  %v6855_v3 = vsub.f32 %v116_v30, %v6824_v21  ;;  %v113_v62 = vld [vmem:[%s9712_s1 + $0x238] sm:$0xff]  ;;  %v1701_v28 = vsub.f32 %v6819_v22, %v1700_v7 }
  0xc9   :  { %1521 = vmatpush.msrb.mxu1 %v6557_v45  ;;  %1631 = vmatpush.msrb.mxu3 %v6572_v26  ;;  %v1688_v45 = vand.u32 4294901760, %v6792_v38  ;;  %v6833_v61 = vsub.f32 %v118_v37, %v6802_v48  ;;  %v1731_v47 = vsub.f32 %v6898_v13, %v9774_v42 }
  0xca   :  { %1493 = vmatpush.msrb.mxu0 %v6665_v29  ;;  %1594 = vmatpush.msrb.mxu2 %v1425_v40  ;;  %v9779_v29 = vand.u32 4294901760, %v6839_v9  ;;  %v9777_v33 = vand.u32 4294901760, %v6855_v3  ;;  %v1702_v46 = vand.u32 4294901760, %v1701_v28  ;;  %v9769_v28 = vand.u32 4294901760, %v6958_v2 }
  0xcb   :  { %1523 = vmatpush.msrb.mxu1 %v6572_v26  ;;  %1633 = vmatpush.msrb.mxu3 %v6585_v17  ;;  %v1694_v26 = vand.u32 4294901760, %v6805_v14  ;;  %v9782_v40 = vand.u32 4294901760, %v6833_v61 }
  0xcc   :  { %1496 = vmatmul.f32.vlgmr.msrb.gmra.mxu0 %v6654_v11  ;;  %1598 = vmatpush.msrb.mxu2 %v1431_v57  ;;  %v6879_v57 = vand.u32 4294901760, %v113_v62  ;;  %v1719_v54 = vsub.f32 %v6855_v3, %v9777_v33 }
  0xcd   :  { %1646 = vmatpush.msra.mxu0 %v6769_v58  ;;  %1525 = vmatpush.msrb.mxu1 %v6585_v17  ;;  %v1689_v17 = vsub.f32 %v6792_v38, %v1688_v45  ;;  %v1707_v34 = vsub.f32 %v6833_v61, %v9782_v40 }
  0xce   :  { %1635 = vmatpush.msrb.mxu3 %v6607_v23  ;;  %1602 = vmatpush.msrb.mxu2 %v1437_v49  ;;  %v6895_v49 = vand.u32 4294901760, %v112_v5  ;;  %v6914_v11 = vsub.f32 %v113_v62, %v6879_v57  ;;  %v1720_v44 = vand.u32 4294901760, %v1719_v54  ;;  %v6981_v62 = vand.u32 4294901760, %v107_v59 }
  0xcf   :  { %1648 = vmatpush.msra.mxu0 %v6779_v24  ;;  %1527 = vmatpush.msrb.mxu1 %v6607_v23  ;;  %v1695_v23 = vsub.f32 %v6805_v14, %v1694_v26  ;;  %v1690_v27 = vand.u32 4294901760, %v1689_v17  ;;  %v1708_v52 = vand.u32 4294901760, %v1707_v34  ;;  %v137_v17 = vld [vmem:[%s9712_s1 + $0x2f8] sm:$0xff]  ;;  %v9771_v54 = vand.u32 4294901760, %v6974_v6 }
  0xd0   :  { %1637 = vmatpush.msrb.mxu3 %v6623_v15  ;;  %1604 = vmatmul.f32.vlgmr.msrb.gmra.mxu2 %v6626_v1  ;;  %v6929_v50 = vsub.f32 %v112_v5, %v6895_v49  ;;  %v9773_v10 = vand.u32 4294901760, %v6914_v11  ;;  %v1732_v5 = vand.u32 4294901760, %v1731_v47  ;;  %v6997_v34 = vand.u32 4294901760, %v137_v17  ;;  %v134_v47 = vld [vmem:[%s9712_s1 + $0x2e0] sm:$0xff] }
  0xd1   :  { %1650 = vmatpush.msra.mxu0 %v6789_v8  ;;  %1789 = vmatpush.msra.mxu2 %v6792_v38  ;;  %v1696_v4 = vand.u32 4294901760, %v1695_v23  ;;  %v106_v23 = vld [vmem:[%s9712_s1 + $0x200] sm:$0xff]  ;;  %v7012_v20 = vsub.f32 %v107_v59, %v6981_v62  ;;  %v129_v38 = vld [vmem:[%s9712_s1 + $0x2b8] sm:$0xff] }
  0xd2   :  { %1529 = vmatpush.msrb.mxu1 %v6623_v15  ;;  %1639 = vmatpush.msrb.mxu3 %v6639_v16  ;;  %v6882_v15 = vsub.f32 %v115_v18, %v6849_v55  ;;  %v9772_v53 = vand.u32 4294901760, %v6929_v50  ;;  %v1737_v30 = vsub.f32 %v6914_v11, %v9773_v10 }
  0xd3   :  { %1641 = vmatmul.f32.vlgmr.msrb.gmra.mxu3 %v6626_v1  ;;  %1652 = vmatpush.msra.mxu0 %v6802_v48  ;;  %v111_v1 = vld [vmem:[%s9712_s1 + $0x228] sm:$0xff] }
  0xd4   :  { %1792 = vmatpush.msra.mxu2 %v6805_v14  ;;  %1842 = vmatpush.msra.mxu3 %v6769_v58  ;;  %v6910_v25 = vand.u32 4294901760, %v111_v1  ;;  %v9776_v19 = vand.u32 4294901760, %v6882_v15  ;;  %v1738_v0 = vand.u32 4294901760, %v1737_v30  ;;  %v128_v14 = vld [vmem:[%s9712_s1 + $0x2b0] sm:$0xff] }
  0xd5   :  { %1531 = vmatpush.msrb.mxu1 %v6639_v16  ;;  %1654 = vmatpush.msra.mxu0 %v6813_v51  ;;  %v1713_v16 = vsub.f32 %v6839_v9, %v9779_v29 }
  0xd6   :  { %1535 = vmatmul.f32.vlgmr.msrb.gmra.mxu1 %v1338_v63  ;;  %1795 = vmatpush.msra.mxu2 %v6819_v22  ;;  %v255_v63 = vld.sshfl [vmem:[#allocation1 + $0x20] sm:$0xff pattern:$0x73625140]  ;;  %v1725_v60 = vsub.f32 %v6882_v15, %v9776_v19  ;;  %v6946_v35 = vsub.f32 %v111_v1, %v6910_v25  ;;  %v6992_v1 = vsub.f32 %v108_v32, %v6954_v31 }
  0xd7   :  { %1691 = vmatpush.msra.mxu1 %v1690_v27  ;;  %1844 = vmatpush.msra.mxu3 %v6779_v24  ;;  %v1714_v39 = vand.u32 4294901760, %v1713_v16  ;;  %v6936_v36 = vand.u32 4294901760, %v255_v63  ;;  %v1743_v27 = vsub.f32 %v6929_v50, %v9772_v53  ;;  %v136_v16 = vld [vmem:[%s9712_s1 + $0x2f0] sm:$0xff]  ;;  %v1755_v32 = vsub.f32 %v6958_v2, %v9769_v28 }
  0xd8   :  { %1656 = vmatpush.msra.mxu0 %v6824_v21  ;;  %1798 = vmatpush.msra.mxu2 %v6833_v61  ;;  %v1726_v43 = vand.u32 4294901760, %v1725_v60  ;;  %v9770_v18 = vand.u32 4294901760, %v6946_v35  ;;  %v9775_v60 = vand.u32 4294901760, %v6992_v1 }
  0xd9   :  { %1697 = vmatpush.msra.mxu1 %v1696_v4  ;;  %1846 = vmatpush.msra.mxu3 %v6789_v8  ;;  %v6966_v37 = vsub.f32 %v255_v63, %v6936_v36  ;;  %v7006_v63 = vand.u32 4294901760, %v106_v23 }
  0xda   :  { %1658 = vmatpush.msra.mxu0 %v6849_v55  ;;  %1801 = vmatpush.msra.mxu2 %v6839_v9 }
  0xdb   :  { %1703 = vmatpush.msra.mxu1 %v1702_v46  ;;  %1848 = vmatpush.msra.mxu3 %v6802_v48  ;;  %v1679_v4 = vand.u32 4294901760, %v6966_v37  ;;  %v1749_v46 = vsub.f32 %v6946_v35, %v9770_v18  ;;  %v133_v18 = vld [vmem:[%s9712_s1 + $0x2d8] sm:$0xff] }
  0xdc   :  { %1660 = vmatpush.msra.mxu0 %v6865_v12  ;;  %1804 = vmatpush.msra.mxu2 %v6855_v3  ;;  %v7062_v42 = vand.u32 4294901760, %v133_v18 }
  0xdd   :  { %1709 = vmatpush.msra.mxu1 %v1708_v52  ;;  %1850 = vmatpush.msra.mxu3 %v6813_v51  ;;  %v135_v52 = vld [vmem:[%s9712_s1 + $0x2e8] sm:$0xff]  ;;  %v1680_v59 = vsub.f32 %v6966_v37, %v1679_v4  ;;  %v1750_v30 = vand.u32 4294901760, %v1749_v46  ;;  %v1756_v46 = vand.u32 4294901760, %v1755_v32 }
  0xde   :  { %1662 = vmatpush.msra.mxu0 %v6879_v57  ;;  %1807 = vmatpush.msra.mxu2 %v6882_v15  ;;  %v7042_v28 = vand.u32 4294901760, %v135_v52 }
  0xdf   :  { %1715 = vmatpush.msra.mxu1 %v1714_v39  ;;  %1852 = vmatpush.msra.mxu3 %v6824_v21  ;;  %v1744_v39 = vand.u32 4294901760, %v1743_v27  ;;  %v7040_v27 = vsub.f32 %v106_v23, %v7006_v63  ;;  %v1767_v23 = vsub.f32 %v6992_v1, %v9775_v60  ;;  %v1681_v53 = vand.u32 4294901760, %v1680_v59 }
  0xe0   :  { %1664 = vmatpush.msra.mxu0 %v6895_v49  ;;  %1810 = vmatpush.msra.mxu2 %v6898_v13  ;;  %v7070_v60 = vsub.f32 %v135_v52, %v7042_v28 }
  0xe1   :  { %1721 = vmatpush.msra.mxu1 %v1720_v44  ;;  %1854 = vmatpush.msra.mxu3 %v6849_v55  ;;  %v7022_v44 = vand.u32 4294901760, %v136_v16  ;;  %v1768_v52 = vand.u32 4294901760, %v1767_v23 }
  0xe2   :  { %1666 = vmatpush.msra.mxu0 %v6910_v25  ;;  %1813 = vmatpush.msra.mxu2 %v6914_v11  ;;  %v9783_v23 = vand.u32 4294901760, %v7070_v60 }
  0xe3   :  { %1727 = vmatpush.msra.mxu1 %v1726_v43  ;;  %1856 = vmatpush.msra.mxu3 %v6865_v12  ;;  %v7033_v43 = vsub.f32 %v137_v17, %v6997_v34  ;;  %v9778_v17 = vand.u32 4294901760, %v7012_v20 }
  0xe4   :  { %1668 = vmatpush.msra.mxu0 %v6925_v41  ;;  %1816 = vmatpush.msra.mxu2 %v6929_v50 }
  0xe5   :  { %1733 = vmatpush.msra.mxu1 %v1732_v5  ;;  %1858 = vmatpush.msra.mxu3 %v6879_v57  ;;  %v1761_v5 = vsub.f32 %v6974_v6, %v9771_v54  ;;  %v7057_v54 = vsub.f32 %v136_v16, %v7022_v44  ;;  %v9780_v10 = vand.u32 4294901760, %v7033_v43  ;;  %v9781_v16 = vand.u32 4294901760, %v7040_v27 }
  0xe6   :  { %1670 = vmatpush.msra.mxu0 %v6942_v56  ;;  %1819 = vmatpush.msra.mxu2 %v6946_v35  ;;  %v1773_v59 = vsub.f32 %v7012_v20, %v9778_v17  ;;  %v7092_v17 = vsub.f32 %v133_v18, %v7062_v42 }
  0xe7   :  { %1739 = vmatpush.msra.mxu1 %v1738_v0  ;;  %1860 = vmatpush.msra.mxu3 %v6895_v49  ;;  %v7050_v0 = vand.u32 4294901760, %v134_v47  ;;  %v1762_v32 = vand.u32 4294901760, %v1761_v5  ;;  %v9784_v5 = vand.u32 4294901760, %v7057_v54 }
  0xe8   :  { %1672 = vmatpush.msra.mxu0 %v6954_v31  ;;  %1822 = vmatpush.msra.mxu2 %v6958_v2  ;;  %v1774_v18 = vand.u32 4294901760, %v1773_v59  ;;  %v9786_v40 = vand.u32 4294901760, %v7092_v17 }
  0xe9   :  { %1745 = vmatpush.msra.mxu1 %v1744_v39  ;;  %1862 = vmatpush.msra.mxu3 %v6910_v25  ;;  %v132_v39 = vld [vmem:[%s9712_s1 + $0x2d0] sm:$0xff]  ;;  %v7078_v19 = vsub.f32 %v134_v47, %v7050_v0  ;;  %v2030_v47 = vsub.f32 %v7033_v43, %v9780_v10 }
  0xea   :  { %1674 = vmatpush.msra.mxu0 %v6981_v62  ;;  %1825 = vmatpush.msra.mxu2 %v6974_v6  ;;  %v7085_v33 = vand.u32 4294901760, %v132_v39 }
  0xeb   :  { %1751 = vmatpush.msra.mxu1 %v1750_v30  ;;  %1864 = vmatpush.msra.mxu3 %v6925_v41  ;;  %v131_v30 = vld [vmem:[%s9712_s1 + $0x2c8] sm:$0xff]  ;;  %v9785_v10 = vand.u32 4294901760, %v7078_v19  ;;  %v2031_v59 = vand.u32 4294901760, %v2030_v47  ;;  %v7136_v47 = vand.u32 4294901760, %v129_v38 }
  0xec   :  { %1676 = vmatpush.msra.mxu0 %v7006_v63  ;;  %1828 = vmatpush.msra.mxu2 %v6992_v1  ;;  %v7103_v29 = vand.u32 4294901760, %v131_v30 }
  0xed   :  { %1757 = vmatpush.msra.mxu1 %v1756_v46  ;;  %1866 = vmatpush.msra.mxu3 %v6942_v56  ;;  %v130_v46 = vld [vmem:[%s9712_s1 + $0x2c0] sm:$0xff]  ;;  %v2048_v22 = vsub.f32 %v7078_v19, %v9785_v10  ;;  %v2054_v10 = vsub.f32 %v7092_v17, %v9786_v40 }
  0xee   :  { %1682 = vmatmul.f32.vlgmr.msra.gmra.mxu0 %v1681_v53  ;;  %1831 = vmatpush.msra.mxu2 %v7012_v20  ;;  %v1779_v53 = vsub.f32 %v7040_v27, %v9781_v16  ;;  %v7119_v16 = vand.u32 4294901760, %v130_v46 }
  0xef   :  { %1883 = vmatpush.msrb.mxu0 %v1688_v45  ;;  %1763 = vmatpush.msra.mxu1 %v1762_v32  ;;  %v2036_v45 = vsub.f32 %v7057_v54, %v9784_v5  ;;  %v7117_v32 = vsub.f32 %v132_v39, %v7085_v33  ;;  %v2042_v39 = vsub.f32 %v7070_v60, %v9783_v23  ;;  %v7153_v5 = vand.u32 4294901760, %v128_v14 }
  0xf0   :  { %1868 = vmatpush.msra.mxu3 %v6954_v31  ;;  %1834 = vmatpush.msra.mxu2 %v7040_v27  ;;  %v2055_v40 = vand.u32 4294901760, %v2054_v10  ;;  %v9917_v10 = vand.u32 4294901760, %v6882_v15  ;;  %v123_v15 = vld [vmem:[%s9712_s1 + $0x288] sm:$0xff] }
  0xf1   :  { %1887 = vmatpush.msrb.mxu0 %v1694_v26  ;;  %1769 = vmatpush.msra.mxu1 %v1768_v52  ;;  %v1780_v26 = vand.u32 4294901760, %v1779_v53  ;;  %v7134_v52 = vsub.f32 %v131_v30, %v7103_v29  ;;  %v9914_v53 = vand.u32 4294901760, %v6833_v61  ;;  %v2037_v30 = vand.u32 4294901760, %v2036_v45  ;;  %v126_v61 = vld [vmem:[%s9712_s1 + $0x2a0] sm:$0xff] }
  0xf2   :  { %1870 = vmatpush.msra.mxu3 %v6981_v62  ;;  %1837 = vmatmul.f32.vlgmr.msra.gmra.mxu2 %v6966_v37  ;;  %v9787_v23 = vand.u32 4294901760, %v7117_v32  ;;  %v9915_v37 = vand.u32 4294901760, %v6839_v9  ;;  %v7166_v45 = vsub.f32 %v129_v38, %v7136_v47 }
  0xf3   :  { %1891 = vmatpush.msrb.mxu0 %v1700_v7  ;;  %1987 = vmatpush.msrb.mxu2 %v6997_v34  ;;  %v127_v7 = vld [vmem:[%s9712_s1 + $0x2a8] sm:$0xff] }
  0xf4   :  { %1775 = vmatpush.msra.mxu1 %v1774_v18  ;;  %1872 = vmatpush.msra.mxu3 %v7006_v63  ;;  %v7151_v18 = vsub.f32 %v130_v46, %v7119_v16  ;;  %v9788_v46 = vand.u32 4294901760, %v7134_v52  ;;  %v2060_v9 = vsub.f32 %v7117_v32, %v9787_v23 }
  0xf5   :  { %1876 = vmatmul.f32.vlgmr.msra.gmra.mxu3 %v1679_v4  ;;  %1895 = vmatpush.msrb.mxu0 %v9914_v53  ;;  %v2043_v4 = vand.u32 4294901760, %v2042_v39  ;;  %v7168_v53 = vand.u32 4294901760, %v127_v7  ;;  %v7181_v39 = vsub.f32 %v128_v14, %v7153_v5 }
  0xf6   :  { %1989 = vmatpush.msrb.mxu2 %v7022_v44  ;;  %2032 = vmatpush.msrb.mxu3 %v2031_v59  ;;  %v2049_v59 = vand.u32 4294901760, %v2048_v22  ;;  %v9789_v38 = vand.u32 4294901760, %v7151_v18  ;;  %v9916_v22 = vand.u32 4294901760, %v6855_v3  ;;  %v124_v3 = vld [vmem:[%s9712_s1 + $0x290] sm:$0xff] }
  0xf7   :  { %1781 = vmatpush.msra.mxu1 %v1780_v26  ;;  %1899 = vmatpush.msrb.mxu0 %v9915_v37  ;;  %v125_v26 = vld [vmem:[%s9712_s1 + $0x298] sm:$0xff]  ;;  %v7183_v37 = vand.u32 4294901760, %v126_v61  ;;  %v7194_v14 = vsub.f32 %v127_v7, %v7168_v53 }
  0xf8   :  { %1783 = vmatmul.f32.vlgmr.msra.gmra.mxu1 %v6936_v36  ;;  %1991 = vmatpush.msrb.mxu2 %v7042_v28  ;;  %v7196_v23 = vand.u32 4294901760, %v125_v26  ;;  %v2072_v7 = vsub.f32 %v7151_v18, %v9789_v38 }
  0xf9   :  { %1950 = vmatpush.msrb.mxu1 %v6769_v58  ;;  %2038 = vmatpush.msrb.mxu3 %v2037_v30  ;;  %v2066_v58 = vsub.f32 %v7134_v52, %v9788_v46  ;;  %v9790_v30 = vand.u32 4294901760, %v7166_v45  ;;  %v9918_v46 = vand.u32 4294901760, %v6898_v13  ;;  %v122_v13 = vld [vmem:[%s9712_s1 + $0x280] sm:$0xff] }
  0xfa   :  { %1903 = vmatpush.msrb.mxu0 %v9916_v22  ;;  %1993 = vmatpush.msrb.mxu2 %v7050_v0  ;;  %v7210_v22 = vsub.f32 %v126_v61, %v7183_v37  ;;  %v7226_v38 = vsub.f32 %v125_v26, %v7196_v23 }
  0xfb   :  { %1952 = vmatpush.msrb.mxu1 %v6779_v24  ;;  %2044 = vmatpush.msrb.mxu3 %v2043_v4  ;;  %v2061_v24 = vand.u32 4294901760, %v2060_v9  ;;  %v9791_v4 = vand.u32 4294901760, %v7181_v39  ;;  %v2078_v61 = vsub.f32 %v7166_v45, %v9790_v30  ;;  %v9920_v9 = vand.u32 4294901760, %v6929_v50 }
  0xfc   :  { %1907 = vmatpush.msrb.mxu0 %v9917_v10  ;;  %1995 = vmatpush.msrb.mxu2 %v7062_v42  ;;  %v256_v10 = vld.sshfl [vmem:[#allocation1 + $0x28] sm:$0xff pattern:$0x73625140]  ;;  %v2095_v30 = vand.u32 4294901760, %v7210_v22  ;;  %v9922_v50 = vand.u32 4294901760, %v6946_v35 }
  0xfd   :  { %1954 = vmatpush.msrb.mxu1 %v6789_v8  ;;  %2050 = vmatpush.msrb.mxu3 %v2049_v59  ;;  %v7218_v8 = vand.u32 4294901760, %v124_v3  ;;  %v2067_v59 = vand.u32 4294901760, %v2066_v58  ;;  %v2073_v58 = vand.u32 4294901760, %v2072_v7  ;;  %v2084_v26 = vsub.f32 %v7181_v39, %v9791_v4 }
  0xfe   :  { %1911 = vmatpush.msrb.mxu0 %v9918_v46  ;;  %1997 = vmatpush.msrb.mxu2 %v7085_v33  ;;  %v9919_v46 = vand.u32 4294901760, %v6914_v11  ;;  %v2101_v4 = vand.u32 4294901760, %v7226_v38 }
  0xff   :  { %1956 = vmatpush.msrb.mxu1 %v6802_v48  ;;  %2056 = vmatpush.msrb.mxu3 %v2055_v40  ;;  %v7234_v48 = vand.u32 4294901760, %v123_v15  ;;  %v7236_v40 = vand.u32 4294901760, %v256_v10  ;;  %v7247_v11 = vsub.f32 %v124_v3, %v7218_v8 }
 0x100   :  { %1915 = vmatpush.msrb.mxu0 %v9919_v46  ;;  %1999 = vmatpush.msrb.mxu2 %v7103_v29  ;;  %v7249_v46 = vand.u32 4294901760, %v122_v13 }
 0x101   :  { %1958 = vmatpush.msrb.mxu1 %v6813_v51  ;;  %2062 = vmatpush.msrb.mxu3 %v2061_v24  ;;  %v2079_v51 = vand.u32 4294901760, %v2078_v61  ;;  %v9921_v24 = vand.u32 4294901760, %v7194_v14  ;;  %v7260_v3 = vsub.f32 %v123_v15, %v7234_v48  ;;  %v9923_v61 = vand.u32 4294901760, %v6958_v2 }
 0x102   :  { %1919 = vmatpush.msrb.mxu0 %v9920_v9  ;;  %2001 = vmatpush.msrb.mxu2 %v7119_v16  ;;  %v7263_v9 = vsub.f32 %v256_v10, %v7236_v40  ;;  %v2107_v35 = vand.u32 4294901760, %v7247_v11  ;;  %v7274_v15 = vsub.f32 %v122_v13, %v7249_v46  ;;  %v2102_v10 = vsub.f32 %v7226_v38, %v2101_v4 }
 0x103   :  { %1960 = vmatpush.msrb.mxu1 %v6824_v21  ;;  %2068 = vmatpush.msrb.mxu3 %v2067_v59  ;;  %v2090_v7 = vsub.f32 %v7194_v14, %v9921_v24  ;;  %v2085_v21 = vand.u32 4294901760, %v2084_v26  ;;  %v2096_v59 = vsub.f32 %v7210_v22, %v2095_v30  ;;  %v2113_v2 = vand.u32 4294901760, %v7260_v3 }
 0x104   :  { %1923 = vmatpush.msrb.mxu0 %v9922_v50  ;;  %2003 = vmatpush.msrb.mxu2 %v7136_v47  ;;  %v2020_v26 = vand.u32 4294901760, %v7263_v9  ;;  %v2103_v24 = vand.u32 4294901760, %v2102_v10 }
 0x105   :  { %1962 = vmatpush.msrb.mxu1 %v6849_v55  ;;  %2074 = vmatpush.msrb.mxu3 %v2073_v58  ;;  %v2091_v55 = vand.u32 4294901760, %v2090_v7  ;;  %v9924_v58 = vand.u32 4294901760, %v6974_v6  ;;  %v2097_v13 = vand.u32 4294901760, %v2096_v59  ;;  %v2108_v6 = vsub.f32 %v7247_v11, %v2107_v35  ;;  %v145_v59 = vld [vmem:[%s9712_s1 + $0x338] sm:$0xff] }
 0x106   :  { %1927 = vmatpush.msrb.mxu0 %v9923_v61  ;;  %2005 = vmatpush.msrb.mxu2 %v7153_v5  ;;  %v9926_v7 = vand.u32 4294901760, %v7012_v20 }
 0x107   :  { %1964 = vmatpush.msrb.mxu1 %v6865_v12  ;;  %2080 = vmatpush.msrb.mxu3 %v2079_v51  ;;  %v9925_v12 = vand.u32 4294901760, %v6992_v1  ;;  %v2119_v51 = vand.u32 4294901760, %v7274_v15  ;;  %v2021_v1 = vsub.f32 %v7263_v9, %v2020_v26  ;;  %v2109_v20 = vand.u32 4294901760, %v2108_v6 }
 0x108   :  { %1931 = vmatpush.msrb.mxu0 %v9924_v58  ;;  %2007 = vmatpush.msrb.mxu2 %v7168_v53 }
 0x109   :  { %1966 = vmatpush.msrb.mxu1 %v6879_v57  ;;  %2086 = vmatpush.msrb.mxu3 %v2085_v21  ;;  %v2114_v57 = vsub.f32 %v7260_v3, %v2113_v2  ;;  %v2120_v50 = vsub.f32 %v7274_v15, %v2119_v51 }
 0x10a   :  { %1935 = vmatpush.msrb.mxu0 %v9925_v12  ;;  %2009 = vmatpush.msrb.mxu2 %v7183_v37 }
 0x10b   :  { %1968 = vmatpush.msrb.mxu1 %v6895_v49  ;;  %2092 = vmatpush.msrb.mxu3 %v2091_v55  ;;  %v9927_v49 = vand.u32 4294901760, %v7040_v27  ;;  %v2115_v21 = vand.u32 4294901760, %v2114_v57  ;;  %v2121_v27 = vand.u32 4294901760, %v2120_v50  ;;  %v144_v55 = vld [vmem:[%s9712_s1 + $0x330] sm:$0xff]  ;;  %v141_v50 = vld [vmem:[%s9712_s1 + $0x318] sm:$0xff] }
 0x10c   :  { %1939 = vmatpush.msrb.mxu0 %v9926_v7  ;;  %2011 = vmatpush.msrb.mxu2 %v7196_v23  ;;  %v142_v7 = vld [vmem:[%s9712_s1 + $0x320] sm:$0xff] }
 0x10d   :  { %1970 = vmatpush.msrb.mxu1 %v6910_v25  ;;  %2098 = vmatpush.msrb.mxu3 %v2097_v13  ;;  %v2022_v25 = vand.u32 4294901760, %v2021_v1 }
 0x10e   :  { %1943 = vmatpush.msrb.mxu0 %v9927_v49  ;;  %2013 = vmatpush.msrb.mxu2 %v7218_v8 }
 0x10f   :  { %1972 = vmatpush.msrb.mxu1 %v6925_v41  ;;  %2104 = vmatpush.msrb.mxu3 %v2103_v24  ;;  %v9928_v41 = vand.u32 4294901760, %v7033_v43 }
 0x110   :  { %1945 = vmatmul.f32.vlgmr.msrb.gmra.mxu0 %v6936_v36  ;;  %2015 = vmatpush.msrb.mxu2 %v7234_v48 }
 0x111   :  { %2130 = vmatpush.msra.mxu0 %v7033_v43  ;;  %1974 = vmatpush.msrb.mxu1 %v6942_v56  ;;  %v9929_v56 = vand.u32 4294901760, %v7057_v54 }
 0x112   :  { %2110 = vmatpush.msrb.mxu3 %v2109_v20  ;;  %2017 = vmatpush.msrb.mxu2 %v7249_v46 }
 0x113   :  { %2133 = vmatpush.msra.mxu0 %v7057_v54  ;;  %1976 = vmatpush.msrb.mxu1 %v6954_v31  ;;  %v9930_v31 = vand.u32 4294901760, %v7070_v60  ;;  %v9937_v54 = vand.u32 4294901760, %v7181_v39 }
 0x114   :  { %2116 = vmatpush.msrb.mxu3 %v2115_v21  ;;  %2023 = vmatmul.f32.vlgmr.msrb.gmra.mxu2 %v2022_v25  ;;  %v7531_v25 = vand.u32 4294901760, %v142_v7 }
 0x115   :  { %2136 = vmatpush.msra.mxu0 %v7070_v60  ;;  %2224 = vmatpush.msra.mxu2 %v9928_v41 }
 0x116   :  { %1978 = vmatpush.msrb.mxu1 %v6981_v62  ;;  %2122 = vmatpush.msrb.mxu3 %v2121_v27  ;;  %v9931_v62 = vand.u32 4294901760, %v7078_v19 }
 0x117   :  { %2124 = vmatmul.f32.vlgmr.msrb.gmra.mxu3 %v7236_v40  ;;  %2139 = vmatpush.msra.mxu0 %v7078_v19  ;;  %v9934_v19 = vand.u32 4294901760, %v7134_v52 }
 0x118   :  { %2228 = vmatpush.msra.mxu2 %v9929_v56  ;;  %2291 = vmatpush.msra.mxu3 %v6997_v34 }
 0x119   :  { %1980 = vmatpush.msrb.mxu1 %v7006_v63  ;;  %2142 = vmatpush.msra.mxu0 %v7092_v17  ;;  %v9936_v63 = vand.u32 4294901760, %v7166_v45 }
 0x11a   :  { %1982 = vmatmul.f32.vlgmr.msrb.gmra.mxu1 %v6936_v36  ;;  %2232 = vmatpush.msra.mxu2 %v9930_v31  ;;  %v9932_v36 = vand.u32 4294901760, %v7092_v17  ;;  %v150_v17 = vld [vmem:[%s9712_s1 + $0x360] sm:$0xff]  ;;  %v140_v31 = vld [vmem:[%s9712_s1 + $0x310] sm:$0xff] }
 0x11b   :  { %2183 = vmatpush.msra.mxu1 %v6997_v34  ;;  %2293 = vmatpush.msra.mxu3 %v7022_v44  ;;  %v9933_v34 = vand.u32 4294901760, %v7117_v32 }
 0x11c   :  { %2145 = vmatpush.msra.mxu0 %v7117_v32  ;;  %2236 = vmatpush.msra.mxu2 %v9931_v62  ;;  %v149_v32 = vld [vmem:[%s9712_s1 + $0x358] sm:$0xff] }
 0x11d   :  { %2185 = vmatpush.msra.mxu1 %v7022_v44  ;;  %2295 = vmatpush.msra.mxu3 %v7042_v28  ;;  %v151_v44 = vld [vmem:[%s9712_s1 + $0x368] sm:$0xff] }
 0x11e   :  { %2148 = vmatpush.msra.mxu0 %v7134_v52  ;;  %2240 = vmatpush.msra.mxu2 %v9932_v36 }
 0x11f   :  { %2187 = vmatpush.msra.mxu1 %v7042_v28  ;;  %2297 = vmatpush.msra.mxu3 %v7050_v0  ;;  %v9935_v28 = vand.u32 4294901760, %v7151_v18 }
 0x120   :  { %2151 = vmatpush.msra.mxu0 %v7151_v18  ;;  %2244 = vmatpush.msra.mxu2 %v9933_v34  ;;  %v7419_v18 = vand.u32 4294901760, %v149_v32  ;;  %v7548_v34 = vand.u32 4294901760, %v141_v50 }
 0x121   :  { %2189 = vmatpush.msra.mxu1 %v7050_v0  ;;  %2299 = vmatpush.msra.mxu3 %v7062_v42  ;;  %v7395_v0 = vand.u32 4294901760, %v151_v44 }
 0x122   :  { %2154 = vmatpush.msra.mxu0 %v7166_v45  ;;  %2248 = vmatpush.msra.mxu2 %v9934_v19 }
 0x123   :  { %2191 = vmatpush.msra.mxu1 %v7062_v42  ;;  %2301 = vmatpush.msra.mxu3 %v7085_v33  ;;  %v153_v42 = vld [vmem:[%s9712_s1 + $0x378] sm:$0xff] }
 0x124   :  { %2157 = vmatpush.msra.mxu0 %v7181_v39  ;;  %2252 = vmatpush.msra.mxu2 %v9935_v28  ;;  %v7375_v60 = vand.u32 4294901760, %v153_v42  ;;  %v147_v39 = vld [vmem:[%s9712_s1 + $0x348] sm:$0xff] }
 0x125   :  { %2193 = vmatpush.msra.mxu1 %v7085_v33  ;;  %2303 = vmatpush.msra.mxu3 %v7103_v29  ;;  %v152_v33 = vld [vmem:[%s9712_s1 + $0x370] sm:$0xff] }
 0x126   :  { %2160 = vmatpush.msra.mxu0 %v7194_v14  ;;  %2256 = vmatpush.msra.mxu2 %v9936_v63  ;;  %v7385_v43 = vand.u32 4294901760, %v152_v33 }
 0x127   :  { %2195 = vmatpush.msra.mxu1 %v7103_v29  ;;  %2305 = vmatpush.msra.mxu3 %v7119_v16  ;;  %v9938_v29 = vand.u32 4294901760, %v7194_v14  ;;  %v7445_v14 = vsub.f32 %v149_v32, %v7419_v18 }
 0x128   :  { %2163 = vmatpush.msra.mxu0 %v7210_v22  ;;  %2260 = vmatpush.msra.mxu2 %v9937_v54  ;;  %v7411_v52 = vsub.f32 %v152_v33, %v7385_v43  ;;  %v7455_v22 = vand.u32 4294901760, %v147_v39  ;;  %v7560_v54 = vand.u32 4294901760, %v140_v31 }
 0x129   :  { %2197 = vmatpush.msra.mxu1 %v7119_v16  ;;  %2307 = vmatpush.msra.mxu3 %v7136_v47  ;;  %v7398_v16 = vsub.f32 %v153_v42, %v7375_v60 }
 0x12a   :  { %2166 = vmatpush.msra.mxu0 %v7226_v38  ;;  %2264 = vmatpush.msra.mxu2 %v9938_v29  ;;  %v7564_v29 = vsub.f32 %v142_v7, %v7531_v25 }
 0x12b   :  { %2199 = vmatpush.msra.mxu1 %v7136_v47  ;;  %2309 = vmatpush.msra.mxu3 %v7153_v5  ;;  %v148_v47 = vld [vmem:[%s9712_s1 + $0x350] sm:$0xff]  ;;  %v2370_v45 = vand.u32 4294901760, %v7398_v16 }
 0x12c   :  { %2169 = vmatpush.msra.mxu0 %v7247_v11  ;;  %2268 = vmatpush.msra.mxu2 %v2095_v30  ;;  %v7430_v38 = vand.u32 4294901760, %v148_v47 }
 0x12d   :  { %2201 = vmatpush.msra.mxu1 %v7153_v5  ;;  %2311 = vmatpush.msra.mxu3 %v7168_v53  ;;  %v7408_v5 = vand.u32 4294901760, %v150_v17 }
 0x12e   :  { %2172 = vmatpush.msra.mxu0 %v7260_v3  ;;  %2272 = vmatpush.msra.mxu2 %v2101_v4  ;;  %v146_v4 = vld [vmem:[%s9712_s1 + $0x340] sm:$0xff]  ;;  %v7461_v3 = vsub.f32 %v148_v47, %v7430_v38 }
 0x12f   :  { %2203 = vmatpush.msra.mxu1 %v7168_v53  ;;  %2313 = vmatpush.msra.mxu3 %v7183_v37  ;;  %v7425_v53 = vsub.f32 %v151_v44, %v7395_v0  ;;  %v7439_v30 = vsub.f32 %v150_v17, %v7408_v5  ;;  %v7471_v61 = vand.u32 4294901760, %v146_v4  ;;  %v139_v44 = vld [vmem:[%s9712_s1 + $0x308] sm:$0xff] }
 0x130   :  { %2175 = vmatpush.msra.mxu0 %v7274_v15  ;;  %2276 = vmatpush.msra.mxu2 %v2107_v35  ;;  %v9802_v15 = vand.u32 4294901760, %v7445_v14  ;;  %v9800_v13 = vand.u32 4294901760, %v7461_v3 }
 0x131   :  { %2205 = vmatpush.msra.mxu1 %v7183_v37  ;;  %2315 = vmatpush.msra.mxu3 %v7196_v23  ;;  %v2376_v37 = vand.u32 4294901760, %v7411_v52  ;;  %v2382_v11 = vand.u32 4294901760, %v7425_v53  ;;  %v9805_v35 = vand.u32 4294901760, %v7439_v30  ;;  %v7504_v24 = vsub.f32 %v146_v4, %v7471_v61 }
 0x132   :  { %2178 = vmatmul.f32.vlgmr.msra.gmra.mxu0 %v7263_v9  ;;  %2280 = vmatpush.msra.mxu2 %v2113_v2  ;;  %v7485_v2 = vand.u32 4294901760, %v145_v59  ;;  %v2401_v20 = vsub.f32 %v7461_v3, %v9800_v13  ;;  %v7580_v4 = vsub.f32 %v141_v50, %v7548_v34 }
 0x133   :  { %2328 = vmatpush.msrb.mxu0 %v7375_v60  ;;  %2207 = vmatpush.msra.mxu1 %v7196_v23  ;;  %v2371_v23 = vsub.f32 %v7398_v16, %v2370_v45  ;;  %v2383_v58 = vsub.f32 %v7425_v53, %v2382_v11  ;;  %v2389_v6 = vsub.f32 %v7439_v30, %v9805_v35  ;;  %v9797_v27 = vand.u32 4294901760, %v7504_v24 }
 0x134   :  { %2317 = vmatpush.msra.mxu3 %v7218_v8  ;;  %2284 = vmatpush.msra.mxu2 %v2119_v51  ;;  %v7501_v51 = vand.u32 4294901760, %v144_v55  ;;  %v7520_v9 = vsub.f32 %v145_v59, %v7485_v2  ;;  %v2402_v63 = vand.u32 4294901760, %v2401_v20  ;;  %v7587_v59 = vand.u32 4294901760, %v139_v44 }
 0x135   :  { %2330 = vmatpush.msrb.mxu0 %v7385_v43  ;;  %2209 = vmatpush.msra.mxu1 %v7218_v8  ;;  %v2377_v8 = vsub.f32 %v7411_v52, %v2376_v37  ;;  %v2372_v10 = vand.u32 4294901760, %v2371_v23  ;;  %v2384_v57 = vand.u32 4294901760, %v2383_v58  ;;  %v2390_v21 = vand.u32 4294901760, %v2389_v6  ;;  %v169_v23 = vld [vmem:[%s9712_s1 + $0x3f8] sm:$0xff] }
 0x136   :  { %2319 = vmatpush.msra.mxu3 %v7234_v48  ;;  %2286 = vmatmul.f32.vlgmr.msra.gmra.mxu2 %v7236_v40  ;;  %v7535_v41 = vsub.f32 %v144_v55, %v7501_v51  ;;  %v9796_v19 = vand.u32 4294901760, %v7520_v9  ;;  %v2413_v42 = vsub.f32 %v7504_v24, %v9797_v27  ;;  %v9792_v58 = vand.u32 4294901760, %v7564_v29 }
 0x137   :  { %2332 = vmatpush.msrb.mxu0 %v7395_v0  ;;  %2471 = vmatpush.msrb.mxu2 %v7398_v16  ;;  %v2378_v12 = vand.u32 4294901760, %v2377_v8  ;;  %v138_v8 = vld [vmem:[%s9712_s1 + $0x300] sm:$0xff]  ;;  %v7603_v6 = vand.u32 4294901760, %v169_v23  ;;  %v9794_v20 = vand.u32 4294901760, %v7580_v4  ;;  %v7618_v50 = vsub.f32 %v139_v44, %v7587_v59  ;;  %v161_v16 = vld [vmem:[%s9712_s1 + $0x3b8] sm:$0xff] }
 0x138   :  { %2211 = vmatpush.msra.mxu1 %v7234_v48  ;;  %2321 = vmatpush.msra.mxu3 %v7249_v46  ;;  %v7488_v48 = vsub.f32 %v147_v39, %v7455_v22  ;;  %v9795_v33 = vand.u32 4294901760, %v7535_v41  ;;  %v2419_v47 = vsub.f32 %v7520_v9, %v9796_v19  ;;  %v2414_v55 = vand.u32 4294901760, %v2413_v42  ;;  %v166_v42 = vld [vmem:[%s9712_s1 + $0x3e0] sm:$0xff] }
 0x139   :  { %2323 = vmatmul.f32.vlgmr.msra.gmra.mxu3 %v7236_v40  ;;  %2334 = vmatpush.msrb.mxu0 %v7408_v5  ;;  %v143_v40 = vld [vmem:[%s9712_s1 + $0x328] sm:$0xff] }
 0x13a   :  { %2474 = vmatpush.msrb.mxu2 %v7411_v52  ;;  %2524 = vmatpush.msrb.mxu3 %v7375_v60  ;;  %v7516_v1 = vand.u32 4294901760, %v143_v40  ;;  %v9799_v49 = vand.u32 4294901760, %v7488_v48  ;;  %v2420_v7 = vand.u32 4294901760, %v2419_v47  ;;  %v160_v52 = vld [vmem:[%s9712_s1 + $0x3b0] sm:$0xff] }
 0x13b   :  { %2213 = vmatpush.msra.mxu1 %v7249_v46  ;;  %2336 = vmatpush.msrb.mxu0 %v7419_v18  ;;  %v2395_v46 = vsub.f32 %v7445_v14, %v9802_v15  ;;  %v7764_v35 = vand.u32 4294901760, %v160_v52 }
 0x13c   :  { %2217 = vmatmul.f32.vlgmr.msra.gmra.mxu1 %v2020_v26  ;;  %2477 = vmatpush.msrb.mxu2 %v7425_v53  ;;  %v257_v26 = vld.sshfl [vmem:[#allocation1 + $0x30] sm:$0xff pattern:$0x73625140]  ;;  %v2407_v36 = vsub.f32 %v7488_v48, %v9799_v49  ;;  %v7552_v28 = vsub.f32 %v143_v40, %v7516_v1  ;;  %v7598_v40 = vsub.f32 %v140_v31, %v7560_v54 }
 0x13d   :  { %2373 = vmatpush.msrb.mxu1 %v2372_v10  ;;  %2526 = vmatpush.msrb.mxu3 %v7385_v43  ;;  %v2396_v56 = vand.u32 4294901760, %v2395_v46  ;;  %v7542_v62 = vand.u32 4294901760, %v257_v26  ;;  %v2425_v10 = vsub.f32 %v7535_v41, %v9795_v33  ;;  %v168_v46 = vld [vmem:[%s9712_s1 + $0x3f0] sm:$0xff]  ;;  %v2437_v31 = vsub.f32 %v7564_v29, %v9792_v58 }
 0x13e   :  { %2338 = vmatpush.msrb.mxu0 %v7430_v38  ;;  %2480 = vmatpush.msrb.mxu2 %v7439_v30  ;;  %v2408_v32 = vand.u32 4294901760, %v2407_v36  ;;  %v9793_v39 = vand.u32 4294901760, %v7552_v28  ;;  %v9798_v36 = vand.u32 4294901760, %v7598_v40 }
 0x13f   :  { %2379 = vmatpush.msrb.mxu1 %v2378_v12  ;;  %2528 = vmatpush.msrb.mxu3 %v7395_v0  ;;  %v7572_v17 = vsub.f32 %v257_v26, %v7542_v62  ;;  %v7612_v26 = vand.u32 4294901760, %v138_v8 }
 0x140   :  { %2340 = vmatpush.msrb.mxu0 %v7455_v22  ;;  %2483 = vmatpush.msrb.mxu2 %v7445_v14 }
 0x141   :  { %2385 = vmatpush.msrb.mxu1 %v2384_v57  ;;  %2530 = vmatpush.msrb.mxu3 %v7408_v5  ;;  %v2361_v12 = vand.u32 4294901760, %v7572_v17  ;;  %v2431_v57 = vsub.f32 %v7552_v28, %v9793_v39  ;;  %9939 = vst [vmem:[#allocation10_spill] sm:$0xff] %v7612_v26  ;;  %v165_v39 = vld [vmem:[%s9712_s1 + $0x3d8] sm:$0xff] }
 0x142   :  { %2342 = vmatpush.msrb.mxu0 %v7471_v61  ;;  %2486 = vmatpush.msrb.mxu2 %v7461_v3  ;;  %v7668_v27 = vand.u32 4294901760, %v165_v39 }
 0x143   :  { %2391 = vmatpush.msrb.mxu1 %v2390_v21  ;;  %2532 = vmatpush.msrb.mxu3 %v7419_v18  ;;  %v167_v21 = vld [vmem:[%s9712_s1 + $0x3e8] sm:$0xff]  ;;  %v2362_v44 = vsub.f32 %v7572_v17, %v2361_v12  ;;  %v2432_v47 = vand.u32 4294901760, %v2431_v57  ;;  %v2438_v57 = vand.u32 4294901760, %v2437_v31 }
 0x144   :  { %2344 = vmatpush.msrb.mxu0 %v7485_v2  ;;  %2489 = vmatpush.msrb.mxu2 %v7488_v48  ;;  %v7648_v58 = vand.u32 4294901760, %v167_v21 }
 0x145   :  { %2397 = vmatpush.msrb.mxu1 %v2396_v56  ;;  %2534 = vmatpush.msrb.mxu3 %v7430_v38  ;;  %v2426_v56 = vand.u32 4294901760, %v2425_v10  ;;  %v7646_v10 = vsub.f32 %v138_v8, %v7612_v26  ;;  %v2449_v8 = vsub.f32 %v7598_v40, %v9798_v36  ;;  %v2363_v33 = vand.u32 4294901760, %v2362_v44 }
 0x146   :  { %2346 = vmatpush.msrb.mxu0 %v7501_v51  ;;  %2492 = vmatpush.msrb.mxu2 %v7504_v24  ;;  %v7676_v36 = vsub.f32 %v167_v21, %v7648_v58 }
 0x147   :  { %2403 = vmatpush.msrb.mxu1 %v2402_v63  ;;  %2536 = vmatpush.msrb.mxu3 %v7455_v22  ;;  %v7628_v63 = vand.u32 4294901760, %v168_v46  ;;  %v2450_v21 = vand.u32 4294901760, %v2449_v8 }
 0x148   :  { %2348 = vmatpush.msrb.mxu0 %v7516_v1  ;;  %2495 = vmatpush.msrb.mxu2 %v7520_v9  ;;  %v9806_v8 = vand.u32 4294901760, %v7676_v36 }
 0x149   :  { %2409 = vmatpush.msrb.mxu1 %v2408_v32  ;;  %2538 = vmatpush.msrb.mxu3 %v7471_v61  ;;  %v7639_v32 = vsub.f32 %v169_v23, %v7603_v6  ;;  %v9801_v23 = vand.u32 4294901760, %v7618_v50 }
 0x14a   :  { %2350 = vmatpush.msrb.mxu0 %v7531_v25  ;;  %2498 = vmatpush.msrb.mxu2 %v7535_v41 }
 0x14b   :  { %2415 = vmatpush.msrb.mxu1 %v2414_v55  ;;  %2540 = vmatpush.msrb.mxu3 %v7485_v2  ;;  %v2443_v55 = vsub.f32 %v7580_v4, %v9794_v20  ;;  %v7663_v20 = vsub.f32 %v168_v46, %v7628_v63  ;;  %v9803_v19 = vand.u32 4294901760, %v7639_v32  ;;  %v9804_v46 = vand.u32 4294901760, %v7646_v10 }
 0x14c   :  { %2352 = vmatpush.msrb.mxu0 %v7548_v34  ;;  %2501 = vmatpush.msrb.mxu2 %v7552_v28  ;;  %v2455_v44 = vsub.f32 %v7618_v50, %v9801_v23  ;;  %v7698_v23 = vsub.f32 %v165_v39, %v7668_v27 }
 0x14d   :  { %2421 = vmatpush.msrb.mxu1 %v2420_v7  ;;  %2542 = vmatpush.msrb.mxu3 %v7501_v51  ;;  %v7656_v7 = vand.u32 4294901760, %v166_v42  ;;  %v2444_v31 = vand.u32 4294901760, %v2443_v55  ;;  %v9807_v55 = vand.u32 4294901760, %v7663_v20 }
 0x14e   :  { %2354 = vmatpush.msrb.mxu0 %v7560_v54  ;;  %2504 = vmatpush.msrb.mxu2 %v7564_v29  ;;  %v2456_v39 = vand.u32 4294901760, %v2455_v44 }
 0x14f   :  { %2427 = vmatpush.msrb.mxu1 %v2426_v56  ;;  %2544 = vmatpush.msrb.mxu3 %v7516_v1  ;;  %v164_v56 = vld [vmem:[%s9712_s1 + $0x3d0] sm:$0xff]  ;;  %v7684_v49 = vsub.f32 %v166_v42, %v7656_v7  ;;  %v2712_v42 = vsub.f32 %v7639_v32, %v9803_v19 }
 0x150   :  { %2356 = vmatpush.msrb.mxu0 %v7587_v59  ;;  %2507 = vmatpush.msrb.mxu2 %v7580_v4  ;;  %v7691_v13 = vand.u32 4294901760, %v164_v56 }
 0x151   :  { %2433 = vmatpush.msrb.mxu1 %v2432_v47  ;;  %2546 = vmatpush.msrb.mxu3 %v7531_v25  ;;  %v163_v47 = vld [vmem:[%s9712_s1 + $0x3c8] sm:$0xff]  ;;  %v9808_v19 = vand.u32 4294901760, %v7684_v49  ;;  %v2713_v44 = vand.u32 4294901760, %v2712_v42  ;;  %v7742_v42 = vand.u32 4294901760, %v161_v16 }
 0x152   :  { %2358 = vmatpush.msrb.mxu0 %v7612_v26  ;;  %2510 = vmatpush.msrb.mxu2 %v7598_v40  ;;  %v7709_v15 = vand.u32 4294901760, %v163_v47 }
 0x153   :  { %2439 = vmatpush.msrb.mxu1 %v2438_v57  ;;  %2548 = vmatpush.msrb.mxu3 %v7548_v34  ;;  %v162_v57 = vld [vmem:[%s9712_s1 + $0x3c0] sm:$0xff]  ;;  %v2730_v53 = vsub.f32 %v7684_v49, %v9808_v19 }
 0x154   :  { %2364 = vmatmul.f32.vlgmr.msrb.gmra.mxu0 %v2363_v33  ;;  %2513 = vmatpush.msrb.mxu2 %v7618_v50  ;;  %v2461_v33 = vsub.f32 %v7646_v10, %v9804_v46  ;;  %v7725_v46 = vand.u32 4294901760, %v162_v57 }
 0x155   :  { %2565 = vmatpush.msra.mxu0 %v2370_v45  ;;  %2445 = vmatpush.msrb.mxu1 %v2444_v31  ;;  %v2718_v45 = vsub.f32 %v7663_v20, %v9807_v55  ;;  %v7723_v31 = vsub.f32 %v164_v56, %v7691_v13  ;;  %v2724_v56 = vsub.f32 %v7676_v36, %v9806_v8  ;;  %v7754_v8 = vld.sshfl [vmem:[#allocation1 + $0x38] sm:$0xff pattern:$0x73625140] }
 0x156   :  { %2550 = vmatpush.msrb.mxu3 %v7560_v54  ;;  %2516 = vmatpush.msrb.mxu2 %v7646_v10  ;;  %v7762_v19 = vsub.f32 %v162_v57, %v7725_v46 }
 0x157   :  { %2569 = vmatpush.msra.mxu0 %v2376_v37  ;;  %2451 = vmatpush.msrb.mxu1 %v2450_v21  ;;  %v2462_v37 = vand.u32 4294901760, %v2461_v33  ;;  %v7740_v21 = vsub.f32 %v163_v47, %v7709_v15  ;;  %v41_v33 = vld [vmem:[%s9711_s0 + $0x18] sm:$0x3]  ;;  %v9940_v47 = vand.u32 4294901760, %v7439_v30  ;;  %v9810_v55 = vand.u32 4294901760, %v7723_v31  ;;  %v158_v30 = vld [vmem:[%s9712_s1 + $0x3a0] sm:$0xff] }
 0x158   :  { %2552 = vmatpush.msrb.mxu3 %v7587_v59  ;;  %2519 = vmatmul.f32.vlgmr.msrb.gmra.mxu2 %v7572_v17  ;;  %260 = vst [vmem:[#allocation1 + $0x20] ss:$4 sm:$0xff] %v41_v33  ;;  %v2725_v57 = vand.u32 4294901760, %v2724_v56  ;;  %v7777_v33 = vsub.f32 %v161_v16, %v7742_v42  ;;  %v9811_v16 = vand.u32 4294901760, %v7762_v19  ;;  %v7794_v56 = vand.u32 4294901760, %v158_v30  ;;  %s5516_s0 = smov [#allocation3]  }
 0x159   :  { %2573 = vmatpush.msra.mxu0 %v2382_v11  ;;  %2669 = vmatpush.msra.mxu2 %v7603_v6  ;;  %v159_v11 = vld [vmem:[%s9712_s1 + $0x3a8] sm:$0xff]  ;;  %s5391_s24 = sshll.u32 %s5516_s0, 4  ;;  %s5392_s24 = int_to_ptr.vmem [resolvable:$true] %s5391_s24 }
 0x15a   :  { %2457 = vmatpush.msrb.mxu1 %v2456_v39  ;;  %2554 = vmatpush.msrb.mxu3 %v7612_v26  ;;  %v2719_v39 = vand.u32 4294901760, %v2718_v45  ;;  %v9941_v26 = vand.u32 4294901760, %v7698_v23  ;;  %v9813_v45 = vand.u32 4294901760, %v7740_v21 }
 0x15b   :  { %2558 = vmatmul.f32.vlgmr.msrb.gmra.mxu3 %v2361_v12  ;;  %2577 = vmatpush.msra.mxu0 %v9940_v47  ;;  %v9942_v12 = vand.u32 4294901760, %v7445_v14  ;;  %v7779_v47 = vand.u32 4294901760, %v159_v11  ;;  %v2742_v14 = vsub.f32 %v7723_v31, %v9810_v55 }
 0x15c   :  { %2671 = vmatpush.msra.mxu2 %v7628_v63  ;;  %2714 = vmatpush.msra.mxu3 %v2713_v44  ;;  %v2736_v17 = vsub.f32 %v7698_v23, %v9941_v26  ;;  %v2731_v26 = vand.u32 4294901760, %v2730_v53  ;;  %v157_v44 = vld [vmem:[%s9712_s1 + $0x398] sm:$0xff]  ;;  %v9943_v53 = vand.u32 4294901760, %v7461_v3  ;;  %v156_v3 = vld [vmem:[%s9712_s1 + $0x390] sm:$0xff] }
 0x15d   :  { %2463 = vmatpush.msrb.mxu1 %v2462_v37  ;;  %2581 = vmatpush.msra.mxu0 %v9942_v12  ;;  %v7792_v37 = vsub.f32 %v160_v52, %v7764_v35  ;;  %v7805_v52 = vsub.f32 %v159_v11, %v7779_v47  ;;  %v7807_v55 = vand.u32 4294901760, %v157_v44  ;;  %v2754_v11 = vsub.f32 %v7762_v19, %v9811_v16 }
 0x15e   :  { %2465 = vmatmul.f32.vlgmr.msrb.gmra.mxu1 %v7542_v62  ;;  %2673 = vmatpush.msra.mxu2 %v7648_v58  ;;  %v2737_v12 = vand.u32 4294901760, %v2736_v17  ;;  %v9944_v17 = vand.u32 4294901760, %v7488_v48  ;;  %v155_v48 = vld [vmem:[%s9712_s1 + $0x388] sm:$0xff] }
 0x15f   :  { %2632 = vmatpush.msra.mxu1 %v7375_v60  ;;  %2720 = vmatpush.msra.mxu3 %v2719_v39  ;;  %v2748_v60 = vsub.f32 %v7740_v21, %v9813_v45  ;;  %v9812_v39 = vand.u32 4294901760, %v7777_v33  ;;  %v7837_v16 = vsub.f32 %v157_v44, %v7807_v55 }
 0x160   :  { %2585 = vmatpush.msra.mxu0 %v9943_v53  ;;  %2675 = vmatpush.msra.mxu2 %v7656_v7  ;;  %v7821_v53 = vsub.f32 %v158_v30, %v7794_v56 }
 0x161   :  { %2634 = vmatpush.msra.mxu1 %v7385_v43  ;;  %2726 = vmatpush.msra.mxu3 %v2725_v57  ;;  %v2743_v43 = vand.u32 4294901760, %v2742_v14  ;;  %v2765_v57 = vand.u32 4294901760, %v7792_v37  ;;  %v2760_v30 = vsub.f32 %v7777_v33, %v9812_v39  ;;  %v2771_v14 = vand.u32 4294901760, %v7805_v52 }
 0x162   :  { %2589 = vmatpush.msra.mxu0 %v9944_v17  ;;  %2677 = vmatpush.msra.mxu2 %v7668_v27  ;;  %v9945_v17 = vand.u32 4294901760, %v7504_v24  ;;  %v154_v24 = vld [vmem:[%s9712_s1 + $0x380] sm:$0xff]  ;;  %v2777_v39 = vand.u32 4294901760, %v7821_v53 }
 0x163   :  { %2636 = vmatpush.msra.mxu1 %v7395_v0  ;;  %2732 = vmatpush.msra.mxu3 %v2731_v26  ;;  %v7829_v0 = vand.u32 4294901760, %v156_v3  ;;  %v2749_v26 = vand.u32 4294901760, %v2748_v60  ;;  %v2755_v60 = vand.u32 4294901760, %v2754_v11  ;;  %v2766_v44 = vsub.f32 %v7792_v37, %v2765_v57 }
 0x164   :  { %2593 = vmatpush.msra.mxu0 %v9945_v17  ;;  %2679 = vmatpush.msra.mxu2 %v7691_v13  ;;  %v9946_v17 = vand.u32 4294901760, %v7520_v9  ;;  %v9947_v9 = vand.u32 4294901760, %v7535_v41  ;;  %v7861_v45 = vand.u32 4294901760, %v154_v24  ;;  %v2783_v11 = vand.u32 4294901760, %v7837_v16 }
 0x165   :  { %2638 = vmatpush.msra.mxu1 %v7408_v5  ;;  %2738 = vmatpush.msra.mxu3 %v2737_v12  ;;  %v7845_v5 = vand.u32 4294901760, %v155_v48  ;;  %v7848_v12 = vand.u32 4294901760, %v7754_v8  ;;  %v9948_v41 = vand.u32 4294901760, %v7552_v28  ;;  %v9949_v28 = vand.u32 4294901760, %v7564_v29 }
 0x166   :  { %2597 = vmatpush.msra.mxu0 %v9946_v17  ;;  %2681 = vmatpush.msra.mxu2 %v7709_v15  ;;  %v7859_v17 = vsub.f32 %v156_v3, %v7829_v0 }
 0x167   :  { %2640 = vmatpush.msra.mxu1 %v7419_v18  ;;  %2744 = vmatpush.msra.mxu3 %v2743_v43  ;;  %v2761_v18 = vand.u32 4294901760, %v2760_v30  ;;  %v2772_v43 = vsub.f32 %v7805_v52, %v2771_v14  ;;  %v7872_v3 = vsub.f32 %v155_v48, %v7845_v5  ;;  %v7887_v30 = vsub.f32 %v154_v24, %v7861_v45 }
 0x168   :  { %2601 = vmatpush.msra.mxu0 %v9947_v9  ;;  %2683 = vmatpush.msra.mxu2 %v7725_v46  ;;  %v7876_v9 = vsub.f32 %v7754_v8, %v7848_v12  ;;  %v2789_v48 = vand.u32 4294901760, %v7859_v17  ;;  %v2784_v8 = vsub.f32 %v7837_v16, %v2783_v11 }
 0x169   :  { %2642 = vmatpush.msra.mxu1 %v7430_v38  ;;  %2750 = vmatpush.msra.mxu3 %v2749_v26  ;;  %v2767_v38 = vand.u32 4294901760, %v2766_v44  ;;  %v2778_v26 = vsub.f32 %v7821_v53, %v2777_v39  ;;  %v2795_v29 = vand.u32 4294901760, %v7872_v3 }
 0x16a   :  { %2605 = vmatpush.msra.mxu0 %v9948_v41  ;;  %2685 = vmatpush.msra.mxu2 %v7742_v42  ;;  %v2702_v44 = vand.u32 4294901760, %v7876_v9  ;;  %v9952_v41 = vand.u32 4294901760, %v7618_v50 }
 0x16b   :  { %2644 = vmatpush.msra.mxu1 %v7455_v22  ;;  %2756 = vmatpush.msra.mxu3 %v2755_v60  ;;  %v2773_v22 = vand.u32 4294901760, %v2772_v43  ;;  %v9950_v60 = vand.u32 4294901760, %v7580_v4  ;;  %v2779_v24 = vand.u32 4294901760, %v2778_v26  ;;  %v2790_v4 = vsub.f32 %v7859_v17, %v2789_v48 }
 0x16c   :  { %2609 = vmatpush.msra.mxu0 %v9949_v28  ;;  %2687 = vmatpush.msra.mxu2 %v7764_v35  ;;  %v2785_v43 = vand.u32 4294901760, %v2784_v8 }
 0x16d   :  { %2646 = vmatpush.msra.mxu1 %v7471_v61  ;;  %2762 = vmatpush.msra.mxu3 %v2761_v18  ;;  %v9951_v61 = vand.u32 4294901760, %v7598_v40  ;;  %v2801_v18 = vand.u32 4294901760, %v7887_v30  ;;  %v2703_v40 = vsub.f32 %v7876_v9, %v2702_v44  ;;  %v2791_v50 = vand.u32 4294901760, %v2790_v4 }
 0x16e   :  { %2613 = vmatpush.msra.mxu0 %v9950_v60  ;;  %2689 = vmatpush.msra.mxu2 %v7779_v47 }
 0x16f   :  { %2648 = vmatpush.msra.mxu1 %v7485_v2  ;;  %2768 = vmatpush.msra.mxu3 %v2767_v38  ;;  %v2796_v2 = vsub.f32 %v7872_v3, %v2795_v29  ;;  %v2802_v38 = vsub.f32 %v7887_v30, %v2801_v18 }
 0x170   :  { %2617 = vmatpush.msra.mxu0 %v9951_v61  ;;  %2691 = vmatpush.msra.mxu2 %v7794_v56 }
 0x171   :  { %2650 = vmatpush.msra.mxu1 %v7501_v51  ;;  %2774 = vmatpush.msra.mxu3 %v2773_v22  ;;  %v9953_v51 = vand.u32 4294901760, %v7646_v10  ;;  %v2797_v26 = vand.u32 4294901760, %v2796_v2  ;;  %v2803_v10 = vand.u32 4294901760, %v2802_v38 }
 0x172   :  { %2621 = vmatpush.msra.mxu0 %v9952_v41  ;;  %2693 = vmatpush.msra.mxu2 %v7807_v55 }
 0x173   :  { %2652 = vmatpush.msra.mxu1 %v7516_v1  ;;  %2780 = vmatpush.msra.mxu3 %v2779_v24  ;;  %v2704_v1 = vand.u32 4294901760, %v2703_v40 }
 0x174   :  { %2625 = vmatpush.msra.mxu0 %v9953_v51  ;;  %2695 = vmatpush.msra.mxu2 %v7829_v0 }
 0x175   :  { %2654 = vmatpush.msra.mxu1 %v7531_v25  ;;  %2786 = vmatpush.msra.mxu3 %v2785_v43  ;;  %v9954_v25 = vand.u32 4294901760, %v7639_v32  ;;  %v174_v43 = vld [vmem:[%s9712_s1 + $0x420] sm:$0xff] }
 0x176   :  { %2627 = vmatmul.f32.vlgmr.msra.gmra.mxu0 %v7542_v62  ;;  %2697 = vmatpush.msra.mxu2 %v7845_v5 }
 0x177   :  { %2812 = vmatpush.msrb.mxu0 %v7639_v32  ;;  %2656 = vmatpush.msra.mxu1 %v7548_v34  ;;  %v9955_v34 = vand.u32 4294901760, %v7663_v20  ;;  %v9957_v32 = vand.u32 4294901760, %v7676_v36 }
 0x178   :  { %2792 = vmatpush.msra.mxu3 %v2791_v50  ;;  %2699 = vmatpush.msra.mxu2 %v7861_v45  ;;  %v173_v50 = vld [vmem:[%s9712_s1 + $0x418] sm:$0xff] }
 0x179   :  { %2815 = vmatpush.msrb.mxu0 %v7663_v20  ;;  %2658 = vmatpush.msra.mxu1 %v7560_v54  ;;  %v9956_v54 = vld [vmem:[#allocation10_spill] sm:$0xff]  ;;  %v9963_v20 = vand.u32 4294901760, %v7777_v33 }
 0x17a   :  { %2798 = vmatpush.msra.mxu3 %v2797_v26  ;;  %2705 = vmatmul.f32.vlgmr.msra.gmra.mxu2 %v2704_v1  ;;  %v8144_v26 = vand.u32 4294901760, %v174_v43 }
 0x17b   :  { %2818 = vmatpush.msrb.mxu0 %v7676_v36  ;;  %2906 = vmatpush.msrb.mxu2 %v9954_v25 }
 0x17c   :  { %2660 = vmatpush.msra.mxu1 %v7587_v59  ;;  %2804 = vmatpush.msra.mxu3 %v2803_v10  ;;  %v9958_v59 = vand.u32 4294901760, %v7684_v49 }
 0x17d   :  { %2806 = vmatmul.f32.vlgmr.msra.gmra.mxu3 %v7848_v12  ;;  %2821 = vmatpush.msrb.mxu0 %v7684_v49  ;;  %v9961_v49 = vand.u32 4294901760, %v7740_v21 }
 0x17e   :  { %2910 = vmatpush.msrb.mxu2 %v9955_v34  ;;  %2973 = vmatpush.msrb.mxu3 %v7603_v6  ;;  %v172_v34 = vld [vmem:[%s9712_s1 + $0x410] sm:$0xff] }
 0x17f   :  { %2662 = vmatpush.msra.mxu1 %v9956_v54  ;;  %2824 = vmatpush.msrb.mxu0 %v7698_v23 }
 0x180   :  { %2664 = vmatmul.f32.vlgmr.msra.gmra.mxu1 %v7542_v62  ;;  %2914 = vmatpush.msrb.mxu2 %v9957_v32  ;;  %v9959_v62 = vand.u32 4294901760, %v7698_v23 }
 0x181   :  { %2865 = vmatpush.msrb.mxu1 %v7603_v6  ;;  %2975 = vmatpush.msrb.mxu3 %v7628_v63  ;;  %v9960_v6 = vand.u32 4294901760, %v7723_v31 }
 0x182   :  { %2827 = vmatpush.msrb.mxu0 %v7723_v31  ;;  %2918 = vmatpush.msrb.mxu2 %v9958_v59  ;;  %v8161_v59 = vand.u32 4294901760, %v173_v50 }
 0x183   :  { %2867 = vmatpush.msrb.mxu1 %v7628_v63  ;;  %2977 = vmatpush.msrb.mxu3 %v7648_v58  ;;  %v182_v63 = vld [vmem:[%s9712_s1 + $0x460] sm:$0xff] }
 0x184   :  { %2830 = vmatpush.msrb.mxu0 %v7740_v21  ;;  %2922 = vmatpush.msrb.mxu2 %v9959_v62  ;;  %v180_v21 = vld [vmem:[%s9712_s1 + $0x450] sm:$0xff] }
 0x185   :  { %2869 = vmatpush.msrb.mxu1 %v7648_v58  ;;  %2979 = vmatpush.msrb.mxu3 %v7656_v7  ;;  %v9962_v58 = vand.u32 4294901760, %v7762_v19 }
 0x186   :  { %2833 = vmatpush.msrb.mxu0 %v7762_v19  ;;  %2926 = vmatpush.msrb.mxu2 %v9960_v6 }
 0x187   :  { %2871 = vmatpush.msrb.mxu1 %v7656_v7  ;;  %2981 = vmatpush.msrb.mxu3 %v7668_v27 }
 0x188   :  { %2836 = vmatpush.msrb.mxu0 %v7777_v33  ;;  %2930 = vmatpush.msrb.mxu2 %v9961_v49 }
 0x189   :  { %2873 = vmatpush.msrb.mxu1 %v7668_v27  ;;  %2983 = vmatpush.msrb.mxu3 %v7691_v13  ;;  %v185_v27 = vld [vmem:[%s9712_s1 + $0x478] sm:$0xff] }
 0x18a   :  { %2839 = vmatpush.msrb.mxu0 %v7792_v37  ;;  %2934 = vmatpush.msrb.mxu2 %v9962_v58  ;;  %v7988_v19 = vand.u32 4294901760, %v185_v27  ;;  %v179_v37 = vld [vmem:[%s9712_s1 + $0x448] sm:$0xff] }
 0x18b   :  { %2875 = vmatpush.msrb.mxu1 %v7691_v13  ;;  %2985 = vmatpush.msrb.mxu3 %v7709_v15  ;;  %v184_v13 = vld [vmem:[%s9712_s1 + $0x470] sm:$0xff] }
 0x18c   :  { %2842 = vmatpush.msrb.mxu0 %v7805_v52  ;;  %2938 = vmatpush.msrb.mxu2 %v9963_v20  ;;  %v7998_v36 = vand.u32 4294901760, %v184_v13  ;;  %v8011_v7 = vsub.f32 %v185_v27, %v7988_v19  ;;  %v8173_v20 = vand.u32 4294901760, %v172_v34 }
 0x18d   :  { %2877 = vmatpush.msrb.mxu1 %v7709_v15  ;;  %2987 = vmatpush.msrb.mxu3 %v7725_v46  ;;  %v183_v15 = vld [vmem:[%s9712_s1 + $0x468] sm:$0xff] }
 0x18e   :  { %2845 = vmatpush.msrb.mxu0 %v7821_v53  ;;  %2942 = vmatpush.msrb.mxu2 %v2765_v57  ;;  %v8008_v23 = vand.u32 4294901760, %v183_v15  ;;  %v8024_v31 = vsub.f32 %v184_v13, %v7998_v36  ;;  %v3052_v33 = vand.u32 4294901760, %v8011_v7  ;;  %v178_v57 = vld [vmem:[%s9712_s1 + $0x440] sm:$0xff]  ;;  %v8068_v53 = vand.u32 4294901760, %v179_v37 }
 0x18f   :  { %2879 = vmatpush.msrb.mxu1 %v7725_v46  ;;  %2989 = vmatpush.msrb.mxu3 %v7742_v42  ;;  %v181_v46 = vld [vmem:[%s9712_s1 + $0x458] sm:$0xff]  ;;  %v8177_v13 = vsub.f32 %v174_v43, %v8144_v26 }
 0x190   :  { %2848 = vmatpush.msrb.mxu0 %v7837_v16  ;;  %2946 = vmatpush.msrb.mxu2 %v2771_v14  ;;  %v8043_v16 = vand.u32 4294901760, %v180_v21 }
 0x191   :  { %2881 = vmatpush.msrb.mxu1 %v7742_v42  ;;  %2991 = vmatpush.msrb.mxu3 %v7764_v35  ;;  %v8032_v42 = vand.u32 4294901760, %v181_v46 }
 0x192   :  { %2851 = vmatpush.msrb.mxu0 %v7859_v17  ;;  %2950 = vmatpush.msrb.mxu2 %v2777_v39  ;;  %v8074_v17 = vsub.f32 %v180_v21, %v8043_v16 }
 0x193   :  { %2883 = vmatpush.msrb.mxu1 %v7764_v35  ;;  %2993 = vmatpush.msrb.mxu3 %v7779_v47  ;;  %v8021_v35 = vand.u32 4294901760, %v182_v63  ;;  %v8058_v52 = vsub.f32 %v181_v46, %v8032_v42 }
 0x194   :  { %2854 = vmatpush.msrb.mxu0 %v7872_v3  ;;  %2954 = vmatpush.msrb.mxu2 %v2783_v11  ;;  %v177_v11 = vld [vmem:[%s9712_s1 + $0x438] sm:$0xff]  ;;  %v8084_v3 = vand.u32 4294901760, %v178_v57 }
 0x195   :  { %2885 = vmatpush.msrb.mxu1 %v7779_v47  ;;  %2995 = vmatpush.msrb.mxu3 %v7794_v56  ;;  %v8038_v47 = vsub.f32 %v183_v15, %v8008_v23  ;;  %v8052_v39 = vsub.f32 %v182_v63, %v8021_v35  ;;  %v8098_v60 = vand.u32 4294901760, %v177_v11  ;;  %v171_v15 = vld [vmem:[%s9712_s1 + $0x408] sm:$0xff] }
 0x196   :  { %2857 = vmatpush.msrb.mxu0 %v7887_v30  ;;  %2958 = vmatpush.msrb.mxu2 %v2789_v48  ;;  %v9824_v48 = vand.u32 4294901760, %v8058_v52  ;;  %v176_v30 = vld [vmem:[%s9712_s1 + $0x430] sm:$0xff] }
 0x197   :  { %2887 = vmatpush.msrb.mxu1 %v7794_v56  ;;  %2997 = vmatpush.msrb.mxu3 %v7807_v55  ;;  %v3058_v56 = vand.u32 4294901760, %v8024_v31  ;;  %v3064_v14 = vand.u32 4294901760, %v8038_v47  ;;  %v9827_v28 = vand.u32 4294901760, %v8052_v39  ;;  %v8114_v4 = vand.u32 4294901760, %v176_v30 }
 0x198   :  { %2860 = vmatmul.f32.vlgmr.msrb.gmra.mxu0 %v7876_v9  ;;  %2962 = vmatpush.msrb.mxu2 %v2795_v29  ;;  %v9822_v29 = vand.u32 4294901760, %v8074_v17  ;;  %v8133_v9 = vsub.f32 %v177_v11, %v8098_v60  ;;  %v8200_v11 = vand.u32 4294901760, %v171_v15 }
 0x199   :  { %3010 = vmatpush.msra.mxu0 %v7988_v19  ;;  %2889 = vmatpush.msrb.mxu1 %v7807_v55  ;;  %v3053_v55 = vsub.f32 %v8011_v7, %v3052_v33  ;;  %v3065_v8 = vsub.f32 %v8038_v47, %v3064_v14  ;;  %v3071_v61 = vsub.f32 %v8052_v39, %v9827_v28 }
 0x19a   :  { %2999 = vmatpush.msrb.mxu3 %v7829_v0  ;;  %2966 = vmatpush.msrb.mxu2 %v2801_v18  ;;  %v8117_v18 = vsub.f32 %v178_v57, %v8084_v3  ;;  %v3083_v51 = vsub.f32 %v8074_v17, %v9822_v29  ;;  %v8148_v10 = vsub.f32 %v176_v30, %v8114_v4  ;;  %v9818_v62 = vand.u32 4294901760, %v8133_v9 }
 0x19b   :  { %3012 = vmatpush.msra.mxu0 %v7998_v36  ;;  %2891 = vmatpush.msrb.mxu1 %v7829_v0  ;;  %v3059_v0 = vsub.f32 %v8024_v31, %v3058_v56  ;;  %v3054_v22 = vand.u32 4294901760, %v3053_v55  ;;  %v3066_v41 = vand.u32 4294901760, %v3065_v8  ;;  %v3072_v38 = vand.u32 4294901760, %v3071_v61  ;;  %v201_v55 = vld [vmem:[%s9712_s1 + $0x4f8] sm:$0xff] }
 0x19c   :  { %3001 = vmatpush.msrb.mxu3 %v7845_v5  ;;  %2968 = vmatmul.f32.vlgmr.msrb.gmra.mxu2 %v7848_v12  ;;  %v9819_v1 = vand.u32 4294901760, %v8117_v18  ;;  %v3084_v49 = vand.u32 4294901760, %v3083_v51  ;;  %v9817_v27 = vand.u32 4294901760, %v8148_v10  ;;  %v3101_v21 = vsub.f32 %v8133_v9, %v9818_v62 }
 0x19d   :  { %3014 = vmatpush.msra.mxu0 %v8008_v23  ;;  %3153 = vmatpush.msra.mxu2 %v8011_v7  ;;  %v3060_v24 = vand.u32 4294901760, %v3059_v0  ;;  %v8193_v57 = vsub.f32 %v173_v50, %v8161_v59  ;;  %v170_v0 = vld [vmem:[%s9712_s1 + $0x400] sm:$0xff]  ;;  %v9814_v8 = vand.u32 4294901760, %v8177_v13  ;;  %v8216_v61 = vand.u32 4294901760, %v201_v55  ;;  %v193_v7 = vld [vmem:[%s9712_s1 + $0x4b8] sm:$0xff] }
 0x19e   :  { %2893 = vmatpush.msrb.mxu1 %v7845_v5  ;;  %3003 = vmatpush.msrb.mxu3 %v7861_v45  ;;  %v8101_v5 = vsub.f32 %v179_v37, %v8068_v53  ;;  %v3095_v58 = vsub.f32 %v8117_v18, %v9819_v1  ;;  %v3102_v43 = vand.u32 4294901760, %v3101_v21  ;;  %v8231_v50 = vsub.f32 %v171_v15, %v8200_v11 }
 0x19f   :  { %3005 = vmatmul.f32.vlgmr.msrb.gmra.mxu3 %v7848_v12  ;;  %3016 = vmatpush.msra.mxu0 %v8021_v35  ;;  %v175_v12 = vld [vmem:[%s9712_s1 + $0x428] sm:$0xff]  ;;  %v9816_v51 = vand.u32 4294901760, %v8193_v57 }
 0x1a0   :  { %3156 = vmatpush.msra.mxu2 %v8024_v31  ;;  %3206 = vmatpush.msra.mxu3 %v7988_v19  ;;  %v8129_v2 = vand.u32 4294901760, %v175_v12  ;;  %v9821_v40 = vand.u32 4294901760, %v8101_v5  ;;  %v3096_v30 = vand.u32 4294901760, %v3095_v58  ;;  %v198_v58 = vld [vmem:[%s9712_s1 + $0x4e0] sm:$0xff]  ;;  %v192_v31 = vld [vmem:[%s9712_s1 + $0x4b0] sm:$0xff] }
 0x1a1   :  { %2895 = vmatpush.msrb.mxu1 %v7861_v45  ;;  %3018 = vmatpush.msra.mxu0 %v8032_v42  ;;  %v3077_v45 = vsub.f32 %v8058_v52, %v9824_v48 }
 0x1a2   :  { %2899 = vmatmul.f32.vlgmr.msrb.gmra.mxu1 %v2702_v44  ;;  %3159 = vmatpush.msra.mxu2 %v8038_v47  ;;  %v261_v44 = vld.sshfl [vmem:[#allocation1] sm:$0xff pattern:$0x73625140]  ;;  %v3089_v32 = vsub.f32 %v8101_v5, %v9821_v40  ;;  %v8165_v6 = vsub.f32 %v175_v12, %v8129_v2  ;;  %v8211_v12 = vsub.f32 %v172_v34, %v8173_v20 }
 0x1a3   :  { %3055 = vmatpush.msra.mxu1 %v3054_v22  ;;  %3208 = vmatpush.msra.mxu3 %v7998_v36  ;;  %v3078_v25 = vand.u32 4294901760, %v3077_v45  ;;  %v8155_v54 = vand.u32 4294901760, %v261_v44  ;;  %v3107_v22 = vsub.f32 %v8148_v10, %v9817_v27  ;;  %v200_v45 = vld [vmem:[%s9712_s1 + $0x4f0] sm:$0xff]  ;;  %v3119_v34 = vsub.f32 %v8177_v13, %v9814_v8 }
 0x1a4   :  { %3020 = vmatpush.msra.mxu0 %v8043_v16  ;;  %3162 = vmatpush.msra.mxu2 %v8052_v39  ;;  %v3090_v46 = vand.u32 4294901760, %v3089_v32  ;;  %v9815_v37 = vand.u32 4294901760, %v8165_v6  ;;  %v9820_v32 = vand.u32 4294901760, %v8211_v12 }
 0x1a5   :  { %3061 = vmatpush.msra.mxu1 %v3060_v24  ;;  %3210 = vmatpush.msra.mxu3 %v8008_v23  ;;  %v8185_v63 = vsub.f32 %v261_v44, %v8155_v54  ;;  %v8225_v44 = vand.u32 4294901760, %v170_v0 }
 0x1a6   :  { %3022 = vmatpush.msra.mxu0 %v8068_v53  ;;  %3165 = vmatpush.msra.mxu2 %v8058_v52 }
 0x1a7   :  { %3067 = vmatpush.msra.mxu1 %v3066_v41  ;;  %3212 = vmatpush.msra.mxu3 %v8021_v35  ;;  %v3043_v24 = vand.u32 4294901760, %v8185_v63  ;;  %v3113_v41 = vsub.f32 %v8165_v6, %v9815_v37  ;;  %v197_v37 = vld [vmem:[%s9712_s1 + $0x4d8] sm:$0xff] }
 0x1a8   :  { %3024 = vmatpush.msra.mxu0 %v8084_v3  ;;  %3168 = vmatpush.msra.mxu2 %v8074_v17  ;;  %v8281_v1 = vand.u32 4294901760, %v197_v37 }
 0x1a9   :  { %3073 = vmatpush.msra.mxu1 %v3072_v38  ;;  %3214 = vmatpush.msra.mxu3 %v8032_v42  ;;  %v199_v38 = vld [vmem:[%s9712_s1 + $0x4e8] sm:$0xff]  ;;  %v3044_v15 = vsub.f32 %v8185_v63, %v3043_v24  ;;  %v3114_v21 = vand.u32 4294901760, %v3113_v41  ;;  %v3120_v41 = vand.u32 4294901760, %v3119_v34 }
 0x1aa   :  { %3026 = vmatpush.msra.mxu0 %v8098_v60  ;;  %3171 = vmatpush.msra.mxu2 %v8101_v5  ;;  %v8261_v8 = vand.u32 4294901760, %v199_v38 }
 0x1ab   :  { %3079 = vmatpush.msra.mxu1 %v3078_v25  ;;  %3216 = vmatpush.msra.mxu3 %v8043_v16  ;;  %v3108_v25 = vand.u32 4294901760, %v3107_v22  ;;  %v8259_v22 = vsub.f32 %v170_v0, %v8225_v44  ;;  %v3131_v0 = vsub.f32 %v8211_v12, %v9820_v32  ;;  %v3045_v27 = vand.u32 4294901760, %v3044_v15 }
 0x1ac   :  { %3028 = vmatpush.msra.mxu0 %v8114_v4  ;;  %3174 = vmatpush.msra.mxu2 %v8117_v18  ;;  %v8289_v32 = vsub.f32 %v199_v38, %v8261_v8 }
 0x1ad   :  { %3085 = vmatpush.msra.mxu1 %v3084_v49  ;;  %3218 = vmatpush.msra.mxu3 %v8068_v53  ;;  %v8241_v49 = vand.u32 4294901760, %v200_v45  ;;  %v3132_v38 = vand.u32 4294901760, %v3131_v0 }
 0x1ae   :  { %3030 = vmatpush.msra.mxu0 %v8129_v2  ;;  %3177 = vmatpush.msra.mxu2 %v8133_v9  ;;  %v9828_v0 = vand.u32 4294901760, %v8289_v32 }
 0x1af   :  { %3091 = vmatpush.msra.mxu1 %v3090_v46  ;;  %3220 = vmatpush.msra.mxu3 %v8084_v3  ;;  %v8252_v46 = vsub.f32 %v201_v55, %v8216_v61  ;;  %v9823_v55 = vand.u32 4294901760, %v8231_v50 }
 0x1b0   :  { %3032 = vmatpush.msra.mxu0 %v8144_v26  ;;  %3180 = vmatpush.msra.mxu2 %v8148_v10 }
 0x1b1   :  { %3097 = vmatpush.msra.mxu1 %v3096_v30  ;;  %3222 = vmatpush.msra.mxu3 %v8098_v60  ;;  %v3125_v30 = vsub.f32 %v8193_v57, %v9816_v51  ;;  %v8276_v51 = vsub.f32 %v200_v45, %v8241_v49  ;;  %v9825_v62 = vand.u32 4294901760, %v8252_v46  ;;  %v9826_v45 = vand.u32 4294901760, %v8259_v22 }
 0x1b2   :  { %3034 = vmatpush.msra.mxu0 %v8161_v59  ;;  %3183 = vmatpush.msra.mxu2 %v8165_v6  ;;  %v3137_v15 = vsub.f32 %v8231_v50, %v9823_v55  ;;  %v8311_v55 = vsub.f32 %v197_v37, %v8281_v1 }
 0x1b3   :  { %3103 = vmatpush.msra.mxu1 %v3102_v43  ;;  %3224 = vmatpush.msra.mxu3 %v8114_v4  ;;  %v8269_v43 = vand.u32 4294901760, %v198_v58  ;;  %v3126_v34 = vand.u32 4294901760, %v3125_v30  ;;  %v9829_v30 = vand.u32 4294901760, %v8276_v51 }
 0x1b4   :  { %3036 = vmatpush.msra.mxu0 %v8173_v20  ;;  %3186 = vmatpush.msra.mxu2 %v8177_v13  ;;  %v3138_v37 = vand.u32 4294901760, %v3137_v15  ;;  %v9831_v28 = vand.u32 4294901760, %v8311_v55 }
 0x1b5   :  { %3109 = vmatpush.msra.mxu1 %v3108_v25  ;;  %3226 = vmatpush.msra.mxu3 %v8129_v2  ;;  %v196_v25 = vld [vmem:[%s9712_s1 + $0x4d0] sm:$0xff]  ;;  %v8297_v40 = vsub.f32 %v198_v58, %v8269_v43  ;;  %v3394_v58 = vsub.f32 %v8252_v46, %v9825_v62 }
 0x1b6   :  { %3038 = vmatpush.msra.mxu0 %v8200_v11  ;;  %3189 = vmatpush.msra.mxu2 %v8193_v57  ;;  %v8304_v29 = vand.u32 4294901760, %v196_v25 }
 0x1b7   :  { %3115 = vmatpush.msra.mxu1 %v3114_v21  ;;  %3228 = vmatpush.msra.mxu3 %v8144_v26  ;;  %v195_v21 = vld [vmem:[%s9712_s1 + $0x4c8] sm:$0xff]  ;;  %v9830_v62 = vand.u32 4294901760, %v8297_v40  ;;  %v3395_v15 = vand.u32 4294901760, %v3394_v58  ;;  %v8355_v58 = vand.u32 4294901760, %v193_v7 }
 0x1b8   :  { %3040 = vmatpush.msra.mxu0 %v8225_v44  ;;  %3192 = vmatpush.msra.mxu2 %v8211_v12  ;;  %v8322_v48 = vand.u32 4294901760, %v195_v21 }
 0x1b9   :  { %3121 = vmatpush.msra.mxu1 %v3120_v41  ;;  %3230 = vmatpush.msra.mxu3 %v8161_v59  ;;  %v194_v41 = vld [vmem:[%s9712_s1 + $0x4c0] sm:$0xff]  ;;  %v3412_v47 = vsub.f32 %v8297_v40, %v9830_v62  ;;  %v3418_v62 = vsub.f32 %v8311_v55, %v9831_v28 }
 0x1ba   :  { %3046 = vmatmul.f32.vlgmr.msra.gmra.mxu0 %v3045_v27  ;;  %3195 = vmatpush.msra.mxu2 %v8231_v50  ;;  %v3143_v27 = vsub.f32 %v8259_v22, %v9826_v45  ;;  %v8338_v45 = vand.u32 4294901760, %v194_v41 }
 0x1bb   :  { %3247 = vmatpush.msrb.mxu0 %v3052_v33  ;;  %3127 = vmatpush.msra.mxu1 %v3126_v34  ;;  %v3400_v33 = vsub.f32 %v8276_v51, %v9829_v30  ;;  %v8336_v34 = vsub.f32 %v196_v25, %v8304_v29  ;;  %v3406_v25 = vsub.f32 %v8289_v32, %v9828_v0  ;;  %v8372_v30 = vand.u32 4294901760, %v192_v31 }
 0x1bc   :  { %3232 = vmatpush.msra.mxu3 %v8173_v20  ;;  %3198 = vmatpush.msra.mxu2 %v8259_v22  ;;  %v3419_v28 = vand.u32 4294901760, %v3418_v62  ;;  %v9967_v62 = vand.u32 4294901760, %v8101_v5  ;;  %v187_v5 = vld [vmem:[%s9712_s1 + $0x488] sm:$0xff] }
 0x1bd   :  { %3251 = vmatpush.msrb.mxu0 %v3058_v56  ;;  %3133 = vmatpush.msra.mxu1 %v3132_v38  ;;  %v3144_v56 = vand.u32 4294901760, %v3143_v27  ;;  %v8353_v38 = vsub.f32 %v195_v21, %v8322_v48  ;;  %v9964_v27 = vand.u32 4294901760, %v8052_v39  ;;  %v3401_v21 = vand.u32 4294901760, %v3400_v33  ;;  %v190_v39 = vld [vmem:[%s9712_s1 + $0x4a0] sm:$0xff] }
 0x1be   :  { %3234 = vmatpush.msra.mxu3 %v8200_v11  ;;  %3201 = vmatmul.f32.vlgmr.msra.gmra.mxu2 %v8185_v63  ;;  %v9832_v0 = vand.u32 4294901760, %v8336_v34  ;;  %v9965_v63 = vand.u32 4294901760, %v8058_v52  ;;  %v8385_v33 = vsub.f32 %v193_v7, %v8355_v58 }
 0x1bf   :  { %3255 = vmatpush.msrb.mxu0 %v3064_v14  ;;  %3351 = vmatpush.msrb.mxu2 %v8216_v61  ;;  %v191_v14 = vld [vmem:[%s9712_s1 + $0x4a8] sm:$0xff] }
 0x1c0   :  { %3139 = vmatpush.msra.mxu1 %v3138_v37  ;;  %3236 = vmatpush.msra.mxu3 %v8225_v44  ;;  %v8370_v37 = vsub.f32 %v194_v41, %v8338_v45  ;;  %v9833_v41 = vand.u32 4294901760, %v8353_v38  ;;  %v3424_v52 = vsub.f32 %v8336_v34, %v9832_v0 }
 0x1c1   :  { %3240 = vmatmul.f32.vlgmr.msra.gmra.mxu3 %v3043_v24  ;;  %3259 = vmatpush.msrb.mxu0 %v9964_v27  ;;  %v3407_v24 = vand.u32 4294901760, %v3406_v25  ;;  %v8387_v27 = vand.u32 4294901760, %v191_v14  ;;  %v8400_v25 = vsub.f32 %v192_v31, %v8372_v30 }
 0x1c2   :  { %3353 = vmatpush.msrb.mxu2 %v8241_v49  ;;  %3396 = vmatpush.msrb.mxu3 %v3395_v15  ;;  %v3413_v15 = vand.u32 4294901760, %v3412_v47  ;;  %v9834_v7 = vand.u32 4294901760, %v8370_v37  ;;  %v9966_v47 = vand.u32 4294901760, %v8074_v17  ;;  %v188_v17 = vld [vmem:[%s9712_s1 + $0x490] sm:$0xff] }
 0x1c3   :  { %3145 = vmatpush.msra.mxu1 %v3144_v56  ;;  %3263 = vmatpush.msrb.mxu0 %v9965_v63  ;;  %v189_v56 = vld [vmem:[%s9712_s1 + $0x498] sm:$0xff]  ;;  %v8402_v63 = vand.u32 4294901760, %v190_v39  ;;  %v8413_v31 = vsub.f32 %v191_v14, %v8387_v27 }
 0x1c4   :  { %3147 = vmatmul.f32.vlgmr.msra.gmra.mxu1 %v8155_v54  ;;  %3355 = vmatpush.msrb.mxu2 %v8261_v8  ;;  %v8415_v0 = vand.u32 4294901760, %v189_v56  ;;  %v3436_v14 = vsub.f32 %v8370_v37, %v9834_v7 }
 0x1c5   :  { %3314 = vmatpush.msrb.mxu1 %v7988_v19  ;;  %3402 = vmatpush.msrb.mxu3 %v3401_v21  ;;  %v3430_v19 = vsub.f32 %v8353_v38, %v9833_v41  ;;  %v9835_v21 = vand.u32 4294901760, %v8385_v33  ;;  %v9968_v41 = vand.u32 4294901760, %v8117_v18  ;;  %v186_v18 = vld [vmem:[%s9712_s1 + $0x480] sm:$0xff] }
 0x1c6   :  { %3267 = vmatpush.msrb.mxu0 %v9966_v47  ;;  %3357 = vmatpush.msrb.mxu2 %v8269_v43  ;;  %v8429_v47 = vsub.f32 %v190_v39, %v8402_v63  ;;  %v8445_v7 = vsub.f32 %v189_v56, %v8415_v0 }
 0x1c7   :  { %3316 = vmatpush.msrb.mxu1 %v7998_v36  ;;  %3408 = vmatpush.msrb.mxu3 %v3407_v24  ;;  %v3425_v36 = vand.u32 4294901760, %v3424_v52  ;;  %v9836_v24 = vand.u32 4294901760, %v8400_v25  ;;  %v3442_v39 = vsub.f32 %v8385_v33, %v9835_v21  ;;  %v9970_v52 = vand.u32 4294901760, %v8148_v10 }
 0x1c8   :  { %3271 = vmatpush.msrb.mxu0 %v9967_v62  ;;  %3359 = vmatpush.msrb.mxu2 %v8281_v1  ;;  %v262_v62 = vld.sshfl [vmem:[#allocation1 + $0x8] sm:$0xff pattern:$0x73625140]  ;;  %v3459_v21 = vand.u32 4294901760, %v8429_v47  ;;  %v9972_v10 = vand.u32 4294901760, %v8165_v6 }
 0x1c9   :  { %3318 = vmatpush.msrb.mxu1 %v8008_v23  ;;  %3414 = vmatpush.msrb.mxu3 %v3413_v15  ;;  %v8437_v23 = vand.u32 4294901760, %v188_v17  ;;  %v3431_v15 = vand.u32 4294901760, %v3430_v19  ;;  %v3437_v19 = vand.u32 4294901760, %v3436_v14  ;;  %v3448_v56 = vsub.f32 %v8400_v25, %v9836_v24 }
 0x1ca   :  { %3275 = vmatpush.msrb.mxu0 %v9968_v41  ;;  %3361 = vmatpush.msrb.mxu2 %v8304_v29  ;;  %v9969_v41 = vand.u32 4294901760, %v8133_v9  ;;  %v3465_v24 = vand.u32 4294901760, %v8445_v7 }
 0x1cb   :  { %3320 = vmatpush.msrb.mxu1 %v8021_v35  ;;  %3420 = vmatpush.msrb.mxu3 %v3419_v28  ;;  %v8453_v35 = vand.u32 4294901760, %v187_v5  ;;  %v8455_v28 = vand.u32 4294901760, %v262_v62  ;;  %v8466_v9 = vsub.f32 %v188_v17, %v8437_v23 }
 0x1cc   :  { %3279 = vmatpush.msrb.mxu0 %v9969_v41  ;;  %3363 = vmatpush.msrb.mxu2 %v8322_v48  ;;  %v8468_v41 = vand.u32 4294901760, %v186_v18 }
 0x1cd   :  { %3322 = vmatpush.msrb.mxu1 %v8032_v42  ;;  %3426 = vmatpush.msrb.mxu3 %v3425_v36  ;;  %v3443_v42 = vand.u32 4294901760, %v3442_v39  ;;  %v9971_v36 = vand.u32 4294901760, %v8413_v31  ;;  %v8479_v17 = vsub.f32 %v187_v5, %v8453_v35  ;;  %v9973_v39 = vand.u32 4294901760, %v8177_v13 }
 0x1ce   :  { %3283 = vmatpush.msrb.mxu0 %v9970_v52  ;;  %3365 = vmatpush.msrb.mxu2 %v8338_v45  ;;  %v8482_v52 = vsub.f32 %v262_v62, %v8455_v28  ;;  %v3471_v6 = vand.u32 4294901760, %v8466_v9  ;;  %v8493_v5 = vsub.f32 %v186_v18, %v8468_v41  ;;  %v3466_v62 = vsub.f32 %v8445_v7, %v3465_v24 }
 0x1cf   :  { %3324 = vmatpush.msrb.mxu1 %v8043_v16  ;;  %3432 = vmatpush.msrb.mxu3 %v3431_v15  ;;  %v3454_v14 = vsub.f32 %v8413_v31, %v9971_v36  ;;  %v3449_v16 = vand.u32 4294901760, %v3448_v56  ;;  %v3460_v15 = vsub.f32 %v8429_v47, %v3459_v21  ;;  %v3477_v13 = vand.u32 4294901760, %v8479_v17 }
 0x1d0   :  { %3287 = vmatpush.msrb.mxu0 %v9972_v10  ;;  %3367 = vmatpush.msrb.mxu2 %v8355_v58  ;;  %v3384_v56 = vand.u32 4294901760, %v8482_v52  ;;  %v3467_v36 = vand.u32 4294901760, %v3466_v62 }
 0x1d1   :  { %3326 = vmatpush.msrb.mxu1 %v8068_v53  ;;  %3438 = vmatpush.msrb.mxu3 %v3437_v19  ;;  %v3455_v53 = vand.u32 4294901760, %v3454_v14  ;;  %v9974_v19 = vand.u32 4294901760, %v8193_v57  ;;  %v3461_v18 = vand.u32 4294901760, %v3460_v15  ;;  %v3472_v57 = vsub.f32 %v8466_v9, %v3471_v6  ;;  %v209_v15 = vld [vmem:[%s9712_s1 + $0x538] sm:$0xff] }
 0x1d2   :  { %3291 = vmatpush.msrb.mxu0 %v9973_v39  ;;  %3369 = vmatpush.msrb.mxu2 %v8372_v30  ;;  %v9976_v14 = vand.u32 4294901760, %v8231_v50 }
 0x1d3   :  { %3328 = vmatpush.msrb.mxu1 %v8084_v3  ;;  %3444 = vmatpush.msrb.mxu3 %v3443_v42  ;;  %v9975_v3 = vand.u32 4294901760, %v8211_v12  ;;  %v3483_v42 = vand.u32 4294901760, %v8493_v5  ;;  %v3385_v12 = vsub.f32 %v8482_v52, %v3384_v56  ;;  %v3473_v50 = vand.u32 4294901760, %v3472_v57 }
 0x1d4   :  { %3295 = vmatpush.msrb.mxu0 %v9974_v19  ;;  %3371 = vmatpush.msrb.mxu2 %v8387_v27 }
 0x1d5   :  { %3330 = vmatpush.msrb.mxu1 %v8098_v60  ;;  %3450 = vmatpush.msrb.mxu3 %v3449_v16  ;;  %v3478_v60 = vsub.f32 %v8479_v17, %v3477_v13  ;;  %v3484_v10 = vsub.f32 %v8493_v5, %v3483_v42 }
 0x1d6   :  { %3299 = vmatpush.msrb.mxu0 %v9975_v3  ;;  %3373 = vmatpush.msrb.mxu2 %v8402_v63 }
 0x1d7   :  { %3332 = vmatpush.msrb.mxu1 %v8114_v4  ;;  %3456 = vmatpush.msrb.mxu3 %v3455_v53  ;;  %v9977_v4 = vand.u32 4294901760, %v8259_v22  ;;  %v3479_v16 = vand.u32 4294901760, %v3478_v60  ;;  %v3485_v22 = vand.u32 4294901760, %v3484_v10  ;;  %v208_v53 = vld [vmem:[%s9712_s1 + $0x530] sm:$0xff]  ;;  %v205_v10 = vld [vmem:[%s9712_s1 + $0x518] sm:$0xff] }
 0x1d8   :  { %3303 = vmatpush.msrb.mxu0 %v9976_v14  ;;  %3375 = vmatpush.msrb.mxu2 %v8415_v0  ;;  %v206_v14 = vld [vmem:[%s9712_s1 + $0x520] sm:$0xff] }
 0x1d9   :  { %3334 = vmatpush.msrb.mxu1 %v8129_v2  ;;  %3462 = vmatpush.msrb.mxu3 %v3461_v18  ;;  %v3386_v2 = vand.u32 4294901760, %v3385_v12 }
 0x1da   :  { %3307 = vmatpush.msrb.mxu0 %v9977_v4  ;;  %3377 = vmatpush.msrb.mxu2 %v8437_v23 }
 0x1db   :  { %3336 = vmatpush.msrb.mxu1 %v8144_v26  ;;  %3468 = vmatpush.msrb.mxu3 %v3467_v36  ;;  %v9978_v26 = vand.u32 4294901760, %v8252_v46 }
 0x1dc   :  { %3309 = vmatmul.f32.vlgmr.msrb.gmra.mxu0 %v8155_v54  ;;  %3379 = vmatpush.msrb.mxu2 %v8453_v35 }
 0x1dd   :  { %3494 = vmatpush.msra.mxu0 %v8252_v46  ;;  %3338 = vmatpush.msrb.mxu1 %v8161_v59  ;;  %v9979_v59 = vand.u32 4294901760, %v8276_v51 }
 0x1de   :  { %3474 = vmatpush.msrb.mxu3 %v3473_v50  ;;  %3381 = vmatpush.msrb.mxu2 %v8468_v41 }
 0x1df   :  { %3497 = vmatpush.msra.mxu0 %v8276_v51  ;;  %3340 = vmatpush.msrb.mxu1 %v8173_v20  ;;  %v9980_v20 = vand.u32 4294901760, %v8289_v32  ;;  %v9987_v51 = vand.u32 4294901760, %v8400_v25 }
 0x1e0   :  { %3480 = vmatpush.msrb.mxu3 %v3479_v16  ;;  %3387 = vmatmul.f32.vlgmr.msrb.gmra.mxu2 %v3386_v2  ;;  %v8750_v2 = vand.u32 4294901760, %v206_v14 }
 0x1e1   :  { %3500 = vmatpush.msra.mxu0 %v8289_v32  ;;  %3588 = vmatpush.msra.mxu2 %v9978_v26 }
 0x1e2   :  { %3342 = vmatpush.msrb.mxu1 %v8200_v11  ;;  %3486 = vmatpush.msrb.mxu3 %v3485_v22  ;;  %v9981_v11 = vand.u32 4294901760, %v8297_v40 }
 0x1e3   :  { %3488 = vmatmul.f32.vlgmr.msrb.gmra.mxu3 %v8455_v28  ;;  %3503 = vmatpush.msra.mxu0 %v8297_v40  ;;  %v9984_v40 = vand.u32 4294901760, %v8353_v38 }
 0x1e4   :  { %3592 = vmatpush.msra.mxu2 %v9979_v59  ;;  %3655 = vmatpush.msra.mxu3 %v8216_v61 }
 0x1e5   :  { %3344 = vmatpush.msrb.mxu1 %v8225_v44  ;;  %3506 = vmatpush.msra.mxu0 %v8311_v55  ;;  %v9986_v44 = vand.u32 4294901760, %v8385_v33 }
 0x1e6   :  { %3346 = vmatmul.f32.vlgmr.msrb.gmra.mxu1 %v8155_v54  ;;  %3596 = vmatpush.msra.mxu2 %v9980_v20  ;;  %v9982_v54 = vand.u32 4294901760, %v8311_v55  ;;  %v214_v55 = vld [vmem:[%s9712_s1 + $0x560] sm:$0xff]  ;;  %v204_v20 = vld [vmem:[%s9712_s1 + $0x510] sm:$0xff] }
 0x1e7   :  { %3547 = vmatpush.msra.mxu1 %v8216_v61  ;;  %3657 = vmatpush.msra.mxu3 %v8241_v49  ;;  %v9983_v61 = vand.u32 4294901760, %v8336_v34 }
 0x1e8   :  { %3509 = vmatpush.msra.mxu0 %v8336_v34  ;;  %3600 = vmatpush.msra.mxu2 %v9981_v11  ;;  %v213_v34 = vld [vmem:[%s9712_s1 + $0x558] sm:$0xff] }
 0x1e9   :  { %3549 = vmatpush.msra.mxu1 %v8241_v49  ;;  %3659 = vmatpush.msra.mxu3 %v8261_v8  ;;  %v215_v49 = vld [vmem:[%s9712_s1 + $0x568] sm:$0xff] }
 0x1ea   :  { %3512 = vmatpush.msra.mxu0 %v8353_v38  ;;  %3604 = vmatpush.msra.mxu2 %v9982_v54 }
 0x1eb   :  { %3551 = vmatpush.msra.mxu1 %v8261_v8  ;;  %3661 = vmatpush.msra.mxu3 %v8269_v43  ;;  %v9985_v8 = vand.u32 4294901760, %v8370_v37 }
 0x1ec   :  { %3515 = vmatpush.msra.mxu0 %v8370_v37  ;;  %3608 = vmatpush.msra.mxu2 %v9983_v61  ;;  %v8638_v37 = vand.u32 4294901760, %v213_v34  ;;  %v8767_v61 = vand.u32 4294901760, %v205_v10 }
 0x1ed   :  { %3553 = vmatpush.msra.mxu1 %v8269_v43  ;;  %3663 = vmatpush.msra.mxu3 %v8281_v1  ;;  %v8614_v43 = vand.u32 4294901760, %v215_v49 }
 0x1ee   :  { %3518 = vmatpush.msra.mxu0 %v8385_v33  ;;  %3612 = vmatpush.msra.mxu2 %v9984_v40 }
 0x1ef   :  { %3555 = vmatpush.msra.mxu1 %v8281_v1  ;;  %3665 = vmatpush.msra.mxu3 %v8304_v29  ;;  %v217_v1 = vld [vmem:[%s9712_s1 + $0x578] sm:$0xff] }
 0x1f0   :  { %3521 = vmatpush.msra.mxu0 %v8400_v25  ;;  %3616 = vmatpush.msra.mxu2 %v9985_v8  ;;  %v8594_v32 = vand.u32 4294901760, %v217_v1  ;;  %v211_v25 = vld [vmem:[%s9712_s1 + $0x548] sm:$0xff] }
 0x1f1   :  { %3557 = vmatpush.msra.mxu1 %v8304_v29  ;;  %3667 = vmatpush.msra.mxu3 %v8322_v48  ;;  %v216_v29 = vld [vmem:[%s9712_s1 + $0x570] sm:$0xff] }
 0x1f2   :  { %3524 = vmatpush.msra.mxu0 %v8413_v31  ;;  %3620 = vmatpush.msra.mxu2 %v9986_v44  ;;  %v8604_v46 = vand.u32 4294901760, %v216_v29 }
 0x1f3   :  { %3559 = vmatpush.msra.mxu1 %v8322_v48  ;;  %3669 = vmatpush.msra.mxu3 %v8338_v45  ;;  %v9988_v48 = vand.u32 4294901760, %v8413_v31  ;;  %v8664_v31 = vsub.f32 %v213_v34, %v8638_v37 }
 0x1f4   :  { %3527 = vmatpush.msra.mxu0 %v8429_v47  ;;  %3624 = vmatpush.msra.mxu2 %v9987_v51  ;;  %v8630_v38 = vsub.f32 %v216_v29, %v8604_v46  ;;  %v8674_v47 = vand.u32 4294901760, %v211_v25  ;;  %v8779_v51 = vand.u32 4294901760, %v204_v20 }
 0x1f5   :  { %3561 = vmatpush.msra.mxu1 %v8338_v45  ;;  %3671 = vmatpush.msra.mxu3 %v8355_v58  ;;  %v8617_v45 = vsub.f32 %v217_v1, %v8594_v32 }
 0x1f6   :  { %3530 = vmatpush.msra.mxu0 %v8445_v7  ;;  %3628 = vmatpush.msra.mxu2 %v9988_v48  ;;  %v8783_v48 = vsub.f32 %v206_v14, %v8750_v2 }
 0x1f7   :  { %3563 = vmatpush.msra.mxu1 %v8355_v58  ;;  %3673 = vmatpush.msra.mxu3 %v8372_v30  ;;  %v212_v58 = vld [vmem:[%s9712_s1 + $0x550] sm:$0xff]  ;;  %v3734_v33 = vand.u32 4294901760, %v8617_v45 }
 0x1f8   :  { %3533 = vmatpush.msra.mxu0 %v8466_v9  ;;  %3632 = vmatpush.msra.mxu2 %v3459_v21  ;;  %v8649_v7 = vand.u32 4294901760, %v212_v58 }
 0x1f9   :  { %3565 = vmatpush.msra.mxu1 %v8372_v30  ;;  %3675 = vmatpush.msra.mxu3 %v8387_v27  ;;  %v8627_v30 = vand.u32 4294901760, %v214_v55 }
 0x1fa   :  { %3536 = vmatpush.msra.mxu0 %v8479_v17  ;;  %3636 = vmatpush.msra.mxu2 %v3465_v24  ;;  %v210_v24 = vld [vmem:[%s9712_s1 + $0x540] sm:$0xff]  ;;  %v8680_v17 = vsub.f32 %v212_v58, %v8649_v7 }
 0x1fb   :  { %3567 = vmatpush.msra.mxu1 %v8387_v27  ;;  %3677 = vmatpush.msra.mxu3 %v8402_v63  ;;  %v8644_v27 = vsub.f32 %v215_v49, %v8614_v43  ;;  %v8658_v21 = vsub.f32 %v214_v55, %v8627_v30  ;;  %v8690_v39 = vand.u32 4294901760, %v210_v24  ;;  %v203_v49 = vld [vmem:[%s9712_s1 + $0x508] sm:$0xff] }
 0x1fc   :  { %3539 = vmatpush.msra.mxu0 %v8493_v5  ;;  %3640 = vmatpush.msra.mxu2 %v3471_v6  ;;  %v9845_v5 = vand.u32 4294901760, %v8664_v31  ;;  %v9844_v18 = vand.u32 4294901760, %v8680_v17 }
 0x1fd   :  { %3569 = vmatpush.msra.mxu1 %v8402_v63  ;;  %3679 = vmatpush.msra.mxu3 %v8415_v0  ;;  %v3740_v63 = vand.u32 4294901760, %v8630_v38  ;;  %v3746_v9 = vand.u32 4294901760, %v8644_v27  ;;  %v9847_v6 = vand.u32 4294901760, %v8658_v21  ;;  %v8723_v36 = vsub.f32 %v210_v24, %v8690_v39 }
 0x1fe   :  { %3542 = vmatmul.f32.vlgmr.msra.gmra.mxu0 %v8482_v52  ;;  %3644 = vmatpush.msra.mxu2 %v3477_v13  ;;  %v8704_v13 = vand.u32 4294901760, %v209_v15  ;;  %v3765_v50 = vsub.f32 %v8680_v17, %v9844_v18  ;;  %v8799_v24 = vsub.f32 %v205_v10, %v8767_v61 }
 0x1ff   :  { %3692 = vmatpush.msrb.mxu0 %v8594_v32  ;;  %3571 = vmatpush.msra.mxu1 %v8415_v0  ;;  %v3735_v0 = vsub.f32 %v8617_v45, %v3734_v33  ;;  %v3747_v19 = vsub.f32 %v8644_v27, %v3746_v9  ;;  %v3753_v57 = vsub.f32 %v8658_v21, %v9847_v6  ;;  %v9842_v22 = vand.u32 4294901760, %v8723_v36 }
 0x200   :  { %3681 = vmatpush.msra.mxu3 %v8437_v23  ;;  %3648 = vmatpush.msra.mxu2 %v3483_v42  ;;  %v8720_v42 = vand.u32 4294901760, %v208_v53  ;;  %v8739_v52 = vsub.f32 %v209_v15, %v8704_v13  ;;  %v3766_v44 = vand.u32 4294901760, %v3765_v50  ;;  %v8806_v15 = vand.u32 4294901760, %v203_v49 }
 0x201   :  { %3694 = vmatpush.msrb.mxu0 %v8604_v46  ;;  %3573 = vmatpush.msra.mxu1 %v8437_v23  ;;  %v3741_v23 = vsub.f32 %v8630_v38, %v3740_v63  ;;  %v3736_v62 = vand.u32 4294901760, %v3735_v0  ;;  %v3748_v60 = vand.u32 4294901760, %v3747_v19  ;;  %v3754_v16 = vand.u32 4294901760, %v3753_v57  ;;  %v233_v0 = vld [vmem:[%s9712_s1 + $0x5f8] sm:$0xff] }
 0x202   :  { %3683 = vmatpush.msra.mxu3 %v8453_v35  ;;  %3650 = vmatmul.f32.vlgmr.msra.gmra.mxu2 %v8455_v28  ;;  %v8754_v26 = vsub.f32 %v208_v53, %v8720_v42  ;;  %v9840_v40 = vand.u32 4294901760, %v8739_v52  ;;  %v3777_v1 = vsub.f32 %v8723_v36, %v9842_v22  ;;  %v9837_v19 = vand.u32 4294901760, %v8783_v48 }
 0x203   :  { %3696 = vmatpush.msrb.mxu0 %v8614_v43  ;;  %3835 = vmatpush.msrb.mxu2 %v8617_v45  ;;  %v3742_v3 = vand.u32 4294901760, %v3741_v23  ;;  %v202_v23 = vld [vmem:[%s9712_s1 + $0x500] sm:$0xff]  ;;  %v8822_v57 = vand.u32 4294901760, %v233_v0  ;;  %v9841_v50 = vand.u32 4294901760, %v8799_v24  ;;  %v8837_v10 = vsub.f32 %v203_v49, %v8806_v15  ;;  %v225_v45 = vld [vmem:[%s9712_s1 + $0x5b8] sm:$0xff] }
 0x204   :  { %3575 = vmatpush.msra.mxu1 %v8453_v35  ;;  %3685 = vmatpush.msra.mxu3 %v8468_v41  ;;  %v8707_v35 = vsub.f32 %v211_v25, %v8674_v47  ;;  %v9839_v29 = vand.u32 4294901760, %v8754_v26  ;;  %v3783_v58 = vsub.f32 %v8739_v52, %v9840_v40  ;;  %v3778_v53 = vand.u32 4294901760, %v3777_v1  ;;  %v230_v1 = vld [vmem:[%s9712_s1 + $0x5e0] sm:$0xff]  ;;  %v229_v40 = vld [vmem:[%s9712_s1 + $0x5d8] sm:$0xff] }
 0x205   :  { %3687 = vmatmul.f32.vlgmr.msra.gmra.mxu3 %v8455_v28  ;;  %3698 = vmatpush.msrb.mxu0 %v8627_v30  ;;  %v207_v28 = vld [vmem:[%s9712_s1 + $0x528] sm:$0xff]  ;;  %9989 = vst [vmem:[#allocation10_spill] sm:$0xff] %v8822_v57  ;;  %v243_v49 = vstv %s9713_s2 }
 0x206   :  { %3838 = vmatpush.msrb.mxu2 %v8630_v38  ;;  %3888 = vmatpush.msrb.mxu3 %v8594_v32  ;;  %v8735_v12 = vand.u32 4294901760, %v207_v28  ;;  %v9843_v4 = vand.u32 4294901760, %v8707_v35  ;;  %v3784_v14 = vand.u32 4294901760, %v3783_v58  ;;  %v8861_v58 = vsub.f32 %v233_v0, %v8822_v57  ;;  %v224_v38 = vld [vmem:[%s9712_s1 + $0x5b0] sm:$0xff] }
 0x207   :  { %3577 = vmatpush.msra.mxu1 %v8468_v41  ;;  %3700 = vmatpush.msrb.mxu0 %v8638_v37  ;;  %v3759_v41 = vsub.f32 %v8664_v31, %v9845_v5  ;;  %v9849_v0 = vand.u32 4294901760, %v8837_v10  ;;  %v8890_v5 = vand.u32 4294901760, %v229_v40 }
 0x208   :  { %3581 = vmatmul.f32.vlgmr.msra.gmra.mxu1 %v3384_v56  ;;  %3841 = vmatpush.msrb.mxu2 %v8644_v27  ;;  %v263_v56 = vld.sshfl [vmem:[#allocation1 + $0x10] sm:$0xff pattern:$0x73625140]  ;;  %v3771_v54 = vsub.f32 %v8707_v35, %v9843_v4  ;;  %v8771_v8 = vsub.f32 %v207_v28, %v8735_v12  ;;  %v8817_v28 = vsub.f32 %v204_v20, %v8779_v51  ;;  %v9850_v18 = vand.u32 4294901760, %v8861_v58 }
 0x209   :  { %3737 = vmatpush.msrb.mxu1 %v3736_v62  ;;  %3890 = vmatpush.msrb.mxu3 %v8604_v46  ;;  %v3760_v59 = vand.u32 4294901760, %v3759_v41  ;;  %v8761_v11 = vand.u32 4294901760, %v263_v56  ;;  %v3789_v62 = vsub.f32 %v8754_v26, %v9839_v29  ;;  %v232_v41 = vld [vmem:[%s9712_s1 + $0x5f0] sm:$0xff]  ;;  %v3801_v20 = vsub.f32 %v8783_v48, %v9837_v19 }
 0x20a   :  { %3702 = vmatpush.msrb.mxu0 %v8649_v7  ;;  %3844 = vmatpush.msrb.mxu2 %v8658_v21  ;;  %v3772_v34 = vand.u32 4294901760, %v3771_v54  ;;  %v9838_v25 = vand.u32 4294901760, %v8771_v8  ;;  %v9846_v54 = vand.u32 4294901760, %v8817_v28  ;;  %v3807_v19 = vsub.f32 %v8799_v24, %v9841_v50 }
 0x20b   :  { %3743 = vmatpush.msrb.mxu1 %v3742_v3  ;;  %3892 = vmatpush.msrb.mxu3 %v8614_v43  ;;  %v8791_v55 = vsub.f32 %v263_v56, %v8761_v11  ;;  %v8831_v56 = vand.u32 4294901760, %v202_v23 }
 0x20c   :  { %3704 = vmatpush.msrb.mxu0 %v8674_v47  ;;  %3847 = vmatpush.msrb.mxu2 %v8664_v31 }
 0x20d   :  { %3749 = vmatpush.msrb.mxu1 %v3748_v60  ;;  %3894 = vmatpush.msrb.mxu3 %v8627_v30  ;;  %v9848_v3 = vand.u32 4294901760, %v8791_v55  ;;  %v3795_v60 = vsub.f32 %v8771_v8, %v9838_v25  ;;  %9990 = vst [vmem:[#allocation11_spill] sm:$0xff] %v8831_v56  ;;  %v8868_v25 = vsub.f32 %v202_v23, %v8831_v56 }
 0x20e   :  { %3706 = vmatpush.msrb.mxu0 %v8690_v39  ;;  %3850 = vmatpush.msrb.mxu2 %v8680_v17  ;;  %v3813_v23 = vsub.f32 %v8817_v28, %v9846_v54 }
 0x20f   :  { %3755 = vmatpush.msrb.mxu1 %v3754_v16  ;;  %3896 = vmatpush.msrb.mxu3 %v8638_v37  ;;  %v231_v16 = vld [vmem:[%s9712_s1 + $0x5e8] sm:$0xff] }
 0x210   :  { %3708 = vmatpush.msrb.mxu0 %v8704_v13  ;;  %3853 = vmatpush.msrb.mxu2 %v8707_v35  ;;  %v8870_v29 = vand.u32 4294901760, %v231_v16 }
 0x211   :  { %3761 = vmatpush.msrb.mxu1 %v3760_v59  ;;  %3898 = vmatpush.msrb.mxu3 %v8649_v7  ;;  %v3790_v59 = vand.u32 4294901760, %v3789_v62  ;;  %v3796_v62 = vand.u32 4294901760, %v3795_v60  ;;  %v3802_v60 = vand.u32 4294901760, %v3801_v20  ;;  %v420_v20 = vpop.f32.mrf.mxu1 }
 0x212   :  { %3710 = vmatpush.msrb.mxu0 %v8720_v42  ;;  %3856 = vmatpush.msrb.mxu2 %v8723_v36 }
 0x213   :  { %3767 = vmatpush.msrb.mxu1 %v3766_v44  ;;  %3900 = vmatpush.msrb.mxu3 %v8674_v47  ;;  %v8847_v44 = vand.u32 4294901760, %v232_v41 }
 0x214   :  { %3712 = vmatpush.msrb.mxu0 %v8735_v12  ;;  %3859 = vmatpush.msrb.mxu2 %v8739_v52 }
 0x215   :  { %3773 = vmatpush.msrb.mxu1 %v3772_v34  ;;  %3902 = vmatpush.msrb.mxu3 %v8690_v39  ;;  %v3726_v34 = vsub.f32 %v8791_v55, %v9848_v3  ;;  %v8885_v50 = vsub.f32 %v232_v41, %v8847_v44  ;;  %v3808_v41 = vand.u32 4294901760, %v3807_v19  ;;  %v227_v19 = vld [vmem:[%s9712_s1 + $0x5c8] sm:$0xff] }
 0x216   :  { %3714 = vmatpush.msrb.mxu0 %v8750_v2  ;;  %3862 = vmatpush.msrb.mxu2 %v8754_v26 }
 0x217   :  { %3779 = vmatpush.msrb.mxu1 %v3778_v53  ;;  %3904 = vmatpush.msrb.mxu3 %v8704_v13  ;;  %v319_v53 = vpop.f32.mrf.mxu0  ;;  %v3727_v4 = vand.u32 4294901760, %v3726_v34  ;;  %v3819_v34 = vsub.f32 %v8837_v10, %v9849_v0  ;;  %v8920_v0 = vsub.f32 %v229_v40, %v8890_v5 }
 0x218   :  { %3716 = vmatpush.msrb.mxu0 %v8767_v61  ;;  %3865 = vmatpush.msrb.mxu2 %v8771_v8  ;;  %v320_v22 = vadd.f32 %v319_v53, %v243_v49  ;;  %v9851_v49 = vand.u32 4294901760, %v8868_v25  ;;  %v8898_v53 = vsub.f32 %v231_v16, %v8870_v29  ;;  %v3814_v16 = vand.u32 4294901760, %v3813_v23  ;;  %v474_v23 = vpop.f32.mrf.mxu2 }
 0x219   :  { %3785 = vmatpush.msrb.mxu1 %v3784_v14  ;;  %3906 = vmatpush.msrb.mxu3 %v8720_v42  ;;  %v8878_v14 = vand.u32 4294901760, %v230_v1  ;;  %v3820_v40 = vand.u32 4294901760, %v3819_v34 }
 0x21a   :  { %3718 = vmatpush.msrb.mxu0 %v8779_v51  ;;  %3868 = vmatpush.msrb.mxu2 %v8783_v48  ;;  %v421_v3 = vadd.f32 %v420_v20, %v320_v22  ;;  %v8931_v20 = vand.u32 4294901760, %v227_v19 }
 0x21b   :  { %3791 = vmatpush.msrb.mxu1 %v3790_v59  ;;  %3908 = vmatpush.msrb.mxu3 %v8735_v12  ;;  %v228_v59 = vld [vmem:[%s9712_s1 + $0x5d0] sm:$0xff]  ;;  %v8906_v54 = vsub.f32 %v230_v1, %v8878_v14  ;;  %v4076_v1 = vsub.f32 %v8861_v58, %v9850_v18 }
 0x21c   :  { %3720 = vmatpush.msrb.mxu0 %v8806_v15  ;;  %3871 = vmatpush.msrb.mxu2 %v8799_v24  ;;  %v8913_v6 = vand.u32 4294901760, %v228_v59  ;;  %9991 = vst [vmem:[#allocation12_spill] sm:$0xff] %v8931_v20  ;;  %v475_v34 = vadd.f32 %v474_v23, %v421_v3  ;;  %v9992_v3 = vand.u32 4294901760, %v8898_v53  ;;  %v8962_v23 = vsub.f32 %v227_v19, %v8931_v20 }
 0x21d   :  { %3797 = vmatpush.msrb.mxu1 %v3796_v62  ;;  %3910 = vmatpush.msrb.mxu3 %v8750_v2  ;;  %v9852_v62 = vand.u32 4294901760, %v8885_v50  ;;  %v4077_v18 = vand.u32 4294901760, %v4076_v1  ;;  %v8964_v1 = vand.u32 4294901760, %v225_v45 }
 0x21e   :  { %3722 = vmatpush.msrb.mxu0 %v8831_v56  ;;  %3874 = vmatpush.msrb.mxu2 %v8817_v28 }
 0x21f   :  { %3803 = vmatpush.msrb.mxu1 %v3802_v60  ;;  %3912 = vmatpush.msrb.mxu3 %v8767_v61  ;;  %v226_v60 = vld [vmem:[%s9712_s1 + $0x5c0] sm:$0xff] }
 0x220   :  { %3728 = vmatmul.f32.vlgmr.msrb.gmra.mxu0 %v3727_v4  ;;  %3877 = vmatpush.msrb.mxu2 %v8837_v10  ;;  %v3825_v4 = vsub.f32 %v8868_v25, %v9851_v49  ;;  %v8947_v49 = vand.u32 4294901760, %v226_v60 }
 0x221   :  { %3929 = vmatpush.msra.mxu0 %v3734_v33  ;;  %3809 = vmatpush.msrb.mxu1 %v3808_v41  ;;  %v4082_v33 = vsub.f32 %v8885_v50, %v9852_v62  ;;  %v8945_v41 = vsub.f32 %v228_v59, %v8913_v6  ;;  %v9993_v62 = vand.u32 4294901760, %v8906_v54 }
 0x222   :  { %3914 = vmatpush.msrb.mxu3 %v8779_v51  ;;  %3880 = vmatpush.msrb.mxu2 %v8868_v25  ;;  %v3826_v59 = vand.u32 4294901760, %v3825_v4  ;;  %v9994_v4 = vand.u32 4294901760, %v8791_v55 }
 0x223   :  { %3933 = vmatpush.msra.mxu0 %v3740_v63  ;;  %3815 = vmatpush.msrb.mxu1 %v3814_v16  ;;  %v513_v63 = vpop.f32.mrf.mxu3  ;;  %v4088_v16 = vsub.f32 %v8898_v53, %v9992_v3  ;;  %v4094_v27 = vsub.f32 %v8906_v54, %v9993_v62  ;;  %v9995_v3 = vand.u32 4294901760, %v8658_v21  ;;  %v4083_v19 = vand.u32 4294901760, %v4082_v33  ;;  %v222_v21 = vld [vmem:[%s9712_s1 + $0x5a0] sm:$0xff]  ;;  %v582_v33 = vpop.f32.mrf.mxu0 }
 0x224   :  { %3916 = vmatpush.msrb.mxu3 %v8806_v15  ;;  %3883 = vmatmul.f32.vlgmr.msrb.gmra.mxu2 %v8791_v55  ;;  %v9856_v22 = vand.u32 4294901760, %v8945_v41  ;;  %v9996_v62 = vand.u32 4294901760, %v8920_v0 }
 0x225   :  { %3937 = vmatpush.msra.mxu0 %v3746_v9  ;;  %4033 = vmatpush.msra.mxu2 %v8822_v57  ;;  %v223_v9 = vld [vmem:[%s9712_s1 + $0x5a8] sm:$0xff]  ;;  %v514_v57 = vadd.f32 %v513_v63, %v475_v34  ;;  %v8994_v34 = vsub.f32 %v225_v45, %v8964_v1  ;;  %v4095_v63 = vand.u32 4294901760, %v4094_v27  ;;  %v9998_v27 = vand.u32 4294901760, %v8680_v17  ;;  %v220_v17 = vld [vmem:[%s9712_s1 + $0x590] sm:$0xff] }
 0x226   :  { %3821 = vmatpush.msrb.mxu1 %v3820_v40  ;;  %3918 = vmatpush.msrb.mxu3 %v8831_v56  ;;  %v8979_v40 = vsub.f32 %v226_v60, %v8947_v49  ;;  %v8981_v56 = vand.u32 4294901760, %v224_v38  ;;  %v4100_v55 = vsub.f32 %v8920_v0, %v9996_v62  ;;  %v4089_v60 = vand.u32 4294901760, %v4088_v16 }
 0x227   :  { %3922 = vmatmul.f32.vlgmr.msrb.gmra.mxu3 %v9994_v4  ;;  %3941 = vmatpush.msra.mxu0 %v9995_v3  ;;  %v9997_v4 = vand.u32 4294901760, %v8664_v31  ;;  %v4106_v31 = vsub.f32 %v8945_v41, %v9856_v22  ;;  %v9011_v62 = vand.u32 4294901760, %v222_v21 }
 0x228   :  { %4035 = vmatpush.msra.mxu2 %v8847_v44  ;;  %4078 = vmatpush.msra.mxu3 %v4077_v18  ;;  %v8996_v18 = vand.u32 4294901760, %v223_v9  ;;  %v9009_v16 = vsub.f32 %v224_v38, %v8981_v56  ;;  %v4101_v3 = vand.u32 4294901760, %v4100_v55  ;;  %v10000_v55 = vand.u32 4294901760, %v8707_v35  ;;  %v219_v35 = vld [vmem:[%s9712_s1 + $0x588] sm:$0xff] }
 0x229   :  { %3827 = vmatpush.msrb.mxu1 %v3826_v59  ;;  %3945 = vmatpush.msra.mxu0 %v9997_v4  ;;  %v221_v59 = vld [vmem:[%s9712_s1 + $0x598] sm:$0xff]  ;;  %v583_v4 = vadd.f32 %v582_v33, %v514_v57  ;;  %v10001_v33 = vand.u32 4294901760, %v8979_v40  ;;  %v10002_v38 = vand.u32 4294901760, %v8723_v36  ;;  %v218_v36 = vld [vmem:[%s9712_s1 + $0x580] sm:$0xff] }
 0x22a   :  { %3829 = vmatmul.f32.vlgmr.msrb.gmra.mxu1 %v8761_v11  ;;  %4037 = vmatpush.msra.mxu2 %v8870_v29  ;;  %v9022_v45 = vsub.f32 %v223_v9, %v8996_v18  ;;  %v9024_v57 = vand.u32 4294901760, %v221_v59 }
 0x22b   :  { %3996 = vmatpush.msra.mxu1 %v8594_v32  ;;  %4084 = vmatpush.msra.mxu3 %v4083_v19  ;;  %v619_v32 = vpop.f32.mrf.mxu1  ;;  %v9999_v19 = vand.u32 4294901760, %v8962_v23  ;;  %v4118_v9 = vsub.f32 %v8979_v40, %v10001_v33 }
 0x22c   :  { %3949 = vmatpush.msra.mxu0 %v9998_v27  ;;  %4039 = vmatpush.msra.mxu2 %v8878_v14  ;;  %v9038_v27 = vsub.f32 %v222_v21, %v9011_v62  ;;  %v10003_v21 = vand.u32 4294901760, %v8994_v34 }
 0x22d   :  { %3998 = vmatpush.msra.mxu1 %v8604_v46  ;;  %4090 = vmatpush.msra.mxu3 %v4089_v60  ;;  %v4112_v22 = vsub.f32 %v8962_v23, %v9999_v19  ;;  %v4107_v46 = vand.u32 4294901760, %v4106_v31  ;;  %v264_v19 = vld.sshfl [vmem:[#allocation1 + $0x18] sm:$0xff pattern:$0x73625140] }
 0x22e   :  { %3953 = vmatpush.msra.mxu0 %v10000_v55  ;;  %4041 = vmatpush.msra.mxu2 %v8890_v5  ;;  %v620_v55 = vadd.f32 %v619_v32, %v583_v4  ;;  %v4124_v33 = vsub.f32 %v8994_v34, %v10003_v21  ;;  %v9054_v4 = vsub.f32 %v221_v59, %v9024_v57  ;;  %v10004_v32 = vand.u32 4294901760, %v8739_v52 }
 0x22f   :  { %4000 = vmatpush.msra.mxu1 %v8614_v43  ;;  %4096 = vmatpush.msra.mxu3 %v4095_v63  ;;  %v9046_v43 = vand.u32 4294901760, %v220_v17  ;;  %v660_v63 = vpop.f32.mrf.mxu2  ;;  %v4113_v31 = vand.u32 4294901760, %v4112_v22  ;;  %v9064_v22 = vand.u32 4294901760, %v264_v19  ;;  %v10005_v59 = vand.u32 4294901760, %v9009_v16 }
 0x230   :  { %3957 = vmatpush.msra.mxu0 %v10002_v38  ;;  %4043 = vmatpush.msra.mxu2 %v8913_v6  ;;  %v4141_v21 = vand.u32 4294901760, %v9038_v27  ;;  %v661_v60 = vadd.f32 %v660_v63, %v620_v55  ;;  %v10006_v52 = vand.u32 4294901760, %v8754_v26  ;;  %v4147_v55 = vand.u32 4294901760, %v9054_v4 }
 0x231   :  { %4002 = vmatpush.msra.mxu1 %v8627_v30  ;;  %4102 = vmatpush.msra.mxu3 %v4101_v3  ;;  %v9062_v30 = vand.u32 4294901760, %v219_v35  ;;  %v4119_v3 = vand.u32 4294901760, %v4118_v9  ;;  %v4130_v38 = vsub.f32 %v9009_v16, %v10005_v59  ;;  %v10007_v9 = vand.u32 4294901760, %v9022_v45 }
 0x232   :  { %3961 = vmatpush.msra.mxu0 %v10004_v32  ;;  %4045 = vmatpush.msra.mxu2 %v8931_v20  ;;  %v9075_v32 = vsub.f32 %v220_v17, %v9046_v43  ;;  %v9077_v20 = vand.u32 4294901760, %v218_v36  ;;  %v10008_v26 = vand.u32 4294901760, %v8771_v8  ;;  %v9091_v63 = vsub.f32 %v264_v19, %v9064_v22 }
 0x233   :  { %4004 = vmatpush.msra.mxu1 %v8638_v37  ;;  %4108 = vmatpush.msra.mxu3 %v4107_v46  ;;  %v761_v37 = vpop.f32.mrf.mxu3  ;;  %v4125_v46 = vand.u32 4294901760, %v4124_v33  ;;  %v4136_v59 = vsub.f32 %v9022_v45, %v10007_v9  ;;  %v9088_v17 = vsub.f32 %v219_v35, %v9062_v30  ;;  %v4142_v33 = vsub.f32 %v9038_v27, %v4141_v21  ;;  %v854_v9 = vpop.f32.mrf.mxu1 }
 0x234   :  { %3965 = vmatpush.msra.mxu0 %v10006_v52  ;;  %4047 = vmatpush.msra.mxu2 %v8947_v49  ;;  %v762_v52 = vadd.f32 %v761_v37, %v661_v60  ;;  %v10009_v8 = vand.u32 4294901760, %v8783_v48  ;;  %v4153_v35 = vand.u32 4294901760, %v9075_v32  ;;  %v9102_v19 = vsub.f32 %v218_v36, %v9077_v20 }
 0x235   :  { %4006 = vmatpush.msra.mxu1 %v8649_v7  ;;  %4114 = vmatpush.msra.mxu3 %v4113_v31  ;;  %v815_v7 = vpop.f32.mrf.mxu0  ;;  %v4131_v31 = vand.u32 4294901760, %v4130_v38  ;;  %v10010_v48 = vand.u32 4294901760, %v8799_v24  ;;  %v4159_v38 = vand.u32 4294901760, %v9088_v17  ;;  %v4066_v36 = vand.u32 4294901760, %v9091_v63 }
 0x236   :  { %3969 = vmatpush.msra.mxu0 %v10008_v26  ;;  %4049 = vmatpush.msra.mxu2 %v8964_v1  ;;  %v816_v60 = vadd.f32 %v815_v7, %v762_v52  ;;  %v4154_v24 = vsub.f32 %v9075_v32, %v4153_v35 }
 0x237   :  { %4008 = vmatpush.msra.mxu1 %v8674_v47  ;;  %4120 = vmatpush.msra.mxu3 %v4119_v3  ;;  %v4137_v47 = vand.u32 4294901760, %v4136_v59  ;;  %v4148_v3 = vsub.f32 %v9054_v4, %v4147_v55  ;;  %v4165_v59 = vand.u32 4294901760, %v9102_v19  ;;  %v923_v26 = vpop.f32.mrf.mxu2 }
 0x238   :  { %3973 = vmatpush.msra.mxu0 %v10009_v8  ;;  %4051 = vmatpush.msra.mxu2 %v8981_v56  ;;  %v855_v37 = vadd.f32 %v854_v9, %v816_v60 }
 0x239   :  { %4010 = vmatpush.msra.mxu1 %v8690_v39  ;;  %4126 = vmatpush.msra.mxu3 %v4125_v46  ;;  %v4143_v39 = vand.u32 4294901760, %v4142_v33  ;;  %v10011_v46 = vand.u32 4294901760, %v8817_v28  ;;  %v4149_v7 = vand.u32 4294901760, %v4148_v3  ;;  %v4160_v28 = vsub.f32 %v9088_v17, %v4159_v38 }
 0x23a   :  { %3977 = vmatpush.msra.mxu0 %v10010_v48  ;;  %4053 = vmatpush.msra.mxu2 %v8996_v18  ;;  %v924_v33 = vadd.f32 %v923_v26, %v855_v37  ;;  %v4166_v52 = vsub.f32 %v9102_v19, %v4165_v59  ;;  %v10014_v48 = vand.u32 4294901760, %v8861_v58  ;;  %v10015_v37 = vand.u32 4294901760, %v8885_v50 }
 0x23b   :  { %4012 = vmatpush.msra.mxu1 %v8704_v13  ;;  %4132 = vmatpush.msra.mxu3 %v4131_v31  ;;  %v10012_v13 = vand.u32 4294901760, %v8837_v10  ;;  %v4067_v31 = vsub.f32 %v9091_v63, %v4066_v36  ;;  %v4155_v10 = vand.u32 4294901760, %v4154_v24  ;;  %v960_v8 = vpop.f32.mrf.mxu3  ;;  %v1102_v60 = vpop.f32.mrf.mxu1 }
 0x23c   :  { %3981 = vmatpush.msra.mxu0 %v10011_v46  ;;  %4055 = vmatpush.msra.mxu2 %v9011_v62  ;;  %v4167_v3 = vand.u32 4294901760, %v4166_v52  ;;  %v10017_v46 = vld [vmem:[#allocation11_spill] sm:$0xff]  ;;  %v265_v52 = vld.sshfl [vmem:[#allocation1 + $0x20] sm:$0xff pattern:$0x73625140] }
 0x23d   :  { %4014 = vmatpush.msra.mxu1 %v8720_v42  ;;  %4138 = vmatpush.msra.mxu3 %v4137_v47  ;;  %v10013_v42 = vand.u32 4294901760, %v8868_v25  ;;  %v4068_v9 = vand.u32 4294901760, %v4067_v31  ;;  %v1001_v47 = vpop.f32.mrf.mxu0  ;;  %v961_v25 = vadd.f32 %v960_v8, %v924_v33 }
 0x23e   :  { %3985 = vmatpush.msra.mxu0 %v10012_v13  ;;  %4057 = vmatpush.msra.mxu2 %v9024_v57 }
 0x23f   :  { %4016 = vmatpush.msra.mxu1 %v8735_v12  ;;  %4144 = vmatpush.msra.mxu3 %v4143_v39  ;;  %v4161_v12 = vand.u32 4294901760, %v4160_v28 }
 0x240   :  { %3989 = vmatpush.msra.mxu0 %v10013_v42  ;;  %4059 = vmatpush.msra.mxu2 %v9046_v43 }
 0x241   :  { %4018 = vmatpush.msra.mxu1 %v8750_v2  ;;  %4150 = vmatpush.msra.mxu3 %v4149_v7  ;;  %v1002_v2 = vadd.f32 %v1001_v47, %v961_v25  ;;  %v279_v47 = vsel %vm278_vm0, %v265_v52, 0 }
 0x242   :  { %3991 = vmatmul.f32.vlgmr.msra.gmra.mxu0 %v8761_v11  ;;  %4061 = vmatpush.msra.mxu2 %v9062_v30 }
 0x243   :  { %4176 = vmatpush.msrb.mxu0 %v8861_v58  ;;  %4020 = vmatpush.msra.mxu1 %v8767_v61  ;;  %v1103_v39 = vadd.f32 %v1102_v60, %v1002_v2  ;;  %v1156_v61 = vpop.f32.mrf.mxu2  ;;  %v1195_v24 = vpop.f32.mrf.mxu3 }
 0x244   :  { %4156 = vmatpush.msra.mxu3 %v4155_v10  ;;  %4063 = vmatpush.msra.mxu2 %v9077_v20  ;;  %v10027_v10 = vand.u32 4294901760, %v9022_v45 }
 0x245   :  { %4179 = vmatpush.msrb.mxu0 %v8885_v50  ;;  %4022 = vmatpush.msra.mxu1 %v8779_v51  ;;  %v10016_v51 = vld [vmem:[#allocation10_spill] sm:$0xff]  ;;  %v1157_v58 = vadd.f32 %v1156_v61, %v1103_v39  ;;  %v10019_v50 = vand.u32 4294901760, %v8906_v54  ;;  %v1264_v26 = vpop.f32.mrf.mxu0 }
 0x246   :  { %4162 = vmatpush.msra.mxu3 %v4161_v12  ;;  %4069 = vmatmul.f32.vlgmr.msra.gmra.mxu2 %v4068_v9 }
 0x247   :  { %4182 = vmatpush.msrb.mxu0 %v8898_v53  ;;  %4270 = vmatpush.msrb.mxu2 %v10014_v48  ;;  %v1196_v7 = vadd.f32 %v1195_v24, %v1157_v58 }
 0x248   :  { %4024 = vmatpush.msra.mxu1 %v8806_v15  ;;  %4168 = vmatpush.msra.mxu3 %v4167_v3  ;;  %v10018_v15 = vand.u32 4294901760, %v8898_v53  ;;  %v1301_v53 = vpop.f32.mrf.mxu1 }
 0x249   :  { %4170 = vmatmul.f32.vlgmr.msra.gmra.mxu3 %v9064_v22  ;;  %4185 = vmatpush.msrb.mxu0 %v8906_v54  ;;  %v1265_v13 = vadd.f32 %v1264_v26, %v1196_v7  ;;  %v10021_v54 = vand.u32 4294901760, %v8945_v41 }
 0x24a   :  { %4274 = vmatpush.msrb.mxu2 %v10015_v37  ;;  %4337 = vmatpush.msrb.mxu3 %v10016_v51 }
 0x24b   :  { %4026 = vmatpush.msra.mxu1 %v10017_v46  ;;  %4188 = vmatpush.msrb.mxu0 %v8920_v0  ;;  %v1342_v28 = vpop.f32.mrf.mxu2  ;;  %v1443_v31 = vpop.f32.mrf.mxu3 }
 0x24c   :  { %4028 = vmatmul.f32.vlgmr.msra.gmra.mxu1 %v8761_v11  ;;  %4278 = vmatpush.msrb.mxu2 %v10018_v15  ;;  %v10020_v11 = vand.u32 4294901760, %v8920_v0  ;;  %v10022_v0 = vand.u32 4294901760, %v8962_v23 }
 0x24d   :  { %4229 = vmatpush.msrb.mxu1 %v10016_v51  ;;  %4339 = vmatpush.msrb.mxu3 %v8847_v44 }
 0x24e   :  { %4191 = vmatpush.msrb.mxu0 %v8945_v41  ;;  %4282 = vmatpush.msrb.mxu2 %v10019_v50 }
 0x24f   :  { %4231 = vmatpush.msrb.mxu1 %v8847_v44  ;;  %4341 = vmatpush.msrb.mxu3 %v8870_v29  ;;  %v1302_v44 = vadd.f32 %v1301_v53, %v1265_v13 }
 0x250   :  { %4194 = vmatpush.msrb.mxu0 %v8962_v23  ;;  %4286 = vmatpush.msrb.mxu2 %v10020_v11  ;;  %v10025_v23 = vand.u32 4294901760, %v8994_v34  ;;  %v1536_v8 = vpop.f32.mrf.mxu1 }
 0x251   :  { %4233 = vmatpush.msrb.mxu1 %v8870_v29  ;;  %4343 = vmatpush.msrb.mxu3 %v8878_v14  ;;  %v10023_v29 = vand.u32 4294901760, %v8979_v40  ;;  %v1343_v41 = vadd.f32 %v1342_v28, %v1302_v44 }
 0x252   :  { %4197 = vmatpush.msrb.mxu0 %v8979_v40  ;;  %4290 = vmatpush.msrb.mxu2 %v10021_v54  ;;  %v240_v40 = vld [vmem:[%s9712_s1 + $0x630] sm:$0xff] }
 0x253   :  { %4235 = vmatpush.msrb.mxu1 %v8878_v14  ;;  %4345 = vmatpush.msrb.mxu3 %v8890_v5  ;;  %v10024_v14 = vld [vmem:[#allocation12_spill] sm:$0xff]  ;;  %v1444_v42 = vadd.f32 %v1443_v31, %v1343_v41 }
 0x254   :  { %4200 = vmatpush.msrb.mxu0 %v8994_v34  ;;  %4294 = vmatpush.msrb.mxu2 %v10022_v0  ;;  %v1497_v34 = vpop.f32.mrf.mxu0 }
 0x255   :  { %4237 = vmatpush.msrb.mxu1 %v8890_v5  ;;  %4347 = vmatpush.msrb.mxu3 %v8913_v6  ;;  %v241_v5 = vld [vmem:[%s9712_s1 + $0x638] sm:$0xff]  ;;  %v1498_v12 = vadd.f32 %v1497_v34, %v1444_v42 }
 0x256   :  { %4203 = vmatpush.msrb.mxu0 %v9009_v16  ;;  %4298 = vmatpush.msrb.mxu2 %v10023_v29  ;;  %v9203_v33 = vand.u32 4294901760, %v241_v5 }
 0x257   :  { %4239 = vmatpush.msrb.mxu1 %v8913_v6  ;;  %4349 = vmatpush.msrb.mxu3 %v10024_v14  ;;  %v10026_v6 = vand.u32 4294901760, %v9009_v16  ;;  %v239_v16 = vld [vmem:[%s9712_s1 + $0x628] sm:$0xff]  ;;  %v1537_v25 = vadd.f32 %v1536_v8, %v1498_v12 }
 0x258   :  { %4206 = vmatpush.msrb.mxu0 %v9022_v45  ;;  %4302 = vmatpush.msrb.mxu2 %v10025_v23  ;;  %v238_v45 = vld [vmem:[%s9712_s1 + $0x620] sm:$0xff]  ;;  %v9223_v9 = vand.u32 4294901760, %v239_v16  ;;  %v1784_v50 = vpop.f32.mrf.mxu1 }
 0x259   :  { %4241 = vmatpush.msrb.mxu1 %v10024_v14  ;;  %4351 = vmatpush.msrb.mxu3 %v8947_v49 }
 0x25a   :  { %4209 = vmatpush.msrb.mxu0 %v9038_v27  ;;  %4306 = vmatpush.msrb.mxu2 %v10026_v6  ;;  %v237_v27 = vld [vmem:[%s9712_s1 + $0x618] sm:$0xff]  ;;  %v9256_v2 = vsub.f32 %v239_v16, %v9223_v9 }
 0x25b   :  { %4243 = vmatpush.msrb.mxu1 %v8947_v49  ;;  %4353 = vmatpush.msrb.mxu3 %v8964_v1  ;;  %v9213_v49 = vand.u32 4294901760, %v240_v40 }
 0x25c   :  { %4212 = vmatpush.msrb.mxu0 %v9054_v4  ;;  %4310 = vmatpush.msrb.mxu2 %v10027_v10  ;;  %v236_v4 = vld [vmem:[%s9712_s1 + $0x610] sm:$0xff]  ;;  %v4428_v51 = vand.u32 4294901760, %v9256_v2 }
 0x25d   :  { %4245 = vmatpush.msrb.mxu1 %v8964_v1  ;;  %4355 = vmatpush.msrb.mxu3 %v8981_v56  ;;  %v9226_v1 = vsub.f32 %v241_v5, %v9203_v33  ;;  %v9240_v3 = vsub.f32 %v240_v40, %v9213_v49 }
 0x25e   :  { %4215 = vmatpush.msrb.mxu0 %v9075_v32  ;;  %4314 = vmatpush.msrb.mxu2 %v4141_v21  ;;  %v9237_v21 = vand.u32 4294901760, %v238_v45  ;;  %v235_v32 = vld [vmem:[%s9712_s1 + $0x608] sm:$0xff]  ;;  %v4429_v53 = vsub.f32 %v9256_v2, %v4428_v51 }
 0x25f   :  { %4247 = vmatpush.msrb.mxu1 %v8981_v56  ;;  %4357 = vmatpush.msrb.mxu3 %v8996_v18  ;;  %v1605_v56 = vpop.f32.mrf.mxu2  ;;  %v4416_v60 = vand.u32 4294901760, %v9226_v1  ;;  %v4422_v39 = vand.u32 4294901760, %v9240_v3  ;;  %v9283_v37 = vand.u32 4294901760, %v235_v32 }
 0x260   :  { %4218 = vmatpush.msrb.mxu0 %v9088_v17  ;;  %4318 = vmatpush.msrb.mxu2 %v4147_v55  ;;  %v9248_v55 = vand.u32 4294901760, %v279_v47  ;;  %v1606_v48 = vadd.f32 %v1605_v56, %v1537_v25  ;;  %v9270_v61 = vsub.f32 %v238_v45, %v9237_v21  ;;  %v4430_v14 = vand.u32 4294901760, %v4429_v53  ;;  %v1983_v8 = vpop.f32.mrf.mxu1 }
 0x261   :  { %4249 = vmatpush.msrb.mxu1 %v8996_v18  ;;  %4359 = vmatpush.msrb.mxu3 %v9011_v62  ;;  %v9252_v18 = vand.u32 4294901760, %v237_v27  ;;  %v9315_v54 = vsub.f32 %v235_v32, %v9283_v37 }
 0x262   :  { %4221 = vmatpush.msrb.mxu0 %v9102_v19  ;;  %4322 = vmatpush.msrb.mxu2 %v4153_v35  ;;  %v9266_v35 = vand.u32 4294901760, %v236_v4  ;;  %v9276_v17 = vsub.f32 %v279_v47, %v9248_v55  ;;  %v234_v19 = vld [vmem:[%s9712_s1 + $0x600] sm:$0xff]  ;;  %v4434_v58 = vand.u32 4294901760, %v9270_v61 }
 0x263   :  { %4251 = vmatpush.msrb.mxu1 %v9011_v62  ;;  %4361 = vmatpush.msrb.mxu3 %v9024_v57  ;;  %v1642_v62 = vpop.f32.mrf.mxu3  ;;  %v9287_v46 = vsub.f32 %v237_v27, %v9252_v18  ;;  %v9305_v26 = vand.u32 4294901760, %v234_v19 }
 0x264   :  { %4224 = vmatmul.f32.vlgmr.msrb.gmra.mxu0 %v9091_v63  ;;  %4326 = vmatpush.msrb.mxu2 %v4159_v38  ;;  %v1683_v38 = vpop.f32.mrf.mxu0  ;;  %v9301_v15 = vsub.f32 %v236_v4, %v9266_v35  ;;  %v4399_v7 = vand.u32 4294901760, %v9276_v17  ;;  %v4435_v44 = vsub.f32 %v9270_v61, %v4434_v58  ;;  %v4452_v63 = vand.u32 4294901760, %v9315_v54 }
 0x265   :  { %4382 = vmatpush.msra.mxu0 %v9203_v33  ;;  %4253 = vmatpush.msrb.mxu1 %v9024_v57  ;;  %v4417_v57 = vsub.f32 %v9226_v1, %v4416_v60  ;;  %v4440_v13 = vand.u32 4294901760, %v9287_v46 }
 0x266   :  { %4363 = vmatpush.msrb.mxu3 %v9046_v43  ;;  %4330 = vmatpush.msrb.mxu2 %v4165_v59  ;;  %v1643_v59 = vadd.f32 %v1642_v62, %v1606_v48  ;;  %v4446_v0 = vand.u32 4294901760, %v9301_v15  ;;  %v4400_v29 = vsub.f32 %v9276_v17, %v4399_v7  ;;  %v4436_v23 = vand.u32 4294901760, %v4435_v44 }
 0x267   :  { %4384 = vmatpush.msra.mxu0 %v9213_v49  ;;  %4255 = vmatpush.msrb.mxu1 %v9046_v43  ;;  %v4423_v43 = vsub.f32 %v9240_v3, %v4422_v39  ;;  %v4418_v11 = vand.u32 4294901760, %v4417_v57  ;;  %v1838_v28 = vpop.f32.mrf.mxu2  ;;  %v4441_v41 = vsub.f32 %v9287_v46, %v4440_v13  ;;  %v4453_v42 = vsub.f32 %v9315_v54, %v4452_v63 }
 0x268   :  { %4365 = vmatpush.msrb.mxu3 %v9062_v30  ;;  %4332 = vmatmul.f32.vlgmr.msrb.gmra.mxu2 %v9064_v22  ;;  %v1684_v24 = vadd.f32 %v1683_v38, %v1643_v59  ;;  %v4447_v5 = vsub.f32 %v9301_v15, %v4446_v0  ;;  %v4401_v6 = vand.u32 4294901760, %v4400_v29 }
 0x269   :  { %4386 = vmatpush.msra.mxu0 %v9223_v9  ;;  %4477 = vmatpush.msra.mxu2 %v9226_v1  ;;  %v4442_v34 = vand.u32 4294901760, %v4441_v41  ;;  %v4454_v47 = vand.u32 4294901760, %v4453_v42 }
 0x26a   :  { %4257 = vmatpush.msrb.mxu1 %v9062_v30  ;;  %4367 = vmatpush.msrb.mxu3 %v9077_v20  ;;  %v1785_v30 = vadd.f32 %v1784_v50, %v1684_v24  ;;  %v4448_v52 = vand.u32 4294901760, %v4447_v5 }
 0x26b   :  { %4369 = vmatmul.f32.vlgmr.msrb.gmra.mxu3 %v9064_v22  ;;  %4388 = vmatpush.msra.mxu0 %v9237_v21  ;;  %v4424_v22 = vand.u32 4294901760, %v4423_v43  ;;  %v1877_v31 = vpop.f32.mrf.mxu3 }
 0x26c   :  { %4480 = vmatpush.msra.mxu2 %v9240_v3  ;;  %4514 = vmatpush.msra.mxu3 %v9203_v33  ;;  %v1946_v10 = vpop.f32.mrf.mxu0 }
 0x26d   :  { %4259 = vmatpush.msrb.mxu1 %v9077_v20  ;;  %4390 = vmatpush.msra.mxu0 %v9252_v18  ;;  %v9332_v20 = vsub.f32 %v234_v19, %v9305_v26 }
 0x26e   :  { %4263 = vmatmul.f32.vlgmr.msrb.gmra.mxu1 %v4066_v36  ;;  %4483 = vmatpush.msra.mxu2 %v9256_v2  ;;  %v1839_v36 = vadd.f32 %v1838_v28, %v1785_v30  ;;  %v2218_v2 = vpop.f32.mrf.mxu1 }
 0x26f   :  { %4419 = vmatpush.msra.mxu1 %v4418_v11  ;;  %4516 = vmatpush.msra.mxu3 %v9213_v49  ;;  %v4458_v40 = vand.u32 4294901760, %v9332_v20  ;;  %v2024_v27 = vpop.f32.mrf.mxu2 }
 0x270   :  { %4392 = vmatpush.msra.mxu0 %v9266_v35  ;;  %4486 = vmatpush.msra.mxu2 %v9270_v61  ;;  %v1878_v16 = vadd.f32 %v1877_v31, %v1839_v36 }
 0x271   :  { %4425 = vmatpush.msra.mxu1 %v4424_v22  ;;  %4518 = vmatpush.msra.mxu3 %v9223_v9  ;;  %v4459_v12 = vsub.f32 %v9332_v20, %v4458_v40 }
 0x272   :  { %4394 = vmatpush.msra.mxu0 %v9283_v37  ;;  %4489 = vmatpush.msra.mxu2 %v9287_v46  ;;  %v1947_v45 = vadd.f32 %v1946_v10, %v1878_v16 }
 0x273   :  { %4431 = vmatpush.msra.mxu1 %v4430_v14  ;;  %4520 = vmatpush.msra.mxu3 %v9237_v21  ;;  %v4460_v56 = vand.u32 4294901760, %v4459_v12  ;;  %v2125_v3 = vpop.f32.mrf.mxu3 }
 0x274   :  { %4396 = vmatpush.msra.mxu0 %v9305_v26  ;;  %4492 = vmatpush.msra.mxu2 %v9301_v15  ;;  %v1984_v25 = vadd.f32 %v1983_v8, %v1947_v45  ;;  %v2179_v4 = vpop.f32.mrf.mxu0 }
 0x275   :  { %4437 = vmatpush.msra.mxu1 %v4436_v23  ;;  %4522 = vmatpush.msra.mxu3 %v9252_v18 }
 0x276   :  { %4402 = vmatmul.f32.vlgmr.msra.gmra.mxu0 %v4401_v6  ;;  %4495 = vmatpush.msra.mxu2 %v9315_v54  ;;  %v2025_v1 = vadd.f32 %v2024_v27, %v1984_v25 }
 0x277   :  { %4547 = vmatpush.msrb.mxu0 %v4416_v60  ;;  %4443 = vmatpush.msra.mxu1 %v4442_v34  ;;  %v2287_v62 = vpop.f32.mrf.mxu2 }
 0x278   :  { %4524 = vmatpush.msra.mxu3 %v9266_v35  ;;  %4498 = vmatpush.msra.mxu2 %v9332_v20  ;;  %v2126_v60 = vadd.f32 %v2125_v3, %v2025_v1 }
 0x279   :  { %4551 = vmatpush.msrb.mxu0 %v4422_v39  ;;  %4449 = vmatpush.msra.mxu1 %v4448_v52 }
 0x27a   :  { %4526 = vmatpush.msra.mxu3 %v9283_v37  ;;  %4501 = vmatmul.f32.vlgmr.msra.gmra.mxu2 %v9276_v17  ;;  %v2180_v48 = vadd.f32 %v2179_v4, %v2126_v60  ;;  %v2466_v17 = vpop.f32.mrf.mxu1 }
 0x27b   :  { %4555 = vmatpush.msrb.mxu0 %v4428_v51  ;;  %4455 = vmatpush.msra.mxu1 %v4454_v47  ;;  %v2324_v39 = vpop.f32.mrf.mxu3 }
 0x27c   :  { %4528 = vmatpush.msra.mxu3 %v9305_v26  ;;  %v2219_v32 = vadd.f32 %v2218_v2, %v2180_v48  ;;  %v2365_v61 = vpop.f32.mrf.mxu0 }
 0x27d   :  { %4532 = vmatmul.f32.vlgmr.msra.gmra.mxu3 %v4399_v7  ;;  %4559 = vmatpush.msrb.mxu0 %v4434_v58 }
 0x27e   :  { %4461 = vmatpush.msra.mxu1 %v4460_v56 }
 0x27f   :  { %4463 = vmatmul.f32.vlgmr.msra.gmra.mxu1 %v9248_v55  ;;  %4563 = vmatpush.msrb.mxu0 %v4440_v13 }
 0x280   :  { %4590 = vmatpush.msrb.mxu1 %v9203_v33  ;;  %v2288_v33 = vadd.f32 %v2287_v62, %v2219_v32 }
 0x281   :  { %4567 = vmatpush.msrb.mxu0 %v4446_v0 }
 0x282   :  { %4592 = vmatpush.msrb.mxu1 %v9213_v49  ;;  %v2325_v49 = vadd.f32 %v2324_v39, %v2288_v33  ;;  %v2665_v19 = vpop.f32.mrf.mxu1  ;;  %v4611_v33 = vld [vmem:[%s9714_s3] sm:$0xff] }
 0x283   :  { %4571 = vmatpush.msrb.mxu0 %v4452_v63  ;;  %v2559_v51 = vpop.f32.mrf.mxu3 }
 0x284   :  { %4594 = vmatpush.msrb.mxu1 %v9223_v9  ;;  %v2366_v9 = vadd.f32 %v2365_v61, %v2325_v49  ;;  %v2628_v46 = vpop.f32.mrf.mxu0  ;;  %v4635_v61 = vand.u32 4294901760, %v4611_v33 }
 0x285   :  { %4575 = vmatpush.msrb.mxu0 %v4458_v40 }
 0x286   :  { %4596 = vmatpush.msrb.mxu1 %v9237_v21  ;;  %4577 = vmatmul.f32.vlgmr.msrb.gmra.mxu0 %v9248_v55  ;;  %v2467_v38 = vadd.f32 %v2466_v17, %v2366_v9  ;;  %v2520_v21 = vpop.f32.mrf.mxu2  ;;  %v4662_v17 = vsub.f32 %v4611_v33, %v4635_v61 }
 0x287   :  { %4636 = vmatpush.msrb.mxu2 %v4635_v61 }
 0x288   :  { %4598 = vmatpush.msrb.mxu1 %v9252_v18  ;;  %v2521_v57 = vadd.f32 %v2520_v21, %v2467_v38  ;;  %v4663_v21 = vand.u32 4294901760, %v4662_v17 }
 0x289   :  { %4689 = vmatpush.msra.mxu2 %v4662_v17 }
 0x28a   :  { %4600 = vmatpush.msrb.mxu1 %v9266_v35  ;;  %v2560_v18 = vadd.f32 %v2559_v51, %v2521_v57  ;;  %v2900_v50 = vpop.f32.mrf.mxu1  ;;  %4738 = vmatpush.msra.mxu0 %v4663_v21 }
 0x28b   :  { %v2807_v15 = vpop.f32.mrf.mxu3 }
 0x28c   :  { %4602 = vmatpush.msrb.mxu1 %v9283_v37  ;;  %v2629_v59 = vadd.f32 %v2628_v46, %v2560_v18  ;;  %v2861_v37 = vpop.f32.mrf.mxu0  ;;  %v4664_v46 = vsub.f32 %v4662_v17, %v4663_v21 }
 0x28e   :  { %4604 = vmatpush.msrb.mxu1 %v9305_v26  ;;  %v2666_v43 = vadd.f32 %v2665_v19, %v2629_v59  ;;  %v2706_v35 = vpop.f32.mrf.mxu2  ;;  %v4665_v19 = vand.u32 4294901760, %v4664_v46 }
 0x28f   :  { %4606 = vmatmul.f32.vlgmr.msrb.gmra.mxu1 %v9248_v55 }
 0x290   :  { %v2707_v58 = vadd.f32 %v2706_v35, %v2666_v43  ;;  %4760 = vmatpush.msra.mxu1 %v4635_v61  ;;  %4666 = vmatpush.msrb.mxu3 %v4665_v19 }
 0x292   :  { %v2808_v24 = vadd.f32 %v2807_v15, %v2707_v58  ;;  %v3148_v30 = vpop.f32.mrf.mxu1  ;;  %4712 = vmatpush.msra.mxu3 %v4635_v61 }
 0x293   :  { %v3006_v55 = vpop.f32.mrf.mxu3 }
 0x294   :  { %v2862_v7 = vadd.f32 %v2861_v37, %v2808_v24  ;;  %v3047_v13 = vpop.f32.mrf.mxu0 }
 0x296   :  { %v2901_v26 = vadd.f32 %v2900_v50, %v2862_v7  ;;  %v2969_v11 = vpop.f32.mrf.mxu2 }
 0x298   :  { %v2970_v53 = vadd.f32 %v2969_v11, %v2901_v26 }
 0x29a   :  { %v3007_v54 = vadd.f32 %v3006_v55, %v2970_v53  ;;  %v3347_v41 = vpop.f32.mrf.mxu1  ;;  %v4782_v53 = vld [vmem:[%s9716_s5 + $0x78] sm:$0xff]  ;;  %v4781_v55 = vld [vmem:[%s9716_s5 + $0x70] sm:$0xff] }
 0x29b   :  { %v3241_v29 = vpop.f32.mrf.mxu3 }
 0x29c   :  { %v3048_v22 = vadd.f32 %v3047_v13, %v3007_v54  ;;  %v3310_v20 = vpop.f32.mrf.mxu0  ;;  %v4780_v13 = vld [vmem:[%s9716_s5 + $0x68] sm:$0xff]  ;;  %v9397_v54 = vand.u32 4294901760, %v4782_v53 }
 0x29e   :  { %v3149_v44 = vadd.f32 %v3148_v30, %v3048_v22  ;;  %v3202_v0 = vpop.f32.mrf.mxu2  ;;  %v9399_v30 = vand.u32 4294901760, %v4781_v55  ;;  %v9401_v22 = vand.u32 4294901760, %v4780_v13  ;;  %4984 = vmatpush.msrb.mxu1 %v9397_v54 }
 0x2a0   :  { %v3203_v28 = vadd.f32 %v3202_v0, %v3149_v44  ;;  %v4779_v44 = vld [vmem:[%s9716_s5 + $0x60] sm:$0xff]  ;;  %v4778_v0 = vld [vmem:[%s9716_s5 + $0x58] sm:$0xff]  ;;  %4986 = vmatpush.msrb.mxu1 %v9399_v30 }
 0x2a2   :  { %v3242_v14 = vadd.f32 %v3241_v29, %v3203_v28  ;;  %v3582_v34 = vpop.f32.mrf.mxu1  ;;  %v9410_v29 = vsub.f32 %v4782_v53, %v9397_v54  ;;  %4988 = vmatpush.msrb.mxu1 %v9401_v22 }
 0x2a3   :  { %v3489_v31 = vpop.f32.mrf.mxu3 }
 0x2a4   :  { %v3311_v63 = vadd.f32 %v3310_v20, %v3242_v14  ;;  %v3543_v6 = vpop.f32.mrf.mxu0  ;;  %v9413_v20 = vsub.f32 %v4781_v55, %v9399_v30  ;;  %v9415_v14 = vand.u32 4294901760, %v4779_v44  ;;  %4931 = vmatpush.msrb.mxu0 %v9410_v29 }
 0x2a6   :  { %v3348_v36 = vadd.f32 %v3347_v41, %v3311_v63  ;;  %v3388_v23 = vpop.f32.mrf.mxu2  ;;  %v4777_v41 = vld [vmem:[%s9716_s5 + $0x50] sm:$0xff]  ;;  %4934 = vmatpush.msrb.mxu0 %v9413_v20  ;;  %4990 = vmatpush.msrb.mxu1 %v9415_v14 }
 0x2a8   :  { %v3389_v5 = vadd.f32 %v3388_v23, %v3348_v36  ;;  %v9421_v36 = vand.u32 4294901760, %v4778_v0  ;;  %v4830_v23 = vand.u32 4294901760, %v9410_v29 }
 0x2aa   :  { %v3490_v40 = vadd.f32 %v3489_v31, %v3389_v5  ;;  %v3830_v47 = vpop.f32.mrf.mxu1  ;;  %v9425_v5 = vsub.f32 %v4780_v13, %v9401_v22  ;;  %v4776_v31 = vld [vmem:[%s9716_s5 + $0x48] sm:$0xff]  ;;  %4992 = vmatpush.msrb.mxu1 %v9421_v36 }
 0x2ab   :  { %v3688_v8 = vpop.f32.mrf.mxu3 }
 0x2ac   :  { %v3544_v42 = vadd.f32 %v3543_v6, %v3490_v40  ;;  %v3729_v12 = vpop.f32.mrf.mxu0  ;;  %v9432_v6 = vand.u32 4294901760, %v4777_v41  ;;  %4937 = vmatpush.msrb.mxu0 %v9425_v5 }
 0x2ae   :  { %v3583_v10 = vadd.f32 %v3582_v34, %v3544_v42  ;;  %v3651_v16 = vpop.f32.mrf.mxu2  ;;  %v4836_v34 = vand.u32 4294901760, %v9413_v20  ;;  %v9436_v42 = vsub.f32 %v4779_v44, %v9415_v14  ;;  %4994 = vmatpush.msrb.mxu1 %v9432_v6 }
 0x2b0   :  { %v3652_v52 = vadd.f32 %v3651_v16, %v3583_v10  ;;  %v9441_v16 = vsub.f32 %v4778_v0, %v9421_v36  ;;  %4940 = vmatpush.msrb.mxu0 %v9436_v42 }
 0x2b2   :  { %v3689_v45 = vadd.f32 %v3688_v8, %v3652_v52  ;;  %v9443_v52 = vand.u32 4294901760, %v4776_v31  ;;  %v4775_v8 = vld [vmem:[%s9716_s5 + $0x40] sm:$0xff]  ;;  %4943 = vmatpush.msrb.mxu0 %v9441_v16 }
 0x2b3   :  { %v3923_v3 = vpop.f32.mrf.mxu3 }
 0x2b4   :  { %v3730_v25 = vadd.f32 %v3729_v12, %v3689_v45  ;;  %v4831_v45 = vsub.f32 %v9410_v29, %v4830_v23  ;;  %4996 = vmatpush.msrb.mxu1 %v9443_v52 }
 0x2b6   :  { %v3831_v27 = vadd.f32 %v3830_v47, %v3730_v25  ;;  %v3884_v56 = vpop.f32.mrf.mxu2  ;;  %v4842_v47 = vand.u32 4294901760, %v9425_v5  ;;  %v9455_v25 = vsub.f32 %v4777_v41, %v9432_v6 }
 0x2b8   :  { %v3885_v1 = vadd.f32 %v3884_v56, %v3831_v27  ;;  %v4774_v27 = vld [vmem:[%s9716_s5 + $0x38] sm:$0xff]  ;;  %v4843_v33 = vsub.f32 %v9425_v5, %v4842_v47  ;;  %4946 = vmatpush.msrb.mxu0 %v9455_v25 }
 0x2ba   :  { %v3924_v60 = vadd.f32 %v3923_v3, %v3885_v1  ;;  %v4837_v1 = vsub.f32 %v9413_v20, %v4836_v34  ;;  %v4848_v3 = vand.u32 4294901760, %v9436_v42 }
 0x2bc   :  { %v4838_v17 = vand.u32 4294901760, %v4837_v1 }
 0x2bf   :  { %v3992_v4 = vpop.f32.mrf.mxu0 }
 0x2c0   :  { %v3993_v48 = vadd.f32 %v3992_v4, %v3924_v60  ;;  %v9464_v4 = vand.u32 4294901760, %v4775_v8  ;;  %v4854_v60 = vand.u32 4294901760, %v9441_v16 }
 0x2c2   :  { %v4855_v46 = vsub.f32 %v9441_v16, %v4854_v60  ;;  %4998 = vmatpush.msrb.mxu1 %v9464_v4 }
 0x2c9   :  { %v4029_v2 = vpop.f32.mrf.mxu1  ;;  %v4070_v62 = vpop.f32.mrf.mxu2 }
 0x2ca   :  { %v4030_v32 = vadd.f32 %v4029_v2, %v3993_v48  ;;  %v9470_v2 = vsub.f32 %v4776_v31, %v9443_v52  ;;  %v4773_v48 = vld [vmem:[%s9716_s5 + $0x30] sm:$0xff]  ;;  %v4772_v31 = vld [vmem:[%s9716_s5 + $0x28] sm:$0xff] }
 0x2cb   :  { %v9489_v21 = vand.u32 4294901760, %v4773_v48 }
 0x2cc   :  { %v4071_v39 = vadd.f32 %v4070_v62, %v4030_v32  ;;  %v4171_v49 = vpop.f32.mrf.mxu3  ;;  %v4832_v62 = vand.u32 4294901760, %v4831_v45  ;;  %4949 = vmatpush.msrb.mxu0 %v9470_v2  ;;  %v4770_v45 = vld [vmem:[%s9716_s5 + $0x18] sm:$0xff] }
 0x2cd   :  { %v9560_v1 = vand.u32 4294901760, %v4770_v45 }
 0x2ce   :  { %v4172_v38 = vadd.f32 %v4171_v49, %v4071_v39  ;;  %v9478_v39 = vand.u32 4294901760, %v4774_v27  ;;  %v4860_v49 = vand.u32 4294901760, %v9455_v25 }
 0x2d0   :  { %v9498_v19 = vsub.f32 %v4774_v27, %v9478_v39  ;;  %5000 = vmatpush.msrb.mxu1 %v9478_v39 }
 0x2d2   :  { %5002 = vmatpush.msrb.mxu1 %v9489_v21 }
 0x2e1   :  { %v4225_v9 = vpop.f32.mrf.mxu0 }
 0x2e2   :  { %v4226_v51 = vadd.f32 %v4225_v9, %v4172_v38  ;;  %v4849_v9 = vsub.f32 %v9436_v42, %v4848_v3  ;;  %v9487_v38 = vsub.f32 %v4775_v8, %v9464_v4 }
 0x2e4   :  { %4952 = vmatpush.msrb.mxu0 %v9487_v38 }
 0x2e6   :  { %4955 = vmatpush.msrb.mxu0 %v9498_v19 }
 0x2eb   :  { %v4264_v57 = vpop.f32.mrf.mxu1  ;;  %v4333_v59 = vpop.f32.mrf.mxu2 }
 0x2ec   :  { %v4265_v18 = vadd.f32 %v4264_v57, %v4226_v51  ;;  %v4844_v51 = vand.u32 4294901760, %v4843_v33  ;;  %v9573_v33 = vsub.f32 %v4770_v45, %v9560_v1  ;;  %v5132_v45 = vld [vmem:[%s9718_s7 + $0x18] sm:$0xff] }
 0x2ee   :  { %v4334_v43 = vadd.f32 %v4333_v59, %v4265_v18  ;;  %v4370_v35 = vpop.f32.mrf.mxu3  ;;  %v4866_v18 = vand.u32 4294901760, %v9470_v2 }
 0x2f0   :  { %v4371_v58 = vadd.f32 %v4370_v35, %v4334_v43  ;;  %v4850_v43 = vand.u32 4294901760, %v4849_v9  ;;  %v4861_v35 = vsub.f32 %v9455_v25, %v4860_v49 }
 0x2f3   :  { %v4403_v15 = vpop.f32.mrf.mxu0 }
 0x2f4   :  { %v4404_v24 = vadd.f32 %v4403_v15, %v4371_v58  ;;  %v4872_v58 = vand.u32 4294901760, %v9487_v38  ;;  %v9507_v15 = vsub.f32 %v4773_v48, %v9489_v21  ;;  %v4769_v48 = vld [vmem:[%s9716_s5 + $0x10] sm:$0xff] }
 0x2f6   :  { %v4873_v53 = vsub.f32 %v9487_v38, %v4872_v58  ;;  %v4884_v55 = vand.u32 4294901760, %v9507_v15  ;;  %4958 = vmatpush.msrb.mxu0 %v9507_v15 }
 0x2f8   :  { %v4874_v0 = vand.u32 4294901760, %v4873_v53 }
 0x2fc   :  { %v4464_v37 = vpop.f32.mrf.mxu1 }
 0x2fd   :  { %v4465_v50 = vadd.f32 %v4464_v37, %v4404_v24  ;;  %v4502_v7 = vpop.f32.mrf.mxu2  ;;  %v4856_v24 = vand.u32 4294901760, %v4855_v46 }
 0x2ff   :  { %v4503_v26 = vadd.f32 %v4502_v7, %v4465_v50  ;;  %v4867_v50 = vsub.f32 %v9470_v2, %v4866_v18  ;;  %v4878_v7 = vand.u32 4294901760, %v9498_v19  ;;  %v5136_v2 = vld [vmem:[%s9718_s7 + $0x38] sm:$0xff] }
 0x300   :  { %v4533_v11 = vpop.f32.mrf.mxu3 }
 0x301   :  { %v4534_v28 = vadd.f32 %v4533_v11, %v4503_v26  ;;  %v4862_v11 = vand.u32 4294901760, %v4861_v35  ;;  %v4868_v13 = vand.u32 4294901760, %v4867_v50  ;;  %v4879_v44 = vsub.f32 %v9498_v19, %v4878_v7 }
 0x303   :  { %v4578_v63 = vpop.f32.mrf.mxu0  ;;  %v4880_v41 = vand.u32 4294901760, %v4879_v44 }
 0x304   :  { %v4579_v40 = vadd.f32 %v4578_v63, %v4534_v28  ;;  %v4885_v28 = vsub.f32 %v9507_v15, %v4884_v55 }
 0x306   :  { %v4886_v63 = vand.u32 4294901760, %v4885_v28 }
 0x30c   :  { %v4607_v10 = vpop.f32.mrf.mxu1 }
 0x30d   :  { %v4608_v12 = vadd.f32 %v4607_v10, %v4579_v40  ;;  %v9541_v40 = vand.u32 4294901760, %v4772_v31  ;;  %v4771_v10 = vld [vmem:[%s9716_s5 + $0x20] sm:$0xff] }
 0x30f   :  { %v4610_v56 = vmax.f32 %v4608_v12, 0.0  ;;  %v9547_v8 = vsub.f32 %v4772_v31, %v9541_v40  ;;  %v9549_v12 = vand.u32 4294901760, %v4771_v10  ;;  %5004 = vmatpush.msrb.mxu1 %v9541_v40 }
 0x311   :  { %v4618_v32 = vsel %vm4616_vm1, %v4610_v56, 0  ;;  %v4890_v27 = vand.u32 4294901760, %v9547_v8  ;;  %v9558_v56 = vsub.f32 %v4771_v10, %v9549_v12  ;;  %4961 = vmatpush.msrb.mxu0 %v9547_v8  ;;  %5006 = vmatpush.msrb.mxu1 %v9549_v12 }
 0x312   :  { %v4637_v61 = vand.u32 4294901760, %v4618_v32 }
 0x313   :  { %4964 = vmatpush.msrb.mxu0 %v9558_v56  ;;  %5008 = vmatpush.msrb.mxu1 %v9560_v1 }
 0x314   :  { %v4638_v57 = vsub.f32 %v4618_v32, %v4637_v61  ;;  %4668 = vmatmul.f32.vlgmr.msrb.gmra.mxu3 %v4637_v61  ;;  %4740 = vmatmul.f32.vlgmr.msra.gmra.mxu0 %v4637_v61  ;;  %v4891_v32 = vsub.f32 %v9547_v8, %v4890_v27 }
 0x315   :  { %4762 = vmatmul.f32.vlgmr.msra.gmra.mxu1 %v4637_v61  ;;  %4833 = vmatpush.msrb.mxu3 %v4832_v62  ;;  %v4896_v62 = vand.u32 4294901760, %v9558_v56  ;;  %v9575_v61 = vand.u32 4294901760, %v4769_v48 }
 0x316   :  { %v4639_v59 = vand.u32 4294901760, %v4638_v57  ;;  %v4892_v9 = vand.u32 4294901760, %v4891_v32  ;;  %4967 = vmatpush.msrb.mxu0 %v9573_v33  ;;  %v5160_v32 = vand.u32 4294901760, %v5132_v45 }
 0x317   :  { %4839 = vmatpush.msrb.mxu3 %v4838_v17  ;;  %v4768_v17 = vld [vmem:[%s9716_s5 + $0x8] sm:$0xff]  ;;  %v4907_v46 = vsub.f32 %v4769_v48, %v9575_v61  ;;  %5010 = vmatpush.msrb.mxu1 %v9575_v61 }
 0x318   :  { %v4640_v37 = vsub.f32 %v4638_v57, %v4639_v59 }
 0x319   :  { %4845 = vmatpush.msrb.mxu3 %v4844_v51  ;;  %v4902_v51 = vand.u32 4294901760, %v9573_v33  ;;  %4970 = vmatpush.msrb.mxu0 %v4907_v46 }
 0x31a   :  { %v4641_v26 = vand.u32 4294901760, %v4640_v37 }
 0x31b   :  { %4851 = vmatpush.msrb.mxu3 %v4850_v43  ;;  %v4767_v43 = vld [vmem:[%s9716_s5] sm:$0xff]  ;;  %v4903_v37 = vsub.f32 %v9573_v33, %v4902_v51 }
 0x31c   :  { %4642 = vmatmul.f32.vlgmr.msrb.gmra.mxu2 %v4641_v26  ;;  %4716 = vmatmul.f32.vlgmr.msra.gmra.mxu3 %v4639_v59  ;;  %v4815_v59 = vand.u32 4294901760, %v4768_v17  ;;  %v4817_v50 = vand.u32 4294901760, %v4767_v43 }
 0x31d   :  { %4788 = vmatpush.msrb.mxu2 %v9397_v54  ;;  %4857 = vmatpush.msrb.mxu3 %v4856_v24  ;;  %v4908_v24 = vand.u32 4294901760, %v4907_v46 }
 0x31e   :  { %v4913_v26 = vsub.f32 %v4768_v17, %v4815_v59  ;;  %5012 = vmatpush.msrb.mxu1 %v4815_v59 }
 0x31f   :  { %4790 = vmatpush.msrb.mxu2 %v9399_v30  ;;  %4863 = vmatpush.msrb.mxu3 %v4862_v11  ;;  %v4904_v11 = vand.u32 4294901760, %v4903_v37  ;;  %v4909_v53 = vsub.f32 %v4907_v46, %v4908_v24 }
 0x320   :  { %v4914_v44 = vand.u32 4294901760, %v4913_v26  ;;  %4973 = vmatpush.msrb.mxu0 %v4913_v26  ;;  %5014 = vmatpush.msrb.mxu1 %v4817_v50 }
 0x321   :  { %4792 = vmatpush.msrb.mxu2 %v9401_v22  ;;  %4869 = vmatpush.msrb.mxu3 %v4868_v13  ;;  %v4919_v13 = vsub.f32 %v4767_v43, %v4817_v50 }
 0x323   :  { %4794 = vmatpush.msrb.mxu2 %v9415_v14  ;;  %4875 = vmatpush.msrb.mxu3 %v4874_v0  ;;  %v4910_v0 = vand.u32 4294901760, %v4909_v53  ;;  %v4920_v28 = vand.u32 4294901760, %v4919_v13 }
 0x324   :  { %4692 = vmatmul.f32.vlgmr.msra.gmra.mxu2 %v4638_v57  ;;  %v4897_v57 = vsub.f32 %v9558_v56, %v4896_v62  ;;  %4976 = vmatpush.msrb.mxu0 %v4919_v13 }
 0x325   :  { %4796 = vmatpush.msrb.mxu2 %v9421_v36  ;;  %4881 = vmatpush.msrb.mxu3 %v4880_v41  ;;  %v4915_v41 = vsub.f32 %v4913_v26, %v4914_v44 }
 0x326   :  { %v4898_v35 = vand.u32 4294901760, %v4897_v57  ;;  %v5210_v57 = vsub.f32 %v5132_v45, %v5160_v32 }
 0x327   :  { %4798 = vmatpush.msrb.mxu2 %v9432_v6  ;;  %4887 = vmatpush.msrb.mxu3 %v4886_v63  ;;  %v4921_v63 = vsub.f32 %v4919_v13, %v4920_v28  ;;  %v4916_v31 = vand.u32 4294901760, %v4915_v41 }
 0x328   :  { %v5211_v37 = vand.u32 4294901760, %v5210_v57 }
 0x329   :  { %4800 = vmatpush.msrb.mxu2 %v9443_v52  ;;  %4893 = vmatpush.msrb.mxu3 %v4892_v9  ;;  %v4922_v10 = vand.u32 4294901760, %v4921_v63 }
 0x32a   :  { %v5212_v13 = vsub.f32 %v5210_v57, %v5211_v37 }
 0x32b   :  { %4802 = vmatpush.msrb.mxu2 %v9464_v4  ;;  %4899 = vmatpush.msrb.mxu3 %v4898_v35 }
 0x32c   :  { %v5213_v41 = vand.u32 4294901760, %v5212_v13 }
 0x32d   :  { %4804 = vmatpush.msrb.mxu2 %v9478_v39  ;;  %4905 = vmatpush.msrb.mxu3 %v4904_v11 }
 0x32f   :  { %4806 = vmatpush.msrb.mxu2 %v9489_v21  ;;  %4911 = vmatpush.msrb.mxu3 %v4910_v0 }
 0x331   :  { %4808 = vmatpush.msrb.mxu2 %v9541_v40  ;;  %4917 = vmatpush.msrb.mxu3 %v4916_v31 }
 0x333   :  { %4810 = vmatpush.msrb.mxu2 %v9549_v12  ;;  %4923 = vmatpush.msrb.mxu3 %v4922_v10 }
 0x335   :  { %4812 = vmatpush.msrb.mxu2 %v9560_v1  ;;  %5092 = vmatpush.msra.mxu3 %v9397_v54  ;;  %v5436_v54 = vld [vmem:[%s9715_s4] ss:$0 sm:$0xff]  ;;  %s5393_s4 = sshll.u32 %s9720_s9, 4  ;;  %s5394_s4 = int_to_ptr.hbm [resolvable:$true] %s5393_s4 }
 0x337   :  { %4814 = vmatpush.msrb.mxu2 %v9575_v61  ;;  %5094 = vmatpush.msra.mxu3 %v9399_v30 }
 0x339   :  { %4816 = vmatpush.msrb.mxu2 %v4815_v59  ;;  %5096 = vmatpush.msra.mxu3 %v9401_v22 }
 0x33b   :  { %4818 = vmatpush.msrb.mxu2 %v4817_v50  ;;  %5098 = vmatpush.msra.mxu3 %v9415_v14 }
 0x33d   :  { %5025 = vmatpush.msra.mxu2 %v4830_v23  ;;  %5100 = vmatpush.msra.mxu3 %v9421_v36 }
 0x33f   :  { %5029 = vmatpush.msra.mxu2 %v4836_v34  ;;  %5102 = vmatpush.msra.mxu3 %v9432_v6 }
 0x341   :  { %5033 = vmatpush.msra.mxu2 %v4842_v47  ;;  %5104 = vmatpush.msra.mxu3 %v9443_v52 }
 0x343   :  { %5037 = vmatpush.msra.mxu2 %v4848_v3  ;;  %5106 = vmatpush.msra.mxu3 %v9464_v4 }
 0x345   :  { %5041 = vmatpush.msra.mxu2 %v4854_v60  ;;  %5108 = vmatpush.msra.mxu3 %v9478_v39  ;;  %v9635_v39 = vand.u32 4294901760, %v5136_v2 }
 0x347   :  { %5045 = vmatpush.msra.mxu2 %v4860_v49  ;;  %5110 = vmatpush.msra.mxu3 %v9489_v21  ;;  %v5135_v49 = vld [vmem:[%s9718_s7 + $0x30] sm:$0xff]  ;;  %v9641_v38 = vsub.f32 %v5136_v2, %v9635_v39 }
 0x348   :  { %v9643_v21 = vand.u32 4294901760, %v5135_v49  ;;  %5153 = vmatpush.msra.mxu0 %v9635_v39 }
 0x349   :  { %5049 = vmatpush.msra.mxu2 %v4866_v18  ;;  %5112 = vmatpush.msra.mxu3 %v9541_v40  ;;  %v5134_v18 = vld [vmem:[%s9718_s7 + $0x28] sm:$0xff]  ;;  %v5187_v19 = vand.u32 4294901760, %v9641_v38 }
 0x34a   :  { %v9654_v15 = vand.u32 4294901760, %v5134_v18  ;;  %5155 = vmatpush.msra.mxu0 %v9643_v21 }
 0x34b   :  { %5053 = vmatpush.msra.mxu2 %v4872_v58  ;;  %5114 = vmatpush.msra.mxu3 %v9549_v12  ;;  %v9652_v58 = vsub.f32 %v5135_v49, %v9643_v21 }
 0x34c   :  { %v9664_v8 = vsub.f32 %v5134_v18, %v9654_v15  ;;  %5157 = vmatpush.msra.mxu0 %v9654_v15 }
 0x34d   :  { %5057 = vmatpush.msra.mxu2 %v4878_v7  ;;  %5116 = vmatpush.msra.mxu3 %v9560_v1  ;;  %v5133_v7 = vld [vmem:[%s9718_s7 + $0x20] sm:$0xff]  ;;  %v5193_v40 = vand.u32 4294901760, %v9652_v58 }
 0x34e   :  { %v9666_v12 = vand.u32 4294901760, %v5133_v7  ;;  %v5199_v1 = vand.u32 4294901760, %v9664_v8 }
 0x34f   :  { %5061 = vmatpush.msra.mxu2 %v4884_v55  ;;  %5118 = vmatpush.msra.mxu3 %v9575_v61  ;;  %v5188_v55 = vsub.f32 %v9641_v38, %v5187_v19  ;;  %v5194_v56 = vsub.f32 %v9652_v58, %v5193_v40 }
 0x350   :  { %v5204_v48 = vsub.f32 %v5133_v7, %v9666_v12  ;;  %5159 = vmatpush.msra.mxu0 %v9666_v12  ;;  %v5200_v61 = vsub.f32 %v9664_v8, %v5199_v1 }
 0x351   :  { %5065 = vmatpush.msra.mxu2 %v4890_v27  ;;  %5120 = vmatpush.msra.mxu3 %v4815_v59  ;;  %v5189_v27 = vand.u32 4294901760, %v5188_v55  ;;  %v5195_v33 = vand.u32 4294901760, %v5194_v56 }
 0x352   :  { %v5205_v17 = vand.u32 4294901760, %v5204_v48  ;;  %5161 = vmatpush.msra.mxu0 %v5160_v32  ;;  %v5201_v46 = vand.u32 4294901760, %v5200_v61 }
 0x353   :  { %5069 = vmatpush.msra.mxu2 %v4896_v62  ;;  %5122 = vmatpush.msra.mxu3 %v4817_v50  ;;  %v5131_v62 = vld [vmem:[%s9718_s7 + $0x10] sm:$0xff] }
 0x354   :  { %5190 = vmatpush.msra.mxu1 %v5189_v27  ;;  %v5162_v9 = vand.u32 4294901760, %v5131_v62  ;;  %v5206_v59 = vsub.f32 %v5204_v48, %v5205_v17 }
 0x355   :  { %5073 = vmatpush.msra.mxu2 %v4902_v51  ;;  %v5130_v51 = vld [vmem:[%s9718_s7 + $0x8] sm:$0xff] }
 0x356   :  { %5196 = vmatpush.msra.mxu1 %v5195_v33  ;;  %v5216_v43 = vsub.f32 %v5131_v62, %v5162_v9  ;;  %v5164_v35 = vand.u32 4294901760, %v5130_v51  ;;  %5163 = vmatpush.msra.mxu0 %v5162_v9  ;;  %v5207_v50 = vand.u32 4294901760, %v5206_v59 }
 0x357   :  { %5077 = vmatpush.msra.mxu2 %v4908_v24  ;;  %v5129_v24 = vld [vmem:[%s9718_s7] sm:$0xff] }
 0x358   :  { %5202 = vmatpush.msra.mxu1 %v5201_v46  ;;  %v5217_v26 = vand.u32 4294901760, %v5216_v43  ;;  %v5222_v11 = vsub.f32 %v5130_v51, %v5164_v35  ;;  %v5166_v53 = vand.u32 4294901760, %v5129_v24  ;;  %5165 = vmatpush.msra.mxu0 %v5164_v35 }
 0x359   :  { %5081 = vmatpush.msra.mxu2 %v4914_v44 }
 0x35a   :  { %5208 = vmatpush.msra.mxu1 %v5207_v50  ;;  %v5218_v44 = vsub.f32 %v5216_v43, %v5217_v26  ;;  %v5223_v0 = vand.u32 4294901760, %v5222_v11  ;;  %5167 = vmatpush.msra.mxu0 %v5166_v53 }
 0x35b   :  { %5085 = vmatpush.msra.mxu2 %v4920_v28  ;;  %v5228_v28 = vsub.f32 %v5129_v24, %v5166_v53 }
 0x35c   :  { %v5219_v63 = vand.u32 4294901760, %v5218_v44  ;;  %v5224_v31 = vsub.f32 %v5222_v11, %v5223_v0  ;;  %5214 = vmatpush.msra.mxu1 %v5213_v41 }
 0x35d   :  { %v5229_v10 = vand.u32 4294901760, %v5228_v28 }
 0x35e   :  { %5220 = vmatpush.msra.mxu1 %v5219_v63 }
 0x391   :  { %v4741_v6 = vpop.f32.mrf.mxu0 }
 0x392   :  { %v4763_v42 = vpop.f32.mrf.mxu1 }
 0x397   :  { %v4669_v30 = vpop.f32.mrf.mxu3 }
 0x39f   :  { %v4643_v22 = vpop.f32.mrf.mxu2  ;;  %v4717_v23 = vpop.f32.mrf.mxu3 }
 0x3a0   :  { %v4644_v29 = vadd.f32 %v5436_v54, %v4643_v22  ;;  %v5225_v54 = vand.u32 4294901760, %v5224_v31 }
 0x3a2   :  { %v4670_v20 = vadd.f32 %v4669_v30, %v4644_v29  ;;  %v5230_v30 = vsub.f32 %v5228_v28, %v5229_v10  ;;  %5226 = vmatpush.msra.mxu1 %v5225_v54  ;;  %v5437_v29 = vld [vmem:[%s9717_s6] ss:$0 sm:$0xff] }
 0x3a4   :  { %v5231_v22 = vand.u32 4294901760, %v5230_v30 }
 0x3a6   :  { %5232 = vmatpush.msra.mxu1 %v5231_v22 }
 0x3a7   :  { %v4693_v14 = vpop.f32.mrf.mxu2 }
 0x3a8   :  { %v4694_v36 = vadd.f32 %v4693_v14, %v4670_v20 }
 0x3aa   :  { %v4718_v5 = vadd.f32 %v4717_v23, %v4694_v36 }
 0x3ac   :  { %v4742_v34 = vadd.f32 %v4741_v6, %v4718_v5 }
 0x3ae   :  { %v4764_v16 = vadd.f32 %v4763_v42, %v4742_v34 }
 0x3b0   :  { %v4766_v52 = vmax.f32 %v4764_v16, 0.0 }
 0x3b2   :  { %5381 = vst [vmem:[#allocation3] sm:$0x3] %v4766_v52  ;;  %v4819_v47 = vand.u32 4294901760, %v4766_v52 }
 0x3b3   :  { %5396 = dma.vmem_to_hbm [thread:$0]  %s5392_s24, 32, %s5394_s4, [#allocation4]  }
 0x3b4   :  { %4925 = vmatmul.f32.vlgmr.msrb.gmra.mxu3 %v4819_v47  ;;  %v4820_v25 = vsub.f32 %v4766_v52, %v4819_v47 }
 0x3b5   :  { %5361 = vmatpush.msrb.mxu3 %v9635_v39 }
 0x3b6   :  { %4979 = vmatmul.f32.vlgmr.msrb.gmra.mxu0 %v4820_v25  ;;  %v4821_v3 = vand.u32 4294901760, %v4820_v25 }
 0x3b7   :  { %5363 = vmatpush.msrb.mxu3 %v9643_v21  ;;  %5248 = vmatpush.msrb.mxu0 %v9641_v38 }
 0x3b8   :  { %5018 = vmatmul.f32.vlgmr.msrb.gmra.mxu1 %v4821_v3  ;;  %v4822_v4 = vsub.f32 %v4820_v25, %v4821_v3 }
 0x3b9   :  { %5365 = vmatpush.msrb.mxu3 %v9654_v15  ;;  %5251 = vmatpush.msrb.mxu0 %v9652_v58 }
 0x3ba   :  { %v4823_v60 = vand.u32 4294901760, %v4822_v4  ;;  %5285 = vmatpush.msrb.mxu1 %v9635_v39 }
 0x3bb   :  { %5367 = vmatpush.msrb.mxu3 %v9666_v12  ;;  %5254 = vmatpush.msrb.mxu0 %v9664_v8 }
 0x3bc   :  { %4824 = vmatmul.f32.vlgmr.msrb.gmra.mxu2 %v4823_v60  ;;  %5124 = vmatmul.f32.vlgmr.msra.gmra.mxu3 %v4819_v47 }
 0x3bd   :  { %5318 = vmatpush.msrb.mxu2 %v5187_v19  ;;  %5369 = vmatpush.msrb.mxu3 %v5160_v32 }
 0x3be   :  { %5257 = vmatpush.msrb.mxu0 %v5204_v48  ;;  %5287 = vmatpush.msrb.mxu1 %v9643_v21  ;;  %v5438_v21 = vld [vmem:[%s9719_s8] ss:$0 sm:$0xff] }
 0x3bf   :  { %5322 = vmatpush.msrb.mxu2 %v5193_v40  ;;  %5371 = vmatpush.msrb.mxu3 %v5162_v9 }
 0x3c0   :  { %5260 = vmatpush.msrb.mxu0 %v5210_v57  ;;  %5289 = vmatpush.msrb.mxu1 %v9654_v15 }
 0x3c1   :  { %5326 = vmatpush.msrb.mxu2 %v5199_v1  ;;  %5373 = vmatpush.msrb.mxu3 %v5164_v35 }
 0x3c2   :  { %5263 = vmatpush.msrb.mxu0 %v5216_v43  ;;  %5291 = vmatpush.msrb.mxu1 %v9666_v12 }
 0x3c3   :  { %5330 = vmatpush.msrb.mxu2 %v5205_v17  ;;  %5375 = vmatpush.msrb.mxu3 %v5166_v53 }
 0x3c4   :  { %5087 = vmatmul.f32.vlgmr.msra.gmra.mxu2 %v4819_v47  ;;  %5266 = vmatpush.msrb.mxu0 %v5222_v11 }
 0x3c5   :  { %5334 = vmatpush.msrb.mxu2 %v5211_v37  ;;  %5293 = vmatpush.msrb.mxu1 %v5160_v32 }
 0x3c6   :  { %5269 = vmatpush.msrb.mxu0 %v5228_v28 }
 0x3c7   :  { %5338 = vmatpush.msrb.mxu2 %v5217_v26  ;;  %5295 = vmatpush.msrb.mxu1 %v5162_v9 }
 0x3c9   :  { %5342 = vmatpush.msrb.mxu2 %v5223_v0  ;;  %5297 = vmatpush.msrb.mxu1 %v5164_v35 }
 0x3cb   :  { %5346 = vmatpush.msrb.mxu2 %v5229_v10  ;;  %5299 = vmatpush.msrb.mxu1 %v5166_v53 }
 0x433   :  { %v4980_v5 = vpop.f32.mrf.mxu0 }
 0x435   :  { %v5019_v34 = vpop.f32.mrf.mxu1 }
 0x437   :  { %v4926_v20 = vpop.f32.mrf.mxu3 }
 0x43f   :  { %v4825_v14 = vpop.f32.mrf.mxu2  ;;  %v5125_v47 = vpop.f32.mrf.mxu3 }
 0x440   :  { %v4826_v36 = vadd.f32 %v5437_v29, %v4825_v14 }
 0x442   :  { %v4927_v23 = vadd.f32 %v4926_v20, %v4826_v36 }
 0x444   :  { %v4981_v6 = vadd.f32 %v4980_v5, %v4927_v23 }
 0x446   :  { %v5020_v42 = vadd.f32 %v5019_v34, %v4981_v6 }
 0x447   :  { %v5088_v16 = vpop.f32.mrf.mxu2 }
 0x448   :  { %v5089_v52 = vadd.f32 %v5088_v16, %v5020_v42 }
 0x44a   :  { %v5126_v25 = vadd.f32 %v5125_v47, %v5089_v52 }
 0x44c   :  { %v5128_v3 = vmax.f32 %v5126_v25, 0.0 }
 0x44e   :  { %v5142_v4 = vsel %vm278_vm0, %v5128_v3, 0  ;;  %5383 = vst.msk [vmem:[#allocation5] sm:$0x3] %vm5382_vm2, %v5128_v3 }
 0x44f   :  { %v5168_v60 = vand.u32 4294901760, %v5142_v4  ;;  %5407 = dma.vmem_to_hbm [thread:$0]  %s5403_s23, 32, %s5405_s21, [#allocation6]  }
 0x451   :  { %v5169_v2 = vsub.f32 %v5142_v4, %v5168_v60  ;;  %5234 = vmatmul.f32.vlgmr.msra.gmra.mxu1 %v5168_v60  ;;  %5348 = vmatmul.f32.vlgmr.msrb.gmra.mxu2 %v5168_v60 }
 0x452   :  { %5377 = vmatmul.f32.vlgmr.msrb.gmra.mxu3 %v5168_v60 }
 0x453   :  { %v5170_v39 = vand.u32 4294901760, %v5169_v2 }
 0x455   :  { %v5171_v49 = vsub.f32 %v5169_v2, %v5170_v39 }
 0x457   :  { %v5172_v38 = vand.u32 4294901760, %v5171_v49 }
 0x459   :  { %5173 = vmatmul.f32.vlgmr.msra.gmra.mxu0 %v5172_v38  ;;  %5303 = vmatmul.f32.vlgmr.msrb.gmra.mxu1 %v5170_v39 }
 0x461   :  { %5272 = vmatmul.f32.vlgmr.msrb.gmra.mxu0 %v5169_v2 }
 0x4ce   :  { %v5235_v18 = vpop.f32.mrf.mxu1 }
 0x4d4   :  { %v5349_v12 = vpop.f32.mrf.mxu2 }
 0x4d5   :  { %v5378_v27 = vpop.f32.mrf.mxu3 }
 0x4d6   :  { %v5174_v19 = vpop.f32.mrf.mxu0  ;;  %v5304_v40 = vpop.f32.mrf.mxu1 }
 0x4d7   :  { %v5175_v58 = vadd.f32 %v5438_v21, %v5174_v19 }
 0x4d9   :  { %v5236_v15 = vadd.f32 %v5235_v18, %v5175_v58 }
 0x4de   :  { %v5273_v7 = vpop.f32.mrf.mxu0 }
 0x4df   :  { %v5274_v55 = vadd.f32 %v5273_v7, %v5236_v15 }
 0x4e1   :  { %v5305_v8 = vadd.f32 %v5304_v40, %v5274_v55 }
 0x4e3   :  { %v5350_v45 = vadd.f32 %v5349_v12, %v5305_v8 }
 0x4e5   :  { %v5379_v56 = vadd.f32 %v5378_v27, %v5350_v45 }
 0x4e7   :  { %5385 = vst.msk [vmem:[#allocation7] sm:$0x3] %vm5384_vm3, %v5379_v56 }
 0x4e8   :  { %5418 = dma.vmem_to_hbm [thread:$0]  %s5414_s28, 32, %s5416_s30, [#allocation6]  }
 0x4e9   :  { %5511 = dma.done.wait [#allocation4], 32  }
 0x4ea   :  { %5512 = vsyncadd [#allocation4], 4294967264 }
 0x4eb   :  { %5513 = dma.done.wait [#allocation6], 64  }
 0x4ec   :  { %5514 = vsyncadd [#allocation6], 4294967232 }
 0x4ed   :  { %5431 = vsyncpa [#allocation4], 1 }
 0x4ee   :  { %5432 = vsyncpa [#allocation6], 1 }

</bundles_post_ra>
